<compile_context>
chip_gen: v5e
topology: v5e:2x2
jax: 0.10.0
libtpu: 0.0.40
codegen_flags: <defaults>
</compile_context>

<pallas_src>
import functools

import jax
import jax.numpy as jnp
from jax import lax
from jax.experimental import pallas as pl
from jax.experimental.pallas import tpu as pltpu


def _fill_reflect_borders(pad_ref, H, W):
    """Fill the 1-pixel ReflectionPad2d border of pad_ref, whose interior
    rows/cols [1:H+1, 1:W+1] already hold the unpadded (H, W, C) data."""
    # top / bottom rows: padded row 0 <- unpadded row 1 (padded row 2),
    #                    padded row H+1 <- unpadded row H-2 (padded row H-1)
    pad_ref[0:1, 1:W + 1, :] = pad_ref[2:3, 1:W + 1, :]
    pad_ref[H + 1:H + 2, 1:W + 1, :] = pad_ref[H - 1:H, 1:W + 1, :]
    # left / right cols (corners come out right because rows are already done)
    pad_ref[:, 0:1, :] = pad_ref[:, 2:3, :]
    pad_ref[:, W + 1:W + 2, :] = pad_ref[:, W - 1:W, :]


def _build_im2col(col_ref, pad_ref, H, W, C):
    """col_ref[(i,j), t*C:(t+1)*C] = padded[i+kh, j+kw, :] for tap t = kh*3+kw.

    Each tap is a single shifted-window copy read via a *ref slice* of the
    padded scratch (bounded live range), cast to the MXU dtype on the store.
    """
    for kh in range(3):
        for kw in range(3):
            t = kh * 3 + kw
            col_ref[:, :, t * C:(t + 1) * C] = (
                pad_ref[kh:kh + H, kw:kw + W, :].astype(col_ref.dtype))


def _conv3x3_im2col(col_ref, w_ref, b_ref, H, W, C):
    """One (H*W, 9C) @ (9C, C) MXU matmul + bias; f32 accumulation."""
    col = col_ref[...].reshape(H * W, 9 * C)
    acc = jnp.dot(col, w_ref[...], preferred_element_type=jnp.float32)
    acc = acc + b_ref[...].astype(jnp.float32)      # (1, C) broadcasts over rows
    return acc.reshape(H, W, C)


def resnet_block_kernel(x_ref, w1_ref, b1_ref, w2_ref, b2_ref, o_ref,
                        pad_ref, col_ref, *, H, W, C):
    f32 = jnp.float32

    # ---- conv1 + ReLU ----------------------------------------------------
    pad_ref[1:H + 1, 1:W + 1, :] = x_ref[0].astype(f32)
    _fill_reflect_borders(pad_ref, H, W)
    _build_im2col(col_ref, pad_ref, H, W, C)
    h = jnp.maximum(_conv3x3_im2col(col_ref, w1_ref, b1_ref, H, W, C), 0.0)

    # ---- conv2 (reuse the SAME padded + im2col scratches) -----------------
    pad_ref[1:H + 1, 1:W + 1, :] = h
    _fill_reflect_borders(pad_ref, H, W)
    _build_im2col(col_ref, pad_ref, H, W, C)
    y = _conv3x3_im2col(col_ref, w2_ref, b2_ref, H, W, C)

    # ---- residual: re-read x here (short live range, no hold across convs) -
    o_ref[0] = (x_ref[0].astype(f32) + y).astype(o_ref.dtype)


def resnet_block(x_nhwc, w1, b1, w2, b2, *, mxu_dtype=None):
    """x_nhwc: (N, H, W, C); w*: (3, 3, C, C) HWIO; b*: (C,).

    mxu_dtype: dtype fed to the MXU (weights + im2col patches). Use
    jnp.bfloat16 on v6e/v7x for the fast MXU path; f32 accumulation either way.
    """
    N, H, W, C = x_nhwc.shape
    if H < 2 or W < 2:
        raise ValueError("ReflectionPad2d(1) needs H >= 2 and W >= 2")
    if w1.shape != (3, 3, C, C) or w2.shape != (3, 3, C, C):
        raise ValueError("expected HWIO (3,3,C,C) weights with C_in == C_out")
    if mxu_dtype is None:
        mxu_dtype = x_nhwc.dtype

    Hp = H + 2
    Wp_alloc = ((W + 2 + 7) // 8) * 8        # round padded W up to 8 sublanes
    K = 9 * C                                # im2col contraction dim

    # (3,3,Cin,Cout) -> (9C, C); row order (kh, kw, cin) matches the slab layout.
    w1m = w1.reshape(K, C).astype(mxu_dtype)
    w2m = w2.reshape(K, C).astype(mxu_dtype)
    b1m = b1.reshape(1, C).astype(jnp.float32)
    b2m = b2.reshape(1, C).astype(jnp.float32)

    # Explicit scoped-VMEM budget (defaults are 16 MiB on v5e / 32 MiB on v6e,v7x).
    bpe_x = jnp.dtype(x_nhwc.dtype).itemsize
    bpe_m = jnp.dtype(mxu_dtype).itemsize
    io_block = H * W * C * bpe_x
    weights = 2 * (K * C * bpe_m + C * 4)
    scratch = Hp * Wp_alloc * C * 4 + H * W * K * bpe_m
    need = 2 * (2 * io_block) + 2 * weights + scratch      # double-buffered I/O
    vmem_limit = int(min(96 * 2 ** 20, max(32 * 2 ** 20, 2 * need)))

    kernel = functools.partial(resnet_block_kernel, H=H, W=W, C=C)
    return pl.pallas_call(
        kernel,
        out_shape=jax.ShapeDtypeStruct((N, H, W, C), x_nhwc.dtype),
        grid_spec=pltpu.PrefetchScalarGridSpec(
            num_scalar_prefetch=0,
            grid=(N,),
            in_specs=[
                pl.BlockSpec((1, H, W, C), lambda n: (n, 0, 0, 0)),
                pl.BlockSpec((K, C), lambda n: (0, 0)),   # resident weights
                pl.BlockSpec((1, C), lambda n: (0, 0)),   # resident bias
                pl.BlockSpec((K, C), lambda n: (0, 0)),   # resident weights
                pl.BlockSpec((1, C), lambda n: (0, 0)),   # resident bias
            ],
            out_specs=pl.BlockSpec((1, H, W, C), lambda n: (n, 0, 0, 0)),
            scratch_shapes=[
                pltpu.VMEM((Hp, Wp_alloc, C), jnp.float32),  # shared padded tile
                pltpu.VMEM((H, W, K), mxu_dtype),            # shared im2col slab
            ],
        ),
        compiler_params=pltpu.CompilerParams(
            dimension_semantics=("parallel",),
            vmem_limit_bytes=vmem_limit,
        ),
    )(x_nhwc, w1m, b1m, w2m, b2m)


def resnet_block_reference(x_nhwc, w1, b1, w2, b2):
    """Pure-JAX reference (same semantics) for correctness checking."""
    def conv(a, w, b):
        ap = jnp.pad(a, ((0, 0), (1, 1), (1, 1), (0, 0)), mode="reflect")
        y = lax.conv_general_dilated(
            ap, w, window_strides=(1, 1), padding="VALID",
            dimension_numbers=("NHWC", "HWIO", "NHWC"),
            precision=lax.Precision.HIGHEST,
        )
        return y + b.reshape(1, 1, 1, -1)

    h = jnp.maximum(conv(x_nhwc, w1, b1), 0.0)
    return x_nhwc + conv(h, w2, b2)


if __name__ == "__main__":
    key = jax.random.PRNGKey(0)
    k_x, k_w1, k_b1, k_w2, k_b2 = jax.random.split(key, 5)

    N, C, H, W = 2, 4, 16, 16  # PyTorch-style NCHW sizes
    x_nchw = jax.random.normal(k_x, (N, C, H, W), dtype=jnp.float32)
    # Synthetic Conv2d(dim, dim, 3) parameters, stored as HWIO
    # (PyTorch OIHW weights would convert via w.transpose(2, 3, 1, 0)).
    w1 = jax.random.normal(k_w1, (3, 3, C, C), dtype=jnp.float32) * 0.1
    b1 = jax.random.normal(k_b1, (C,), dtype=jnp.float32) * 0.1
    w2 = jax.random.normal(k_w2, (3, 3, C, C), dtype=jnp.float32) * 0.1
    b2 = jax.random.normal(k_b2, (C,), dtype=jnp.float32) * 0.1

    # NCHW -> NHWC for the TPU kernel (channels on the lane axis).
    x_nhwc = jnp.transpose(x_nchw, (0, 2, 3, 1))

    ref = jax.block_until_ready(resnet_block_reference(x_nhwc, w1, b1, w2, b2))

    # f32 MXU path (exact check).
    out = jax.block_until_ready(resnet_block(x_nhwc, w1, b1, w2, b2))
    assert out.shape == (N, H, W, C), out.shape
    err = float(jnp.max(jnp.abs(out - ref)))
    assert jnp.allclose(out, ref, atol=1e-4, rtol=1e-4), err

    # bf16 MXU operand path (v6e/v7x fast path), f32 accumulation — loose check.
    out_bf16 = jax.block_until_ready(
        resnet_block(x_nhwc, w1, b1, w2, b2, mxu_dtype=jnp.bfloat16))
    err_bf16 = float(jnp.max(jnp.abs(out_bf16 - ref)))
    assert jnp.allclose(out_bf16, ref, atol=1e-1, rtol=1e-1), err_bf16

    # Back to PyTorch layout just to demonstrate equivalence of the interface.
    out_nchw = jnp.transpose(out, (0, 3, 1, 2))
    assert out_nchw.shape == (N, C, H, W)

    print("KERNEL_OK")
</pallas_src>

<mosaic_0001>
module attributes {stable_mosaic.version = 11 : i64} {
  func.func @resnet_block_kernel(%arg0: i32, %arg1: memref<1x16x16x4xf32, #tpu.memory_space<vmem>>, %arg2: memref<36x4xf32, #tpu.memory_space<vmem>>, %arg3: memref<1x4xf32, #tpu.memory_space<vmem>>, %arg4: memref<36x4xf32, #tpu.memory_space<vmem>>, %arg5: memref<1x4xf32, #tpu.memory_space<vmem>>, %arg6: memref<1x16x16x4xf32, #tpu.memory_space<vmem>>, %arg7: memref<18x24x4xf32, #tpu.memory_space<vmem>>, %arg8: memref<16x16x36xf32, #tpu.memory_space<vmem>>) attributes {dimension_semantics = [#tpu.dimension_semantics<parallel>], iteration_bounds = array<i64: 2>, scalar_prefetch = 0 : i64, scratch_operands = 2 : i64, tpu.core_type = #tpu.core_type<tc>, window_params = [{transform_indices = @transform_0, window_bounds = array<i64: 1, 16, 16, 4>}, {pipeline_mode = #tpu.pipeline_mode<synchronous>, transform_indices = @transform_1, window_bounds = array<i64: 36, 4>}, {pipeline_mode = #tpu.pipeline_mode<synchronous>, transform_indices = @transform_2, window_bounds = array<i64: 1, 4>}, {pipeline_mode = #tpu.pipeline_mode<synchronous>, transform_indices = @transform_3, window_bounds = array<i64: 36, 4>}, {pipeline_mode = #tpu.pipeline_mode<synchronous>, transform_indices = @transform_4, window_bounds = array<i64: 1, 4>}, {transform_indices = @transform_5, window_bounds = array<i64: 1, 16, 16, 4>}]} {
    %c0 = arith.constant 0 : index
    %c0_0 = arith.constant 0 : index
    %c0_1 = arith.constant 0 : index
    %c0_2 = arith.constant 0 : index
    %0 = vector.load %arg1[%c0, %c0_0, %c0_1, %c0_2] : memref<1x16x16x4xf32, #tpu.memory_space<vmem>>, vector<1x16x16x4xf32>
    %1 = vector.shape_cast %0 : vector<1x16x16x4xf32> to vector<16x16x4xf32>
    %c1 = arith.constant 1 : index
    %c1_3 = arith.constant 1 : index
    %c0_4 = arith.constant 0 : index
    %2 = vector.load %arg7[%c1, %c1_3, %c0_4] : memref<18x24x4xf32, #tpu.memory_space<vmem>>, vector<16x16x4xf32>
    tpu.vector_store %arg7[%c1, %c1_3, %c0_4], %1 {strides = array<i32>} : memref<18x24x4xf32, #tpu.memory_space<vmem>>, vector<16x16x4xf32>,
    %c2 = arith.constant 2 : index
    %c1_5 = arith.constant 1 : index
    %c0_6 = arith.constant 0 : index
    %3 = vector.load %arg7[%c2, %c1_5, %c0_6] : memref<18x24x4xf32, #tpu.memory_space<vmem>>, vector<1x16x4xf32>
    %c0_7 = arith.constant 0 : index
    %c1_8 = arith.constant 1 : index
    %c0_9 = arith.constant 0 : index
    %4 = vector.load %arg7[%c0_7, %c1_8, %c0_9] : memref<18x24x4xf32, #tpu.memory_space<vmem>>, vector<1x16x4xf32>
    tpu.vector_store %arg7[%c0_7, %c1_8, %c0_9], %3 {strides = array<i32>} : memref<18x24x4xf32, #tpu.memory_space<vmem>>, vector<1x16x4xf32>,
    %c15 = arith.constant 15 : index
    %c1_10 = arith.constant 1 : index
    %c0_11 = arith.constant 0 : index
    %5 = vector.load %arg7[%c15, %c1_10, %c0_11] : memref<18x24x4xf32, #tpu.memory_space<vmem>>, vector<1x16x4xf32>
    %c17 = arith.constant 17 : index
    %c1_12 = arith.constant 1 : index
    %c0_13 = arith.constant 0 : index
    %6 = vector.load %arg7[%c17, %c1_12, %c0_13] : memref<18x24x4xf32, #tpu.memory_space<vmem>>, vector<1x16x4xf32>
    tpu.vector_store %arg7[%c17, %c1_12, %c0_13], %5 {strides = array<i32>} : memref<18x24x4xf32, #tpu.memory_space<vmem>>, vector<1x16x4xf32>,
    %c0_14 = arith.constant 0 : index
    %c2_15 = arith.constant 2 : index
    %c0_16 = arith.constant 0 : index
    %7 = vector.load %arg7[%c0_14, %c2_15, %c0_16] : memref<18x24x4xf32, #tpu.memory_space<vmem>>, vector<18x1x4xf32>
    %c0_17 = arith.constant 0 : index
    %c0_18 = arith.constant 0 : index
    %c0_19 = arith.constant 0 : index
    %8 = vector.load %arg7[%c0_17, %c0_18, %c0_19] : memref<18x24x4xf32, #tpu.memory_space<vmem>>, vector<18x1x4xf32>
    tpu.vector_store %arg7[%c0_17, %c0_18, %c0_19], %7 {strides = array<i32>} : memref<18x24x4xf32, #tpu.memory_space<vmem>>, vector<18x1x4xf32>,
    %c0_20 = arith.constant 0 : index
    %c15_21 = arith.constant 15 : index
    %c0_22 = arith.constant 0 : index
    %9 = vector.load %arg7[%c0_20, %c15_21, %c0_22] : memref<18x24x4xf32, #tpu.memory_space<vmem>>, vector<18x1x4xf32>
    %c0_23 = arith.constant 0 : index
    %c17_24 = arith.constant 17 : index
    %c0_25 = arith.constant 0 : index
    %10 = vector.load %arg7[%c0_23, %c17_24, %c0_25] : memref<18x24x4xf32, #tpu.memory_space<vmem>>, vector<18x1x4xf32>
    tpu.vector_store %arg7[%c0_23, %c17_24, %c0_25], %9 {strides = array<i32>} : memref<18x24x4xf32, #tpu.memory_space<vmem>>, vector<18x1x4xf32>,
    %c0_26 = arith.constant 0 : index
    %c0_27 = arith.constant 0 : index
    %c0_28 = arith.constant 0 : index
    %11 = vector.load %arg7[%c0_26, %c0_27, %c0_28] : memref<18x24x4xf32, #tpu.memory_space<vmem>>, vector<16x16x4xf32>
    %c0_29 = arith.constant 0 : index
    %c0_30 = arith.constant 0 : index
    %c0_31 = arith.constant 0 : index
    %12 = vector.load %arg8[%c0_29, %c0_30, %c0_31] : memref<16x16x36xf32, #tpu.memory_space<vmem>>, vector<16x16x4xf32>
    tpu.vector_store %arg8[%c0_29, %c0_30, %c0_31], %11 {strides = array<i32>} : memref<16x16x36xf32, #tpu.memory_space<vmem>>, vector<16x16x4xf32>,
    %c0_32 = arith.constant 0 : index
    %c1_33 = arith.constant 1 : index
    %c0_34 = arith.constant 0 : index
    %13 = vector.load %arg7[%c0_32, %c1_33, %c0_34] : memref<18x24x4xf32, #tpu.memory_space<vmem>>, vector<16x16x4xf32>
    %c0_35 = arith.constant 0 : index
    %c0_36 = arith.constant 0 : index
    %c4 = arith.constant 4 : index
    %14 = vector.load %arg8[%c0_35, %c0_36, %c4] : memref<16x16x36xf32, #tpu.memory_space<vmem>>, vector<16x16x4xf32>
    tpu.vector_store %arg8[%c0_35, %c0_36, %c4], %13 {strides = array<i32>} : memref<16x16x36xf32, #tpu.memory_space<vmem>>, vector<16x16x4xf32>,
    %c0_37 = arith.constant 0 : index
    %c2_38 = arith.constant 2 : index
    %c0_39 = arith.constant 0 : index
    %15 = vector.load %arg7[%c0_37, %c2_38, %c0_39] : memref<18x24x4xf32, #tpu.memory_space<vmem>>, vector<16x16x4xf32>
    %c0_40 = arith.constant 0 : index
    %c0_41 = arith.constant 0 : index
    %c8 = arith.constant 8 : index
    %16 = vector.load %arg8[%c0_40, %c0_41, %c8] : memref<16x16x36xf32, #tpu.memory_space<vmem>>, vector<16x16x4xf32>
    tpu.vector_store %arg8[%c0_40, %c0_41, %c8], %15 {strides = array<i32>} : memref<16x16x36xf32, #tpu.memory_space<vmem>>, vector<16x16x4xf32>,
    %c1_42 = arith.constant 1 : index
    %c0_43 = arith.constant 0 : index
    %c0_44 = arith.constant 0 : index
    %17 = vector.load %arg7[%c1_42, %c0_43, %c0_44] : memref<18x24x4xf32, #tpu.memory_space<vmem>>, vector<16x16x4xf32>
    %c0_45 = arith.constant 0 : index
    %c0_46 = arith.constant 0 : index
    %c12 = arith.constant 12 : index
    %18 = vector.load %arg8[%c0_45, %c0_46, %c12] : memref<16x16x36xf32, #tpu.memory_space<vmem>>, vector<16x16x4xf32>
    tpu.vector_store %arg8[%c0_45, %c0_46, %c12], %17 {strides = array<i32>} : memref<16x16x36xf32, #tpu.memory_space<vmem>>, vector<16x16x4xf32>,
    %c1_47 = arith.constant 1 : index
    %c1_48 = arith.constant 1 : index
    %c0_49 = arith.constant 0 : index
    %19 = vector.load %arg7[%c1_47, %c1_48, %c0_49] : memref<18x24x4xf32, #tpu.memory_space<vmem>>, vector<16x16x4xf32>
    %c0_50 = arith.constant 0 : index
    %c0_51 = arith.constant 0 : index
    %c16 = arith.constant 16 : index
    %20 = vector.load %arg8[%c0_50, %c0_51, %c16] : memref<16x16x36xf32, #tpu.memory_space<vmem>>, vector<16x16x4xf32>
    tpu.vector_store %arg8[%c0_50, %c0_51, %c16], %19 {strides = array<i32>} : memref<16x16x36xf32, #tpu.memory_space<vmem>>, vector<16x16x4xf32>,
    %c1_52 = arith.constant 1 : index
    %c2_53 = arith.constant 2 : index
    %c0_54 = arith.constant 0 : index
    %21 = vector.load %arg7[%c1_52, %c2_53, %c0_54] : memref<18x24x4xf32, #tpu.memory_space<vmem>>, vector<16x16x4xf32>
    %c0_55 = arith.constant 0 : index
    %c0_56 = arith.constant 0 : index
    %c20 = arith.constant 20 : index
    %22 = vector.load %arg8[%c0_55, %c0_56, %c20] : memref<16x16x36xf32, #tpu.memory_space<vmem>>, vector<16x16x4xf32>
    tpu.vector_store %arg8[%c0_55, %c0_56, %c20], %21 {strides = array<i32>} : memref<16x16x36xf32, #tpu.memory_space<vmem>>, vector<16x16x4xf32>,
    %c2_57 = arith.constant 2 : index
    %c0_58 = arith.constant 0 : index
    %c0_59 = arith.constant 0 : index
    %23 = vector.load %arg7[%c2_57, %c0_58, %c0_59] : memref<18x24x4xf32, #tpu.memory_space<vmem>>, vector<16x16x4xf32>
    %c0_60 = arith.constant 0 : index
    %c0_61 = arith.constant 0 : index
    %c24 = arith.constant 24 : index
    %24 = vector.load %arg8[%c0_60, %c0_61, %c24] : memref<16x16x36xf32, #tpu.memory_space<vmem>>, vector<16x16x4xf32>
    tpu.vector_store %arg8[%c0_60, %c0_61, %c24], %23 {strides = array<i32>} : memref<16x16x36xf32, #tpu.memory_space<vmem>>, vector<16x16x4xf32>,
    %c2_62 = arith.constant 2 : index
    %c1_63 = arith.constant 1 : index
    %c0_64 = arith.constant 0 : index
    %25 = vector.load %arg7[%c2_62, %c1_63, %c0_64] : memref<18x24x4xf32, #tpu.memory_space<vmem>>, vector<16x16x4xf32>
    %c0_65 = arith.constant 0 : index
    %c0_66 = arith.constant 0 : index
    %c28 = arith.constant 28 : index
    %26 = vector.load %arg8[%c0_65, %c0_66, %c28] : memref<16x16x36xf32, #tpu.memory_space<vmem>>, vector<16x16x4xf32>
    tpu.vector_store %arg8[%c0_65, %c0_66, %c28], %25 {strides = array<i32>} : memref<16x16x36xf32, #tpu.memory_space<vmem>>, vector<16x16x4xf32>,
    %c2_67 = arith.constant 2 : index
    %c2_68 = arith.constant 2 : index
    %c0_69 = arith.constant 0 : index
    %27 = vector.load %arg7[%c2_67, %c2_68, %c0_69] : memref<18x24x4xf32, #tpu.memory_space<vmem>>, vector<16x16x4xf32>
    %c0_70 = arith.constant 0 : index
    %c0_71 = arith.constant 0 : index
    %c32 = arith.constant 32 : index
    %28 = vector.load %arg8[%c0_70, %c0_71, %c32] : memref<16x16x36xf32, #tpu.memory_space<vmem>>, vector<16x16x4xf32>
    tpu.vector_store %arg8[%c0_70, %c0_71, %c32], %27 {strides = array<i32>} : memref<16x16x36xf32, #tpu.memory_space<vmem>>, vector<16x16x4xf32>,
    %c0_72 = arith.constant 0 : index
    %c0_73 = arith.constant 0 : index
    %c0_74 = arith.constant 0 : index
    %29 = vector.load %arg8[%c0_72, %c0_73, %c0_74] : memref<16x16x36xf32, #tpu.memory_space<vmem>>, vector<16x16x36xf32>
    %30 = vector.shape_cast %29 : vector<16x16x36xf32> to vector<256x36xf32>
    %c0_75 = arith.constant 0 : index
    %c0_76 = arith.constant 0 : index
    %31 = vector.load %arg2[%c0_75, %c0_76] : memref<36x4xf32, #tpu.memory_space<vmem>>, vector<36x4xf32>
    %cst = arith.constant dense<0.000000e+00> : vector<256x4xf32>
    %32 = tpu.matmul %30, %31, %cst {dimension_numbers = #tpu.dot_dimension_numbers<[1], [0], [0], [1], [0, 0, 1, 1], [], []>} : vector<256x36xf32>, vector<36x4xf32>, vector<256x4xf32> -> vector<256x4xf32>
    %c0_77 = arith.constant 0 : index
    %c0_78 = arith.constant 0 : index
    %33 = vector.load %arg3[%c0_77, %c0_78] : memref<1x4xf32, #tpu.memory_space<vmem>>, vector<1x4xf32>
    %34 = vector.broadcast %33 : vector<1x4xf32> to vector<256x4xf32>
    %35 = arith.addf %32, %34 : vector<256x4xf32>
    %36 = vector.shape_cast %35 : vector<256x4xf32> to vector<16x16x4xf32>
    %cst_79 = arith.constant 0.000000e+00 : f32
    %37 = vector.broadcast %cst_79 : f32 to vector<16x16x4xf32>
    %38 = arith.maximumf %36, %37 : vector<16x16x4xf32>
    %c1_80 = arith.constant 1 : index
    %c1_81 = arith.constant 1 : index
    %c0_82 = arith.constant 0 : index
    %39 = vector.load %arg7[%c1_80, %c1_81, %c0_82] : memref<18x24x4xf32, #tpu.memory_space<vmem>>, vector<16x16x4xf32>
    tpu.vector_store %arg7[%c1_80, %c1_81, %c0_82], %38 {strides = array<i32>} : memref<18x24x4xf32, #tpu.memory_space<vmem>>, vector<16x16x4xf32>,
    %c2_83 = arith.constant 2 : index
    %c1_84 = arith.constant 1 : index
    %c0_85 = arith.constant 0 : index
    %40 = vector.load %arg7[%c2_83, %c1_84, %c0_85] : memref<18x24x4xf32, #tpu.memory_space<vmem>>, vector<1x16x4xf32>
    %c0_86 = arith.constant 0 : index
    %c1_87 = arith.constant 1 : index
    %c0_88 = arith.constant 0 : index
    %41 = vector.load %arg7[%c0_86, %c1_87, %c0_88] : memref<18x24x4xf32, #tpu.memory_space<vmem>>, vector<1x16x4xf32>
    tpu.vector_store %arg7[%c0_86, %c1_87, %c0_88], %40 {strides = array<i32>} : memref<18x24x4xf32, #tpu.memory_space<vmem>>, vector<1x16x4xf32>,
    %c15_89 = arith.constant 15 : index
    %c1_90 = arith.constant 1 : index
    %c0_91 = arith.constant 0 : index
    %42 = vector.load %arg7[%c15_89, %c1_90, %c0_91] : memref<18x24x4xf32, #tpu.memory_space<vmem>>, vector<1x16x4xf32>
    %c17_92 = arith.constant 17 : index
    %c1_93 = arith.constant 1 : index
    %c0_94 = arith.constant 0 : index
    %43 = vector.load %arg7[%c17_92, %c1_93, %c0_94] : memref<18x24x4xf32, #tpu.memory_space<vmem>>, vector<1x16x4xf32>
    tpu.vector_store %arg7[%c17_92, %c1_93, %c0_94], %42 {strides = array<i32>} : memref<18x24x4xf32, #tpu.memory_space<vmem>>, vector<1x16x4xf32>,
    %c0_95 = arith.constant 0 : index
    %c2_96 = arith.constant 2 : index
    %c0_97 = arith.constant 0 : index
    %44 = vector.load %arg7[%c0_95, %c2_96, %c0_97] : memref<18x24x4xf32, #tpu.memory_space<vmem>>, vector<18x1x4xf32>
    %c0_98 = arith.constant 0 : index
    %c0_99 = arith.constant 0 : index
    %c0_100 = arith.constant 0 : index
    %45 = vector.load %arg7[%c0_98, %c0_99, %c0_100] : memref<18x24x4xf32, #tpu.memory_space<vmem>>, vector<18x1x4xf32>
    tpu.vector_store %arg7[%c0_98, %c0_99, %c0_100], %44 {strides = array<i32>} : memref<18x24x4xf32, #tpu.memory_space<vmem>>, vector<18x1x4xf32>,
    %c0_101 = arith.constant 0 : index
    %c15_102 = arith.constant 15 : index
    %c0_103 = arith.constant 0 : index
    %46 = vector.load %arg7[%c0_101, %c15_102, %c0_103] : memref<18x24x4xf32, #tpu.memory_space<vmem>>, vector<18x1x4xf32>
    %c0_104 = arith.constant 0 : index
    %c17_105 = arith.constant 17 : index
    %c0_106 = arith.constant 0 : index
    %47 = vector.load %arg7[%c0_104, %c17_105, %c0_106] : memref<18x24x4xf32, #tpu.memory_space<vmem>>, vector<18x1x4xf32>
    tpu.vector_store %arg7[%c0_104, %c17_105, %c0_106], %46 {strides = array<i32>} : memref<18x24x4xf32, #tpu.memory_space<vmem>>, vector<18x1x4xf32>,
    %c0_107 = arith.constant 0 : index
    %c0_108 = arith.constant 0 : index
    %c0_109 = arith.constant 0 : index
    %48 = vector.load %arg7[%c0_107, %c0_108, %c0_109] : memref<18x24x4xf32, #tpu.memory_space<vmem>>, vector<16x16x4xf32>
    %c0_110 = arith.constant 0 : index
    %c0_111 = arith.constant 0 : index
    %c0_112 = arith.constant 0 : index
    %49 = vector.load %arg8[%c0_110, %c0_111, %c0_112] : memref<16x16x36xf32, #tpu.memory_space<vmem>>, vector<16x16x4xf32>
    tpu.vector_store %arg8[%c0_110, %c0_111, %c0_112], %48 {strides = array<i32>} : memref<16x16x36xf32, #tpu.memory_space<vmem>>, vector<16x16x4xf32>,
    %c0_113 = arith.constant 0 : index
    %c1_114 = arith.constant 1 : index
    %c0_115 = arith.constant 0 : index
    %50 = vector.load %arg7[%c0_113, %c1_114, %c0_115] : memref<18x24x4xf32, #tpu.memory_space<vmem>>, vector<16x16x4xf32>
    %c0_116 = arith.constant 0 : index
    %c0_117 = arith.constant 0 : index
    %c4_118 = arith.constant 4 : index
    %51 = vector.load %arg8[%c0_116, %c0_117, %c4_118] : memref<16x16x36xf32, #tpu.memory_space<vmem>>, vector<16x16x4xf32>
    tpu.vector_store %arg8[%c0_116, %c0_117, %c4_118], %50 {strides = array<i32>} : memref<16x16x36xf32, #tpu.memory_space<vmem>>, vector<16x16x4xf32>,
    %c0_119 = arith.constant 0 : index
    %c2_120 = arith.constant 2 : index
    %c0_121 = arith.constant 0 : index
    %52 = vector.load %arg7[%c0_119, %c2_120, %c0_121] : memref<18x24x4xf32, #tpu.memory_space<vmem>>, vector<16x16x4xf32>
    %c0_122 = arith.constant 0 : index
    %c0_123 = arith.constant 0 : index
    %c8_124 = arith.constant 8 : index
    %53 = vector.load %arg8[%c0_122, %c0_123, %c8_124] : memref<16x16x36xf32, #tpu.memory_space<vmem>>, vector<16x16x4xf32>
    tpu.vector_store %arg8[%c0_122, %c0_123, %c8_124], %52 {strides = array<i32>} : memref<16x16x36xf32, #tpu.memory_space<vmem>>, vector<16x16x4xf32>,
    %c1_125 = arith.constant 1 : index
    %c0_126 = arith.constant 0 : index
    %c0_127 = arith.constant 0 : index
    %54 = vector.load %arg7[%c1_125, %c0_126, %c0_127] : memref<18x24x4xf32, #tpu.memory_space<vmem>>, vector<16x16x4xf32>
    %c0_128 = arith.constant 0 : index
    %c0_129 = arith.constant 0 : index
    %c12_130 = arith.constant 12 : index
    %55 = vector.load %arg8[%c0_128, %c0_129, %c12_130] : memref<16x16x36xf32, #tpu.memory_space<vmem>>, vector<16x16x4xf32>
    tpu.vector_store %arg8[%c0_128, %c0_129, %c12_130], %54 {strides = array<i32>} : memref<16x16x36xf32, #tpu.memory_space<vmem>>, vector<16x16x4xf32>,
    %c1_131 = arith.constant 1 : index
    %c1_132 = arith.constant 1 : index
    %c0_133 = arith.constant 0 : index
    %56 = vector.load %arg7[%c1_131, %c1_132, %c0_133] : memref<18x24x4xf32, #tpu.memory_space<vmem>>, vector<16x16x4xf32>
    %c0_134 = arith.constant 0 : index
    %c0_135 = arith.constant 0 : index
    %c16_136 = arith.constant 16 : index
    %57 = vector.load %arg8[%c0_134, %c0_135, %c16_136] : memref<16x16x36xf32, #tpu.memory_space<vmem>>, vector<16x16x4xf32>
    tpu.vector_store %arg8[%c0_134, %c0_135, %c16_136], %56 {strides = array<i32>} : memref<16x16x36xf32, #tpu.memory_space<vmem>>, vector<16x16x4xf32>,
    %c1_137 = arith.constant 1 : index
    %c2_138 = arith.constant 2 : index
    %c0_139 = arith.constant 0 : index
    %58 = vector.load %arg7[%c1_137, %c2_138, %c0_139] : memref<18x24x4xf32, #tpu.memory_space<vmem>>, vector<16x16x4xf32>
    %c0_140 = arith.constant 0 : index
    %c0_141 = arith.constant 0 : index
    %c20_142 = arith.constant 20 : index
    %59 = vector.load %arg8[%c0_140, %c0_141, %c20_142] : memref<16x16x36xf32, #tpu.memory_space<vmem>>, vector<16x16x4xf32>
    tpu.vector_store %arg8[%c0_140, %c0_141, %c20_142], %58 {strides = array<i32>} : memref<16x16x36xf32, #tpu.memory_space<vmem>>, vector<16x16x4xf32>,
    %c2_143 = arith.constant 2 : index
    %c0_144 = arith.constant 0 : index
    %c0_145 = arith.constant 0 : index
    %60 = vector.load %arg7[%c2_143, %c0_144, %c0_145] : memref<18x24x4xf32, #tpu.memory_space<vmem>>, vector<16x16x4xf32>
    %c0_146 = arith.constant 0 : index
    %c0_147 = arith.constant 0 : index
    %c24_148 = arith.constant 24 : index
    %61 = vector.load %arg8[%c0_146, %c0_147, %c24_148] : memref<16x16x36xf32, #tpu.memory_space<vmem>>, vector<16x16x4xf32>
    tpu.vector_store %arg8[%c0_146, %c0_147, %c24_148], %60 {strides = array<i32>} : memref<16x16x36xf32, #tpu.memory_space<vmem>>, vector<16x16x4xf32>,
    %c2_149 = arith.constant 2 : index
    %c1_150 = arith.constant 1 : index
    %c0_151 = arith.constant 0 : index
    %62 = vector.load %arg7[%c2_149, %c1_150, %c0_151] : memref<18x24x4xf32, #tpu.memory_space<vmem>>, vector<16x16x4xf32>
    %c0_152 = arith.constant 0 : index
    %c0_153 = arith.constant 0 : index
    %c28_154 = arith.constant 28 : index
    %63 = vector.load %arg8[%c0_152, %c0_153, %c28_154] : memref<16x16x36xf32, #tpu.memory_space<vmem>>, vector<16x16x4xf32>
    tpu.vector_store %arg8[%c0_152, %c0_153, %c28_154], %62 {strides = array<i32>} : memref<16x16x36xf32, #tpu.memory_space<vmem>>, vector<16x16x4xf32>,
    %c2_155 = arith.constant 2 : index
    %c2_156 = arith.constant 2 : index
    %c0_157 = arith.constant 0 : index
    %64 = vector.load %arg7[%c2_155, %c2_156, %c0_157] : memref<18x24x4xf32, #tpu.memory_space<vmem>>, vector<16x16x4xf32>
    %c0_158 = arith.constant 0 : index
    %c0_159 = arith.constant 0 : index
    %c32_160 = arith.constant 32 : index
    %65 = vector.load %arg8[%c0_158, %c0_159, %c32_160] : memref<16x16x36xf32, #tpu.memory_space<vmem>>, vector<16x16x4xf32>
    tpu.vector_store %arg8[%c0_158, %c0_159, %c32_160], %64 {strides = array<i32>} : memref<16x16x36xf32, #tpu.memory_space<vmem>>, vector<16x16x4xf32>,
    %c0_161 = arith.constant 0 : index
    %c0_162 = arith.constant 0 : index
    %c0_163 = arith.constant 0 : index
    %66 = vector.load %arg8[%c0_161, %c0_162, %c0_163] : memref<16x16x36xf32, #tpu.memory_space<vmem>>, vector<16x16x36xf32>
    %67 = vector.shape_cast %66 : vector<16x16x36xf32> to vector<256x36xf32>
    %c0_164 = arith.constant 0 : index
    %c0_165 = arith.constant 0 : index
    %68 = vector.load %arg4[%c0_164, %c0_165] : memref<36x4xf32, #tpu.memory_space<vmem>>, vector<36x4xf32>
    %cst_166 = arith.constant dense<0.000000e+00> : vector<256x4xf32>
    %69 = tpu.matmul %67, %68, %cst_166 {dimension_numbers = #tpu.dot_dimension_numbers<[1], [0], [0], [1], [0, 0, 1, 1], [], []>} : vector<256x36xf32>, vector<36x4xf32>, vector<256x4xf32> -> vector<256x4xf32>
    %c0_167 = arith.constant 0 : index
    %c0_168 = arith.constant 0 : index
    %70 = vector.load %arg5[%c0_167, %c0_168] : memref<1x4xf32, #tpu.memory_space<vmem>>, vector<1x4xf32>
    %71 = vector.broadcast %70 : vector<1x4xf32> to vector<256x4xf32>
    %72 = arith.addf %69, %71 : vector<256x4xf32>
    %73 = vector.shape_cast %72 : vector<256x4xf32> to vector<16x16x4xf32>
    %c0_169 = arith.constant 0 : index
    %c0_170 = arith.constant 0 : index
    %c0_171 = arith.constant 0 : index
    %c0_172 = arith.constant 0 : index
    %74 = vector.load %arg1[%c0_169, %c0_170, %c0_171, %c0_172] : memref<1x16x16x4xf32, #tpu.memory_space<vmem>>, vector<1x16x16x4xf32>
    %75 = vector.shape_cast %74 : vector<1x16x16x4xf32> to vector<16x16x4xf32>
    %76 = arith.addf %75, %73 : vector<16x16x4xf32>
    %c0_173 = arith.constant 0 : index
    %c0_174 = arith.constant 0 : index
    %c0_175 = arith.constant 0 : index
    %c0_176 = arith.constant 0 : index
    %77 = vector.load %arg6[%c0_173, %c0_174, %c0_175, %c0_176] : memref<1x16x16x4xf32, #tpu.memory_space<vmem>>, vector<1x16x16x4xf32>
    %78 = vector.shape_cast %77 : vector<1x16x16x4xf32> to vector<16x16x4xf32>
    %79 = vector.shape_cast %76 : vector<16x16x4xf32> to vector<1x16x16x4xf32>
    tpu.vector_store %arg6[%c0_173, %c0_174, %c0_175, %c0_176], %79 {strides = array<i32>} : memref<1x16x16x4xf32, #tpu.memory_space<vmem>>, vector<1x16x16x4xf32>,
    return
  }
  func.func @transform_0(%arg0: i32) -> (i32, i32, i32, i32) {
    %c0_i32 = arith.constant 0 : i32
    %c0_i32_0 = arith.constant 0 : i32
    %c0_i32_1 = arith.constant 0 : i32
    %c0_i32_2 = arith.constant 0 : i32
    return %arg0, %c0_i32, %c0_i32_0, %c0_i32_1 : i32, i32, i32, i32
  }
  func.func @transform_1(%arg0: i32) -> (i32, i32) {
    %c0_i32 = arith.constant 0 : i32
    %c0_i32_0 = arith.constant 0 : i32
    %c0_i32_1 = arith.constant 0 : i32
    return %c0_i32, %c0_i32_0 : i32, i32
  }
  func.func @transform_2(%arg0: i32) -> (i32, i32) {
    %c0_i32 = arith.constant 0 : i32
    %c0_i32_0 = arith.constant 0 : i32
    %c0_i32_1 = arith.constant 0 : i32
    return %c0_i32, %c0_i32_0 : i32, i32
  }
  func.func @transform_3(%arg0: i32) -> (i32, i32) {
    %c0_i32 = arith.constant 0 : i32
    %c0_i32_0 = arith.constant 0 : i32
    %c0_i32_1 = arith.constant 0 : i32
    return %c0_i32, %c0_i32_0 : i32, i32
  }
  func.func @transform_4(%arg0: i32) -> (i32, i32) {
    %c0_i32 = arith.constant 0 : i32
    %c0_i32_0 = arith.constant 0 : i32
    %c0_i32_1 = arith.constant 0 : i32
    return %c0_i32, %c0_i32_0 : i32, i32
  }
  func.func @transform_5(%arg0: i32) -> (i32, i32, i32, i32) {
    %c0_i32 = arith.constant 0 : i32
    %c0_i32_0 = arith.constant 0 : i32
    %c0_i32_1 = arith.constant 0 : i32
    %c0_i32_2 = arith.constant 0 : i32
    return %arg0, %c0_i32, %c0_i32_0, %c0_i32_1 : i32, i32, i32, i32
  }
}

</mosaic_0001>

<bundles_post_ra>
// kernel: tpu_custom_call.1
= control target key start
LH: loop header
LB: loop body
LE: loop exit
PB: predicated region body
PF: predicated region fallthrough
CT: control target
= control target key end

     0   :  { %s4540_s18 = smov 0   ;;  %s6870_s0 = inlined_call_operand.vmem [shape: f32[2,16,16,4], index: 0, kind: input, shape index: {}]   ;;  %s6871_s1 = inlined_call_operand.vmem [shape: f32[36,4], index: 1, kind: input, shape index: {}]   ;;  %s6872_s2 = inlined_call_operand.vmem [shape: f32[1,4], index: 2, kind: input, shape index: {}]   ;;  %s6873_s3 = inlined_call_operand.vmem [shape: f32[36,4], index: 3, kind: input, shape index: {}]   ;;  %s6874_s4 = inlined_call_operand.vmem [shape: f32[1,4], index: 4, kind: input, shape index: {}]   ;;  %s6875_s5 = inlined_call_operand.vmem [shape: f32[2,16,16,4], index: 5, kind: output, shape index: {}]  }
   0x1 LB: > { %s4386_s19 = sadd.s32 4294967295, %s4500_s18   ;;  %p4390_p0 = scmp.ge.s32.totalorder %s4500_s18, 1  ;;  %s4500_s18 = sphi %s4540_s18, %s15_s18  }
   0x2   : > { %p187_p1 = scmp.lt.s32.totalorder %s4500_s18, 3 }
   0x4   : > { %p188_p2 = pnand %p4390_p0, %p187_p1 }
   0x6   : > { %191 = sbr.rel (%p188_p2) target bundleno = 1886 (0x75e), region = 40 }
   0xb   : > { %p215_p3 = scmp.lt.s32.totalorder %s4386_s19, 1  ;;  %vm258_vm0 = vcmask 31744   ;;  %s4502_s24 = smov 4   ;;  %vm320_vm1 = vcmask 24576   ;;  %vm599_vm2 = vcmask 64544   ;;  %vm792_vm3 = vcmask 97344  }
   0xc   : > { %s4503_s25 = smov 8   ;;  %s4504_s26 = smov 12   ;;  %vm985_vm4 = vcmask 130144   ;;  %vm1178_vm5 = vcmask 162944   ;;  %vm1371_vm6 = vcmask 195744   ;;  %vm1564_vm7 = vcmask 228544  }
   0xd   : > { %s7023_s19 = smov (!%p215_p3, %s4386_s19), 1  ;;  %s4505_s27 = smov 16   ;;  %vm1757_vm8 = vcmask 261344   ;;  %vm2121_vm9 = vcmask 1043456   ;;  %vm1950_vm10 = vcmask 294144   ;;  %vm2024_vm11 = vcmask 293888  }
   0xe   : > { %s4463_s20 = sshll.u32 %s7023_s19, 8  ;;  %s4506_s28 = smov 20  }
   0xf   : > { %s4556_s23 = scalar_lea.vmem %s6870_s0, %s4463_s20  ;;  %s4507_s29 = smov 24  }
  0x10   : > { %v229_v0 = vld [vmem:[%s4556_s23 + $0x20] sm:$0xff]  ;;  %v227_v1 = vld [vmem:[%s4556_s23 + $0x10] sm:$0xff]  ;;  %v228_v3 = vld [vmem:[%s4556_s23 + $0x18] sm:$0xff]  ;;  %s4508_s30 = smov 28   ;;  %s4509_s6 = smov 32  }
  0x11   : > { %v225_v2 = vld [vmem:[%s4556_s23] sm:$0xff]  ;;  %263 = vst.msk [vmem:[#allocation2 + $0x49] sm:$0xff] %vm258_vm0, %v229_v0  ;;  %v226_v4 = vld [vmem:[%s4556_s23 + $0x8] sm:$0xff]  ;;  %v232_v5 = vld [vmem:[%s4556_s23 + $0x38] sm:$0xff]  ;;  %s6675_s17 = scalar_lea.vmem %s6875_s5, %s4463_s20 }
  0x12   : > { %261 = vst.msk [vmem:[#allocation2 + $0x31] sm:$0xff] %vm258_vm0, %v227_v1  ;;  %v230_v6 = vld [vmem:[%s4556_s23 + $0x28] sm:$0xff]  ;;  %v231_v7 = vld [vmem:[%s4556_s23 + $0x30] sm:$0xff]  ;;  %v233_v10 = vld [vmem:[%s4556_s23 + $0x40] sm:$0xff] }
  0x13   : > { %259 = vst.msk [vmem:[#allocation2 + $0x19] sm:$0xff] %vm258_vm0, %v225_v2  ;;  %v235_v8 = vld [vmem:[%s4556_s23 + $0x50] sm:$0xff]  ;;  %v234_v13 = vld [vmem:[%s4556_s23 + $0x48] sm:$0xff]  ;;  %v236_v16 = vld [vmem:[%s4556_s23 + $0x58] sm:$0xff] }
  0x14   : > { %262 = vst.msk [vmem:[#allocation2 + $0x39] sm:$0xff] %vm258_vm0, %v228_v3  ;;  %v238_v15 = vld [vmem:[%s4556_s23 + $0x68] sm:$0xff]  ;;  %v237_v19 = vld [vmem:[%s4556_s23 + $0x60] sm:$0xff]  ;;  %v239_v21 = vld [vmem:[%s4556_s23 + $0x70] sm:$0xff] }
  0x15   : > { %260 = vst.msk [vmem:[#allocation2 + $0x21] sm:$0xff] %vm258_vm0, %v226_v4  ;;  %v241_v20 = vld [vmem:[%s4556_s23 + $0x80] sm:$0xff]  ;;  %v240_v25 = vld [vmem:[%s4556_s23 + $0x78] sm:$0xff]  ;;  %v242_v27 = vld [vmem:[%s4556_s23 + $0x88] sm:$0xff] }
  0x16   : > { %266 = vst.msk [vmem:[#allocation2 + $0x69] sm:$0xff] %vm258_vm0, %v232_v5  ;;  %v244_v26 = vld [vmem:[%s4556_s23 + $0x98] sm:$0xff]  ;;  %v243_v31 = vld [vmem:[%s4556_s23 + $0x90] sm:$0xff]  ;;  %v245_v33 = vld [vmem:[%s4556_s23 + $0xa0] sm:$0xff] }
  0x17   : > { %264 = vst.msk [vmem:[#allocation2 + $0x51] sm:$0xff] %vm258_vm0, %v230_v6  ;;  %v247_v32 = vld [vmem:[%s4556_s23 + $0xb0] sm:$0xff]  ;;  %v246_v37 = vld [vmem:[%s4556_s23 + $0xa8] sm:$0xff]  ;;  %v248_v39 = vld [vmem:[%s4556_s23 + $0xb8] sm:$0xff] }
  0x18   : > { %v445_v9 = vld [vmem:[#allocation2 + $0x49] sm:$0xff]  ;;  %265 = vst.msk [vmem:[#allocation2 + $0x61] sm:$0xff] %vm258_vm0, %v231_v7  ;;  %v249_v43 = vld [vmem:[%s4556_s23 + $0xc0] sm:$0xff]  ;;  %v252_v49 = vld [vmem:[%s4556_s23 + $0xd8] sm:$0xff] }
  0x19   : > { %515 = vrot.lane.b32.xlu0 %v445_v9, %s4502_s24  ;;  %v292_v11 = vld [vmem:[#allocation2 + $0x31] sm:$0xff]  ;;  %269 = vst.msk [vmem:[#allocation2 + $0x91] sm:$0xff] %vm258_vm0, %v235_v8  ;;  %v250_v38 = vld [vmem:[%s4556_s23 + $0xc8] sm:$0xff]  ;;  %v253_v44 = vld [vmem:[%s4556_s23 + $0xe0] sm:$0xff] }
  0x1a   : > { %294 = vst.msk [vmem:[#allocation2 + $0x1] sm:$0xff] %vm258_vm0, %v292_v11  ;;  %v4579_v12 = vld [vmem:[#allocation2 + $0x19] sm:$0xff]  ;;  %511 = vrot.lane.b32.xlu2 %v292_v11, %s4502_s24  ;;  %v251_v45 = vld [vmem:[%s4556_s23 + $0xd0] sm:$0xff]  ;;  %v254_v51 = vld [vmem:[%s4556_s23 + $0xe8] sm:$0xff] }
  0x1b   : > { %507 = vrot.lane.b32.xlu1 %v4579_v12, %s4502_s24  ;;  %v4585_v14 = vld [vmem:[#allocation2 + $0x39] sm:$0xff]  ;;  %267 = vst.msk [vmem:[#allocation2 + $0x79] sm:$0xff] %vm258_vm0, %v233_v10  ;;  %v304_v0 = vld [vmem:[#allocation2 + $0x32] sm:$0x1]  ;;  %v305_v1 = vld [vmem:[#allocation2 + $0x4a] sm:$0x1] }
  0x1c   : > { %295 = vst.msk [vmem:[#allocation2 + $0x9] sm:$0xff] %vm258_vm0, %v4585_v14  ;;  %v4595_v17 = vld [vmem:[#allocation2 + $0x21] sm:$0xff]  ;;  %v341_v60 = vld [vmem:[#allocation2 + $0x3f] sm:$0x1] }
  0x1d   : > { %268 = vst.msk [vmem:[#allocation2 + $0x81] sm:$0xff] %vm258_vm0, %v234_v13  ;;  %v4623_v28 = vld [vmem:[#allocation2 + $0x69] sm:$0xff]  ;;  %v340_v59 = vld [vmem:[#allocation2 + $0x27] sm:$0x1]  ;;  %v4753_v9 = vld [vmem:[#allocation2 + $0x38] sm:$0xff] }
  0x1e   : > { %272 = vst.msk [vmem:[#allocation2 + $0xb1] sm:$0xff] %vm258_vm0, %v238_v15  ;;  %v4610_v24 = vld [vmem:[#allocation2 + $0x51] sm:$0xff]  ;;  %v343_v8 = vld [vmem:[#allocation2 + $0x6f] sm:$0x1]  ;;  %v303_v13 = vld [vmem:[#allocation2 + $0x1a] sm:$0x1] }
  0x1f   : > { %270 = vst.msk [vmem:[#allocation2 + $0x99] sm:$0xff] %vm258_vm0, %v236_v16  ;;  %v4608_v23 = vld [vmem:[#allocation2 + $0x61] sm:$0xff]  ;;  %v342_v58 = vld [vmem:[#allocation2 + $0x57] sm:$0x1] }
  0x20   : > { %271 = vst.msk [vmem:[#allocation2 + $0xa9] sm:$0xff] %vm258_vm0, %v237_v19  ;;  %v4641_v34 = vld [vmem:[#allocation2 + $0x91] sm:$0xff]  ;;  %v306_v19 = vld [vmem:[#allocation2 + $0x62] sm:$0x1] }
  0x21   : > { %v439_v18 = vld [vmem:[#allocation2 + $0x1] sm:$0xff]  ;;  %275 = vst.msk [vmem:[#allocation2 + $0xd9] sm:$0xff] %vm258_vm0, %v241_v20 }
  0x22   : > { %503 = vrot.lane.b32.xlu0 %v439_v18, %s4502_s24  ;;  %513 = vrot.lane.b32.xlu2 %v4585_v14, %s4502_s24  ;;  %273 = vst.msk [vmem:[#allocation2 + $0xc1] sm:$0xff] %vm258_vm0, %v239_v21  ;;  %v4627_v30 = vld [vmem:[#allocation2 + $0x79] sm:$0xff]  ;;  %v302_v11 = vld [vmem:[#allocation2 + $0x2] sm:$0x1] }
  0x23   : > { %509 = vrot.lane.b32.xlu1 %v4595_v17, %s4502_s24  ;;  %v440_v22 = vld [vmem:[#allocation2 + $0x9] sm:$0xff]  ;;  %274 = vst.msk [vmem:[#allocation2 + $0xc9] sm:$0xff] %vm258_vm0, %v240_v25  ;;  %v4761_v18 = vld [vmem:[#allocation2 + $0x1a] sm:$0xff]  ;;  %v4772_v21 = vld [vmem:[#allocation2 + $0x32] sm:$0xff] }
  0x24   : > { %278 = vst.msk [vmem:[#allocation2 + $0xf9] sm:$0xff] %vm258_vm0, %v244_v26  ;;  %v4625_v29 = vld [vmem:[#allocation2 + $0x81] sm:$0xff]  ;;  %v339_v50 = vld [vmem:[#allocation2 + $0xf] sm:$0x1] }
  0x25   : > { %276 = vst.msk [vmem:[#allocation2 + $0xe1] sm:$0xff] %vm258_vm0, %v242_v27  ;;  %v4659_v40 = vld [vmem:[#allocation2 + $0xb1] sm:$0xff]  ;;  %v632_v3 = vld [vmem:[#allocation2 + $0x2] sm:$0xff] }
  0x26   : > { %277 = vst.msk [vmem:[#allocation2 + $0xf1] sm:$0xff] %vm258_vm0, %v243_v31  ;;  %v4645_v36 = vld [vmem:[#allocation2 + $0x99] sm:$0xff]  ;;  %v344_v10 = vld [vmem:[#allocation2 + $0x87] sm:$0x1] }
  0x27   : > { %281 = vst.msk [vmem:[#allocation2 + $0x121] sm:$0xff] %vm258_vm0, %v247_v32  ;;  %v4643_v35 = vld [vmem:[#allocation2 + $0xa9] sm:$0xff]  ;;  %v345_v5 = vld [vmem:[#allocation2 + $0x9f] sm:$0x1] }
  0x28   : > { %279 = vst.msk [vmem:[#allocation2 + $0x109] sm:$0xff] %vm258_vm0, %v245_v33  ;;  %v4677_v46 = vld [vmem:[#allocation2 + $0xd9] sm:$0xff] }
  0x29   : > { %280 = vst.msk [vmem:[#allocation2 + $0x111] sm:$0xff] %vm258_vm0, %v246_v37  ;;  %v4663_v42 = vld [vmem:[#allocation2 + $0xc1] sm:$0xff] }
  0x2a   : > { %505 = vrot.lane.b32.xlu0 %v440_v22, %s4502_s24  ;;  %519 = vrot.lane.b32.xlu2 %v4608_v23, %s4502_s24  ;;  %284 = vst.msk [vmem:[#allocation2 + $0x141] sm:$0xff] %vm258_vm0, %v250_v38  ;;  %v4661_v41 = vld [vmem:[#allocation2 + $0xc9] sm:$0xff]  ;;  %v4789_v33 = vld [vmem:[#allocation2 + $0x80] sm:$0xff] }
  0x2b   : > { %517 = vrot.lane.b32.xlu1 %v4610_v24, %s4502_s24  ;;  %282 = vst.msk [vmem:[#allocation2 + $0x129] sm:$0xff] %vm258_vm0, %v248_v39  ;;  %v4694_v52 = vld [vmem:[#allocation2 + $0xf9] sm:$0xff]  ;;  %v4774_v22 = vld [vmem:[#allocation2 + $0x4a] sm:$0xff] }
  0x2c   : > { %283 = vst.msk [vmem:[#allocation2 + $0x139] sm:$0xff] %vm258_vm0, %v249_v43  ;;  %v4681_v48 = vld [vmem:[#allocation2 + $0xe1] sm:$0xff]  ;;  %v346_v43 = vld [vmem:[#allocation2 + $0xb7] sm:$0x1] }
  0x2d   : > { %287 = vst.msk [vmem:[#allocation2 + $0x169] sm:$0xff] %vm258_vm0, %v253_v44  ;;  %v4679_v47 = vld [vmem:[#allocation2 + $0xf1] sm:$0xff]  ;;  %v348_v31 = vld [vmem:[#allocation2 + $0xe7] sm:$0x1]  ;;  %v376_v37 = vld [vmem:[#allocation2 + $0x8] sm:$0xff] }
  0x2e   : > { %285 = vst.msk [vmem:[#allocation2 + $0x151] sm:$0xff] %vm258_vm0, %v251_v45  ;;  %v4706_v55 = vld [vmem:[#allocation2 + $0x121] sm:$0xff]  ;;  %v347_v44 = vld [vmem:[#allocation2 + $0xcf] sm:$0x1] }
  0x2f   : > { %286 = vst.msk [vmem:[#allocation2 + $0x159] sm:$0xff] %vm258_vm0, %v252_v49  ;;  %v4698_v54 = vld [vmem:[#allocation2 + $0x109] sm:$0xff]  ;;  %v4798_v39 = vld [vmem:[#allocation2 + $0x20] sm:$0xff] }
  0x30   : > { %357 = vst.msk [vmem:[#allocation2 + $0x11] sm:$0x1] %vm320_vm1, %v339_v50  ;;  %v4696_v53 = vld [vmem:[#allocation2 + $0x111] sm:$0xff]  ;;  %v4806_v50 = vld [vmem:[#allocation2 + $0x62] sm:$0xff] }
  0x31   : > { %288 = vst.msk [vmem:[#allocation2 + $0x171] sm:$0xff] %vm258_vm0, %v254_v51  ;;  %v4721_v61 = vld [vmem:[#allocation2 + $0x141] sm:$0xff]  ;;  %v309_v51 = vld [vmem:[#allocation2 + $0xaa] sm:$0x1] }
  0x32   : > { %521 = vrot.lane.b32.xlu0 %v4623_v28, %s4502_s24  ;;  %525 = vrot.lane.b32.xlu2 %v4625_v29, %s4502_s24  ;;  %v4710_v57 = vld [vmem:[#allocation2 + $0x129] sm:$0xff]  ;;  %360 = vst.msk [vmem:[#allocation2 + $0x59] sm:$0x1] %vm320_vm1, %v342_v58 }
  0x33   : > { %523 = vrot.lane.b32.xlu1 %v4627_v30, %s4502_s24  ;;  %v4708_v56 = vld [vmem:[#allocation2 + $0x139] sm:$0xff]  ;;  %358 = vst.msk [vmem:[#allocation2 + $0x29] sm:$0x1] %vm320_vm1, %v340_v59  ;;  %v4813_v58 = vld [vmem:[#allocation2 + $0x68] sm:$0xff]  ;;  %v4818_v59 = vld [vmem:[#allocation2 + $0x50] sm:$0xff] }
  0x34   : > { %359 = vst.msk [vmem:[#allocation2 + $0x41] sm:$0x1] %vm320_vm1, %v341_v60  ;;  %v4735_v2 = vld [vmem:[#allocation2 + $0x169] sm:$0xff] }
  0x35   : > { %v4725_v63 = vld [vmem:[#allocation2 + $0x151] sm:$0xff]  ;;  %323 = vst.msk [vmem:[#allocation2 + $0x30] sm:$0x1] %vm320_vm1, %v304_v0 }
  0x36   : > { %v4723_v62 = vld [vmem:[#allocation2 + $0x159] sm:$0xff]  ;;  %324 = vst.msk [vmem:[#allocation2 + $0x48] sm:$0x1] %vm320_vm1, %v305_v1  ;;  %v308_v0 = vld [vmem:[#allocation2 + $0x92] sm:$0x1] }
  0x37   : > { %363 = vst.msk [vmem:[#allocation2 + $0xa1] sm:$0x1] %vm320_vm1, %v345_v5  ;;  %v633_v15 = vld [vmem:[#allocation2 + $0xa] sm:$0xff]  ;;  %v307_v1 = vld [vmem:[#allocation2 + $0x7a] sm:$0x1]  ;;  %v4825_v5 = vld [vmem:[#allocation2 + $0x92] sm:$0xff] }
  0x38   : > { %v4737_v4 = vld [vmem:[#allocation2 + $0x171] sm:$0xff]  ;;  %412 = vst.msk [vmem:[#allocation3 + $0x28] sm:$0xff] %vm258_vm0, %v4753_v9 }
  0x39   : > { %361 = vst.msk [vmem:[#allocation2 + $0x71] sm:$0x1] %vm320_vm1, %v343_v8  ;;  %v639_v45 = vld [vmem:[#allocation2 + $0x52] sm:$0xff] }
  0x3a   : > { %527 = vrot.lane.b32.xlu0 %v4641_v34, %s4502_s24  ;;  %531 = vrot.lane.b32.xlu2 %v4643_v35, %s4502_s24  ;;  %v4758_v16 = vld [vmem:[#allocation2 + $0x22] sm:$0xff]  ;;  %362 = vst.msk [vmem:[#allocation2 + $0x89] sm:$0x1] %vm320_vm1, %v344_v10  ;;  %v351_v10 = vld [vmem:[#allocation2 + $0x12f] sm:$0x1] }
  0x3b   : > { %529 = vrot.lane.b32.xlu1 %v4645_v36, %s4502_s24  ;;  %6926 = vst [vmem:[#allocation4_spill] sm:$0xff] %v4758_v16  ;;  %v4776_v26 = vld [vmem:[#allocation2 + $0x3a] sm:$0xff] }
  0x3c   : > { %v4742_v6 = vld [vmem:[#allocation2 + $0x30] sm:$0xff]  ;;  %321 = vst.msk [vmem:[#allocation2] sm:$0x1] %vm320_vm1, %v302_v11 }
  0x3d   : > { %411 = vst.msk [vmem:[#allocation3 + $0x20] sm:$0xff] %vm258_vm0, %v4742_v6  ;;  %v4749_v7 = vld [vmem:[#allocation2 + $0x48] sm:$0xff] }
  0x3e   : > { %413 = vst.msk [vmem:[#allocation3 + $0x30] sm:$0xff] %vm258_vm0, %v4749_v7 }
  0x3f   : > { %322 = vst.msk [vmem:[#allocation2 + $0x18] sm:$0x1] %vm320_vm1, %v303_v13 }
  0x40   : > { %325 = vst.msk [vmem:[#allocation2 + $0x60] sm:$0x1] %vm320_vm1, %v306_v19  ;;  %v4802_v49 = vld [vmem:[#allocation2 + $0x6a] sm:$0xff] }
  0x41   : > { %6927 = vst [vmem:[#allocation5_spill] sm:$0xff] %v4772_v21  ;;  %v4828_v8 = vld [vmem:[#allocation2 + $0x82] sm:$0xff] }
  0x42   : > { %533 = vrot.lane.b32.xlu0 %v4659_v40, %s4502_s24  ;;  %537 = vrot.lane.b32.xlu2 %v4661_v41, %s4502_s24  ;;  %6928 = vst [vmem:[#allocation6_spill] sm:$0xff] %v4774_v22  ;;  %v4842_v19 = vld [vmem:[#allocation2 + $0xc8] sm:$0xff] }
  0x43   : > { %535 = vrot.lane.b32.xlu1 %v4663_v42, %s4502_s24  ;;  %v375_v25 = vld [vmem:[#allocation2] sm:$0xff]  ;;  %6929 = vst [vmem:[#allocation7_spill] sm:$0xff] %v4776_v26 }
  0x44   : > { %407 = vst.msk [vmem:[#allocation3] sm:$0xff] %vm258_vm0, %v375_v25  ;;  %v4845_v25 = vld [vmem:[#allocation2 + $0x9a] sm:$0xff] }
  0x45   : > { %366 = vst.msk [vmem:[#allocation2 + $0xe9] sm:$0x1] %vm320_vm1, %v348_v31 }
  0x46   : > { %v4779_v27 = vld [vmem:[#allocation2 + $0x18] sm:$0xff]  ;;  %418 = vst.msk [vmem:[#allocation3 + $0x58] sm:$0xff] %vm258_vm0, %v4789_v33 }
  0x47   : > { %409 = vst.msk [vmem:[#allocation3 + $0x10] sm:$0xff] %vm258_vm0, %v4779_v27  ;;  %v4787_v32 = vld [vmem:[#allocation2 + $0x60] sm:$0xff] }
  0x48   : > { %415 = vst.msk [vmem:[#allocation3 + $0x40] sm:$0xff] %vm258_vm0, %v4787_v32 }
  0x49   : > { %408 = vst.msk [vmem:[#allocation3 + $0x8] sm:$0xff] %vm258_vm0, %v376_v37 }
  0x4a   : > { %539 = vrot.lane.b32.xlu0 %v4677_v46, %s4502_s24  ;;  %543 = vrot.lane.b32.xlu2 %v4679_v47, %s4502_s24  ;;  %6930 = vst [vmem:[#allocation8_spill] sm:$0xff] %v4802_v49 }
  0x4b   : > { %541 = vrot.lane.b32.xlu1 %v4681_v48, %s4502_s24  ;;  %410 = vst.msk [vmem:[#allocation3 + $0x18] sm:$0xff] %vm258_vm0, %v4798_v39 }
  0x4c   : > { %6931 = vst [vmem:[#allocation9_spill] sm:$0xff] %v4806_v50 }
  0x4d   : > { %364 = vst.msk [vmem:[#allocation2 + $0xb9] sm:$0x1] %vm320_vm1, %v346_v43  ;;  %v349_v43 = vld [vmem:[#allocation2 + $0xff] sm:$0x1] }
  0x4e   : > { %365 = vst.msk [vmem:[#allocation2 + $0xd1] sm:$0x1] %vm320_vm1, %v347_v44  ;;  %v4856_v44 = vld [vmem:[#allocation2 + $0xaa] sm:$0xff] }
  0x4f   : > { %328 = vst.msk [vmem:[#allocation2 + $0xa8] sm:$0x1] %vm320_vm1, %v309_v51  ;;  %v312_v51 = vld [vmem:[#allocation2 + $0xf2] sm:$0x1] }
  0x50   : > { %416 = vst.msk [vmem:[#allocation3 + $0x48] sm:$0xff] %vm258_vm0, %v4813_v58 }
  0x51   : > { %414 = vst.msk [vmem:[#allocation3 + $0x38] sm:$0xff] %vm258_vm0, %v4818_v59 }
  0x52   : > { %545 = vrot.lane.b32.xlu0 %v4694_v52, %s4502_s24  ;;  %549 = vrot.lane.b32.xlu2 %v4696_v53, %s4502_s24  ;;  %6932 = vst [vmem:[#allocation10_spill] sm:$0xff] %v4825_v5 }
  0x53   : > { %547 = vrot.lane.b32.xlu1 %v4698_v54, %s4502_s24  ;;  %327 = vst.msk [vmem:[#allocation2 + $0x90] sm:$0x1] %vm320_vm1, %v308_v0 }
  0x54   : > { %6933 = vst [vmem:[#allocation11_spill] sm:$0xff] %v4828_v8  ;;  %v4850_v37 = vld [vmem:[#allocation2 + $0xb2] sm:$0xff] }
  0x55   : > { %326 = vst.msk [vmem:[#allocation2 + $0x78] sm:$0x1] %vm320_vm1, %v307_v1 }
  0x56   : > { %v4834_v11 = vld [vmem:[#allocation2 + $0xa8] sm:$0xff]  ;;  %369 = vst.msk [vmem:[#allocation2 + $0x131] sm:$0x1] %vm320_vm1, %v351_v10  ;;  %v4875_v10 = vld [vmem:[#allocation2 + $0x98] sm:$0xff] }
  0x57   : > { %421 = vst.msk [vmem:[#allocation3 + $0x70] sm:$0xff] %vm258_vm0, %v4834_v11 }
  0x58   : > { %6934 = vst [vmem:[#allocation12_spill] sm:$0xff] %v4845_v25 }
  0x59   : > { %6935 = vst [vmem:[#allocation13_spill] sm:$0xff] %v4850_v37 }
  0x5a   : > { %551 = vrot.lane.b32.xlu0 %v4706_v55, %s4502_s24  ;;  %555 = vrot.lane.b32.xlu2 %v4708_v56, %s4502_s24  ;;  %v4848_v31 = vld [vmem:[#allocation2 + $0x90] sm:$0xff]  ;;  %424 = vst.msk [vmem:[#allocation3 + $0x88] sm:$0xff] %vm258_vm0, %v4842_v19 }
  0x5b   : > { %553 = vrot.lane.b32.xlu1 %v4710_v57, %s4502_s24  ;;  %6936 = vst [vmem:[#allocation14_spill] sm:$0xff] %v4856_v44 }
  0x5c   : > { %419 = vst.msk [vmem:[#allocation3 + $0x60] sm:$0xff] %vm258_vm0, %v4848_v31 }
  0x5d   : > { %367 = vst.msk [vmem:[#allocation2 + $0x101] sm:$0x1] %vm320_vm1, %v349_v43  ;;  %v4882_v43 = vld [vmem:[#allocation2 + $0xca] sm:$0xff] }
  0x5e   : > { %331 = vst.msk [vmem:[#allocation2 + $0xf0] sm:$0x1] %vm320_vm1, %v312_v51 }
  0x5f   : > { %6939 = vst [vmem:[#allocation17_spill] sm:$0xff] %v4882_v43 }
  0x60   : > { %420 = vst.msk [vmem:[#allocation3 + $0x68] sm:$0xff] %vm258_vm0, %v4875_v10 }
  0x62   : > { %557 = vrot.lane.b32.xlu0 %v4721_v61, %s4502_s24  ;;  %561 = vrot.lane.b32.xlu2 %v4723_v62, %s4502_s24 }
  0x63   : > { %559 = vrot.lane.b32.xlu1 %v4725_v63, %s4502_s24 }
  0x65   : > { %v4897_v51 = vld [vmem:[#allocation2 + $0xf0] sm:$0xff] }
  0x66   : > { %427 = vst.msk [vmem:[#allocation3 + $0xa0] sm:$0xff] %vm258_vm0, %v4897_v51 }
  0x6a   : > { %563 = vrot.lane.b32.xlu0 %v4735_v2, %s4502_s24  ;;  %696 = vrot.lane.b32.xlu2 %v632_v3, %s4503_s25  ;;  %v642_v3 = vld [vmem:[#allocation2 + $0x7a] sm:$0xff] }
  0x6b   : > { %565 = vrot.lane.b32.xlu1 %v4737_v4, %s4502_s24 }
  0x72   : > { %698 = vrot.lane.b32.xlu0 %v633_v15, %s4503_s25  ;;  %702 = vrot.lane.b32.xlu2 %v4758_v16, %s4503_s25 }
  0x73   : > { %700 = vrot.lane.b32.xlu1 %v4761_v18, %s4503_s25 }
  0x74   : > { %v512_v20 = vpop.permute.xlu2 %511 }
  0x75   : > { %604 = vst.msk [vmem:[#allocation3 + $0x20] sm:$0xff] %vm599_vm2, %v512_v20 }
  0x7a   : > { %704 = vrot.lane.b32.xlu0 %v4772_v21, %s4503_s25  ;;  %708 = vrot.lane.b32.xlu2 %v4774_v22, %s4503_s25 }
  0x7b   : > { %706 = vrot.lane.b32.xlu1 %v4776_v26, %s4503_s25  ;;  %v316_v26 = vld [vmem:[#allocation2 + $0x152] sm:$0x1] }
  0x7c   : > { %v514_v38 = vpop.permute.xlu2 %513  ;;  %335 = vst.msk [vmem:[#allocation2 + $0x150] sm:$0x1] %vm320_vm1, %v316_v26 }
  0x7d   : > { %605 = vst.msk [vmem:[#allocation3 + $0x28] sm:$0xff] %vm599_vm2, %v514_v38  ;;  %v4854_v38 = vld [vmem:[#allocation2 + $0x78] sm:$0xff] }
  0x7e   : > { %417 = vst.msk [vmem:[#allocation3 + $0x50] sm:$0xff] %vm258_vm0, %v4854_v38 }
  0x82   : > { %710 = vrot.lane.b32.xlu0 %v639_v45, %s4503_s25  ;;  %714 = vrot.lane.b32.xlu2 %v4802_v49, %s4503_s25  ;;  %v350_v45 = vld [vmem:[#allocation2 + $0x117] sm:$0x1]  ;;  %v4965_v49 = vld [vmem:[#allocation2 + $0x13a] sm:$0xff] }
  0x83   : > { %712 = vrot.lane.b32.xlu1 %v4806_v50, %s4503_s25  ;;  %368 = vst.msk [vmem:[#allocation2 + $0x119] sm:$0x1] %vm320_vm1, %v350_v45  ;;  %v4892_v45 = vld [vmem:[#allocation2 + $0x110] sm:$0xff] }
  0x84   : > { %v520_v60 = vpop.permute.xlu2 %519  ;;  %430 = vst.msk [vmem:[#allocation3 + $0xb8] sm:$0xff] %vm258_vm0, %v4892_v45  ;;  %v5025_v26 = vld [vmem:[#allocation2 + $0x150] sm:$0xff] }
  0x85   : > { %608 = vst.msk [vmem:[#allocation3 + $0x40] sm:$0xff] %vm599_vm2, %v520_v60 }
  0x86   : > { %6948 = vst [vmem:[#allocation26_spill] sm:$0xff] %v4965_v49 }
  0x87   : > { %435 = vst.msk [vmem:[#allocation3 + $0xe0] sm:$0xff] %vm258_vm0, %v5025_v26 }
  0x8a   : > { %716 = vrot.lane.b32.xlu0 %v642_v3, %s4503_s25  ;;  %720 = vrot.lane.b32.xlu2 %v4825_v5, %s4503_s25  ;;  %v4872_v3 = vld [vmem:[#allocation2 + $0xb0] sm:$0xff] }
  0x8b   : > { %v516_v13 = vpop.permute.xlu0 %515  ;;  %718 = vrot.lane.b32.xlu1 %v4828_v8, %s4503_s25  ;;  %422 = vst.msk [vmem:[#allocation3 + $0x78] sm:$0xff] %vm258_vm0, %v4872_v3 }
  0x8c   : > { %606 = vst.msk [vmem:[#allocation3 + $0x30] sm:$0xff] %vm599_vm2, %v516_v13  ;;  %v526_v15 = vpop.permute.xlu2 %525  ;;  %v4877_v13 = vld [vmem:[#allocation2 + $0xc2] sm:$0xff] }
  0x8d   : > { %v508_v20 = vpop.permute.xlu1 %507  ;;  %611 = vst.msk [vmem:[#allocation3 + $0x58] sm:$0xff] %vm599_vm2, %v526_v15  ;;  %v4880_v15 = vld [vmem:[#allocation2 + $0xda] sm:$0xff] }
  0x8e   : > { %602 = vst.msk [vmem:[#allocation3 + $0x10] sm:$0xff] %vm599_vm2, %v508_v20  ;;  %v311_v20 = vld [vmem:[#allocation2 + $0xda] sm:$0x1] }
  0x8f   : > { %6937 = vst [vmem:[#allocation15_spill] sm:$0xff] %v4877_v13 }
  0x90   : > { %6938 = vst [vmem:[#allocation16_spill] sm:$0xff] %v4880_v15 }
  0x91   : > { %330 = vst.msk [vmem:[#allocation2 + $0xd8] sm:$0x1] %vm320_vm1, %v311_v20  ;;  %v354_v20 = vld [vmem:[#allocation2 + $0x177] sm:$0x1] }
  0x92   : > { %722 = vrot.lane.b32.xlu0 %v4845_v25, %s4503_s25  ;;  %726 = vrot.lane.b32.xlu2 %v4850_v37, %s4503_s25  ;;  %v4910_v37 = vld [vmem:[#allocation2 + $0xf2] sm:$0xff]  ;;  %v352_v25 = vld [vmem:[#allocation2 + $0x147] sm:$0x1]  ;;  %372 = vst.msk [vmem:[#allocation2 + $0x179] sm:$0x1] %vm320_vm1, %v354_v20  ;;  %v4927_v20 = vld [vmem:[#allocation2 + $0x10a] sm:$0xff] }
  0x93   : > { %724 = vrot.lane.b32.xlu1 %v4856_v44, %s4503_s25  ;;  %6942 = vst [vmem:[#allocation20_spill] sm:$0xff] %v4910_v37 }
  0x94   : > { %v504_v60 = vpop.permute.xlu0 %503  ;;  %v532_v0 = vpop.permute.xlu2 %531  ;;  %370 = vst.msk [vmem:[#allocation2 + $0x149] sm:$0x1] %vm320_vm1, %v352_v25  ;;  %v4937_v25 = vld [vmem:[#allocation2 + $0x112] sm:$0xff] }
  0x95   : > { %600 = vst.msk [vmem:[#allocation3] sm:$0xff] %vm599_vm2, %v504_v60  ;;  %v510_v1 = vpop.permute.xlu1 %509 }
  0x96   : > { %603 = vst.msk [vmem:[#allocation3 + $0x18] sm:$0xff] %vm599_vm2, %v510_v1 }
  0x97   : > { %614 = vst.msk [vmem:[#allocation3 + $0x70] sm:$0xff] %vm599_vm2, %v532_v0 }
  0x98   : > { %v4913_v44 = vld [vmem:[#allocation2 + $0xd8] sm:$0xff]  ;;  %6943 = vst [vmem:[#allocation21_spill] sm:$0xff] %v4927_v20 }
  0x99   : > { %425 = vst.msk [vmem:[#allocation3 + $0x90] sm:$0xff] %vm258_vm0, %v4913_v44 }
  0x9a   : > { %728 = vrot.lane.b32.xlu0 %v4877_v13, %s4503_s25  ;;  %732 = vrot.lane.b32.xlu2 %v4880_v15, %s4503_s25  ;;  %v310_v15 = vld [vmem:[#allocation2 + $0xc2] sm:$0x1]  ;;  %6945 = vst [vmem:[#allocation23_spill] sm:$0xff] %v4937_v25 }
  0x9b   : > { %730 = vrot.lane.b32.xlu1 %v4882_v43, %s4503_s25  ;;  %v4905_v13 = vld [vmem:[#allocation2 + $0xe2] sm:$0xff]  ;;  %v4908_v43 = vld [vmem:[#allocation2 + $0xfa] sm:$0xff]  ;;  %329 = vst.msk [vmem:[#allocation2 + $0xc0] sm:$0x1] %vm320_vm1, %v310_v15 }
  0x9c   : > { %v506_v60 = vpop.permute.xlu0 %505  ;;  %v538_v0 = vpop.permute.xlu2 %537  ;;  %6940 = vst [vmem:[#allocation18_spill] sm:$0xff] %v4905_v13  ;;  %v4963_v8 = vld [vmem:[#allocation2 + $0x142] sm:$0xff] }
  0x9d   : > { %601 = vst.msk [vmem:[#allocation3 + $0x8] sm:$0xff] %vm599_vm2, %v506_v60  ;;  %v518_v1 = vpop.permute.xlu1 %517  ;;  %v353_v60 = vld [vmem:[#allocation2 + $0x15f] sm:$0x1] }
  0x9e   : > { %607 = vst.msk [vmem:[#allocation3 + $0x38] sm:$0xff] %vm599_vm2, %v518_v1 }
  0x9f   : > { %617 = vst.msk [vmem:[#allocation3 + $0x88] sm:$0xff] %vm599_vm2, %v538_v0 }
  0xa0   : > { %6941 = vst [vmem:[#allocation19_spill] sm:$0xff] %v4908_v43 }
  0xa1   : > { %371 = vst.msk [vmem:[#allocation2 + $0x161] sm:$0x1] %vm320_vm1, %v353_v60  ;;  %v4941_v60 = vld [vmem:[#allocation2 + $0xe0] sm:$0xff] }
  0xa2   : > { %734 = vrot.lane.b32.xlu0 %v4905_v13, %s4503_s25  ;;  %738 = vrot.lane.b32.xlu2 %v4908_v43, %s4503_s25  ;;  %v315_v43 = vld [vmem:[#allocation2 + $0x13a] sm:$0x1]  ;;  %v4931_v13 = vld [vmem:[#allocation2 + $0x122] sm:$0xff]  ;;  %426 = vst.msk [vmem:[#allocation3 + $0x98] sm:$0xff] %vm258_vm0, %v4941_v60 }
  0xa3   : > { %736 = vrot.lane.b32.xlu1 %v4910_v37, %s4503_s25  ;;  %6944 = vst [vmem:[#allocation22_spill] sm:$0xff] %v4931_v13  ;;  %v4933_v5 = vld [vmem:[#allocation2 + $0xc0] sm:$0xff]  ;;  %v4935_v37 = vld [vmem:[#allocation2 + $0xf8] sm:$0xff] }
  0xa4   : > { %v522_v15 = vpop.permute.xlu0 %521  ;;  %v544_v0 = vpop.permute.xlu2 %543  ;;  %423 = vst.msk [vmem:[#allocation3 + $0x80] sm:$0xff] %vm258_vm0, %v4933_v5 }
  0xa5   : > { %609 = vst.msk [vmem:[#allocation3 + $0x48] sm:$0xff] %vm599_vm2, %v522_v15  ;;  %v524_v1 = vpop.permute.xlu1 %523  ;;  %v4950_v15 = vld [vmem:[#allocation2 + $0x158] sm:$0xff] }
  0xa6   : > { %610 = vst.msk [vmem:[#allocation3 + $0x50] sm:$0xff] %vm599_vm2, %v524_v1 }
  0xa7   : > { %620 = vst.msk [vmem:[#allocation3 + $0xa0] sm:$0xff] %vm599_vm2, %v544_v0 }
  0xa8   : > { %334 = vst.msk [vmem:[#allocation2 + $0x138] sm:$0x1] %vm320_vm1, %v315_v43  ;;  %v4996_v21 = vld [vmem:[#allocation2 + $0x15a] sm:$0xff] }
  0xa9   : > { %428 = vst.msk [vmem:[#allocation3 + $0xa8] sm:$0xff] %vm258_vm0, %v4935_v37 }
  0xaa   : > { %740 = vrot.lane.b32.xlu0 %v4927_v20, %s4503_s25  ;;  %744 = vrot.lane.b32.xlu2 %v4931_v13, %s4503_s25  ;;  %436 = vst.msk [vmem:[#allocation3 + $0xe8] sm:$0xff] %vm258_vm0, %v4950_v15  ;;  %v314_v13 = vld [vmem:[#allocation2 + $0x122] sm:$0x1]  ;;  %v4960_v20 = vld [vmem:[#allocation2 + $0x12a] sm:$0xff] }
  0xab   : > { %742 = vrot.lane.b32.xlu1 %v4937_v25, %s4503_s25  ;;  %6946 = vst [vmem:[#allocation24_spill] sm:$0xff] %v4960_v20  ;;  %v313_v25 = vld [vmem:[#allocation2 + $0x10a] sm:$0x1] }
  0xac   : > { %v528_v0 = vpop.permute.xlu0 %527  ;;  %v550_v1 = vpop.permute.xlu2 %549  ;;  %6947 = vst [vmem:[#allocation25_spill] sm:$0xff] %v4963_v8 }
  0xad   : > { %612 = vst.msk [vmem:[#allocation3 + $0x60] sm:$0xff] %vm599_vm2, %v528_v0  ;;  %v530_v43 = vpop.permute.xlu1 %529  ;;  %v4977_v0 = vld [vmem:[#allocation2 + $0x140] sm:$0xff] }
  0xae   : > { %613 = vst.msk [vmem:[#allocation3 + $0x68] sm:$0xff] %vm599_vm2, %v530_v43 }
  0xaf   : > { %623 = vst.msk [vmem:[#allocation3 + $0xb8] sm:$0xff] %vm599_vm2, %v550_v1  ;;  %v4967_v50 = vld [vmem:[#allocation2 + $0x138] sm:$0xff] }
  0xb0   : > { %333 = vst.msk [vmem:[#allocation2 + $0x120] sm:$0x1] %vm320_vm1, %v314_v13  ;;  %v4983_v13 = vld [vmem:[#allocation2 + $0x128] sm:$0xff] }
  0xb1   : > { %433 = vst.msk [vmem:[#allocation3 + $0xd0] sm:$0xff] %vm258_vm0, %v4967_v50 }
  0xb2   : > { %746 = vrot.lane.b32.xlu0 %v4960_v20, %s4503_s25  ;;  %750 = vrot.lane.b32.xlu2 %v4963_v8, %s4503_s25  ;;  %332 = vst.msk [vmem:[#allocation2 + $0x108] sm:$0x1] %vm320_vm1, %v313_v25  ;;  %v317_v25 = vld [vmem:[#allocation2 + $0x16a] sm:$0x1]  ;;  %v4989_v20 = vld [vmem:[#allocation2 + $0x152] sm:$0xff] }
  0xb3   : > { %748 = vrot.lane.b32.xlu1 %v4965_v49, %s4503_s25  ;;  %434 = vst.msk [vmem:[#allocation3 + $0xd8] sm:$0xff] %vm258_vm0, %v4977_v0  ;;  %v4992_v49 = vld [vmem:[#allocation2 + $0x16a] sm:$0xff] }
  0xb4   : > { %v534_v1 = vpop.permute.xlu0 %533  ;;  %v556_v43 = vpop.permute.xlu2 %555  ;;  %432 = vst.msk [vmem:[#allocation3 + $0xc8] sm:$0xff] %vm258_vm0, %v4983_v13 }
  0xb5   : > { %615 = vst.msk [vmem:[#allocation3 + $0x78] sm:$0xff] %vm599_vm2, %v534_v1  ;;  %v536_v8 = vpop.permute.xlu1 %535 }
  0xb6   : > { %616 = vst.msk [vmem:[#allocation3 + $0x80] sm:$0xff] %vm599_vm2, %v536_v8 }
  0xb7   : > { %6949 = vst [vmem:[#allocation27_spill] sm:$0xff] %v4989_v20  ;;  %v4994_v22 = vld [vmem:[#allocation2 + $0x120] sm:$0xff] }
  0xb8   : > { %626 = vst.msk [vmem:[#allocation3 + $0xd0] sm:$0xff] %vm599_vm2, %v556_v43 }
  0xb9   : > { %6950 = vst [vmem:[#allocation28_spill] sm:$0xff] %v4992_v49  ;;  %v5000_v16 = vld [vmem:[#allocation2 + $0x108] sm:$0xff] }
  0xba   : > { %431 = vst.msk [vmem:[#allocation3 + $0xc0] sm:$0xff] %vm258_vm0, %v4994_v22  ;;  %752 = vrot.lane.b32.xlu0 %v4989_v20, %s4503_s25  ;;  %756 = vrot.lane.b32.xlu2 %v4992_v49, %s4503_s25 }
  0xbb   : > { %336 = vst.msk [vmem:[#allocation2 + $0x168] sm:$0x1] %vm320_vm1, %v317_v25  ;;  %754 = vrot.lane.b32.xlu1 %v4996_v21, %s4503_s25  ;;  %v5014_v25 = vld [vmem:[#allocation2 + $0x172] sm:$0xff] }
  0xbc   : > { %429 = vst.msk [vmem:[#allocation3 + $0xb0] sm:$0xff] %vm258_vm0, %v5000_v16  ;;  %v540_v8 = vpop.permute.xlu0 %539  ;;  %v562_v1 = vpop.permute.xlu2 %561 }
  0xbd   : > { %618 = vst.msk [vmem:[#allocation3 + $0x90] sm:$0xff] %vm599_vm2, %v540_v8  ;;  %v542_v43 = vpop.permute.xlu1 %541  ;;  %v5031_v8 = vld [vmem:[#allocation2 + $0x170] sm:$0xff] }
  0xbe   : > { %619 = vst.msk [vmem:[#allocation3 + $0x98] sm:$0xff] %vm599_vm2, %v542_v43 }
  0xbf   : > { %6951 = vst [vmem:[#allocation29_spill] sm:$0xff] %v5014_v25 }
  0xc0   : > { %629 = vst.msk [vmem:[#allocation3 + $0xe8] sm:$0xff] %vm599_vm2, %v562_v1 }
  0xc1   : > { %438 = vst.msk [vmem:[#allocation3 + $0xf8] sm:$0xff] %vm258_vm0, %v5031_v8 }
  0xc2   : > { %v5017_v49 = vld [vmem:[#allocation2 + $0x168] sm:$0xff]  ;;  %758 = vrot.lane.b32.xlu0 %v5014_v25, %s4503_s25  ;;  %891 = vrot.lane.b32.xlu2 %v4798_v39, %s4504_s26 }
  0xc3   : > { %437 = vst.msk [vmem:[#allocation3 + $0xf0] sm:$0xff] %vm258_vm0, %v5017_v49  ;;  %889 = vrot.lane.b32.xlu1 %v4779_v27, %s4504_s26 }
  0xc4   : > { %v546_v1 = vpop.permute.xlu0 %545  ;;  %v697_v43 = vpop.permute.xlu2 %696 }
  0xc5   : > { %621 = vst.msk [vmem:[#allocation3 + $0xa8] sm:$0xff] %vm599_vm2, %v546_v1  ;;  %v548_v25 = vpop.permute.xlu1 %547 }
  0xc6   : > { %622 = vst.msk [vmem:[#allocation3 + $0xb0] sm:$0xff] %vm599_vm2, %v548_v25 }
  0xc7   : > { %793 = vst.msk [vmem:[#allocation3] sm:$0xff] %vm792_vm3, %v697_v43 }
  0xca   : > { %893 = vrot.lane.b32.xlu0 %v4742_v6, %s4504_s26  ;;  %897 = vrot.lane.b32.xlu2 %v4749_v7, %s4504_s26 }
  0xcb   : > { %895 = vrot.lane.b32.xlu1 %v4753_v9, %s4504_s26 }
  0xcc   : > { %v552_v27 = vpop.permute.xlu0 %551  ;;  %v703_v39 = vpop.permute.xlu2 %702 }
  0xcd   : > { %624 = vst.msk [vmem:[#allocation3 + $0xc0] sm:$0xff] %vm599_vm2, %v552_v27  ;;  %v554_v20 = vpop.permute.xlu1 %553  ;;  %v256_v27 = vld [vmem:[%s4556_s23 + $0xf8] sm:$0xff] }
  0xce   : > { %625 = vst.msk [vmem:[#allocation3 + $0xc8] sm:$0xff] %vm599_vm2, %v554_v20  ;;  %v255_v20 = vld [vmem:[%s4556_s23 + $0xf0] sm:$0xff] }
  0xcf   : > { %796 = vst.msk [vmem:[#allocation3 + $0x18] sm:$0xff] %vm792_vm3, %v703_v39 }
  0xd0   : > { %289 = vst.msk [vmem:[#allocation2 + $0x181] sm:$0xff] %vm258_vm0, %v255_v20  ;;  %v5137_v20 = vld [vmem:[#allocation2 + $0x31] sm:$0xff] }
  0xd1   : > { %290 = vst.msk [vmem:[#allocation2 + $0x189] sm:$0xff] %vm258_vm0, %v256_v27 }
  0xd2   : > { %899 = vrot.lane.b32.xlu0 %v4818_v59, %s4504_s26  ;;  %903 = vrot.lane.b32.xlu2 %v4813_v58, %s4504_s26 }
  0xd3   : > { %901 = vrot.lane.b32.xlu1 %v4787_v32, %s4504_s26 }
  0xd4   : > { %v558_v6 = vpop.permute.xlu0 %557  ;;  %v709_v7 = vpop.permute.xlu2 %708 }
  0xd5   : > { %627 = vst.msk [vmem:[#allocation3 + $0xd8] sm:$0xff] %vm599_vm2, %v558_v6  ;;  %v560_v9 = vpop.permute.xlu1 %559 }
  0xd6   : > { %628 = vst.msk [vmem:[#allocation3 + $0xe0] sm:$0xff] %vm599_vm2, %v560_v9 }
  0xd7   : > { %799 = vst.msk [vmem:[#allocation3 + $0x30] sm:$0xff] %vm792_vm3, %v709_v7  ;;  %v318_v25 = vld [vmem:[#allocation2 + $0x182] sm:$0x1] }
  0xd8   : > { %337 = vst.msk [vmem:[#allocation2 + $0x180] sm:$0x1] %vm320_vm1, %v318_v25  ;;  %v5148_v25 = vld [vmem:[#allocation2 + $0x49] sm:$0xff] }
  0xd9   : > { %v5233_v27 = vld [vmem:[#allocation2 + $0x189] sm:$0xff] }
  0xda   : > { %905 = vrot.lane.b32.xlu0 %v4854_v38, %s4504_s26  ;;  %909 = vrot.lane.b32.xlu2 %v4848_v31, %s4504_s26 }
  0xdb   : > { %907 = vrot.lane.b32.xlu1 %v4789_v33, %s4504_s26 }
  0xdc   : > { %v564_v32 = vpop.permute.xlu0 %563  ;;  %v715_v58 = vpop.permute.xlu2 %714 }
  0xdd   : > { %630 = vst.msk [vmem:[#allocation3 + $0xf0] sm:$0xff] %vm599_vm2, %v564_v32  ;;  %v566_v59 = vpop.permute.xlu1 %565 }
  0xde   : > { %631 = vst.msk [vmem:[#allocation3 + $0xf8] sm:$0xff] %vm599_vm2, %v566_v59  ;;  %v5124_v59 = vld [vmem:[#allocation2 + $0x188] sm:$0xff] }
  0xdf   : > { %802 = vst.msk [vmem:[#allocation3 + $0x48] sm:$0xff] %vm792_vm3, %v715_v58 }
  0xe2   : > { %911 = vrot.lane.b32.xlu0 %v4875_v10, %s4504_s26  ;;  %915 = vrot.lane.b32.xlu2 %v4872_v3, %s4504_s26 }
  0xe3   : > { %913 = vrot.lane.b32.xlu1 %v4834_v11, %s4504_s26 }
  0xe4   : > { %v699_v33 = vpop.permute.xlu0 %698  ;;  %v721_v31 = vpop.permute.xlu2 %720 }
  0xe5   : > { %794 = vst.msk [vmem:[#allocation3 + $0x8] sm:$0xff] %vm792_vm3, %v699_v33  ;;  %v701_v38 = vpop.permute.xlu1 %700  ;;  %v5126_v33 = vld [vmem:[#allocation2 + $0x180] sm:$0xff] }
  0xe6   : > { %795 = vst.msk [vmem:[#allocation3 + $0x10] sm:$0xff] %vm792_vm3, %v701_v38 }
  0xe7   : > { %805 = vst.msk [vmem:[#allocation3 + $0x60] sm:$0xff] %vm792_vm3, %v721_v31 }
  0xea   : > { %917 = vrot.lane.b32.xlu0 %v4933_v5, %s4504_s26  ;;  %921 = vrot.lane.b32.xlu2 %v4913_v44, %s4504_s26 }
  0xeb   : > { %919 = vrot.lane.b32.xlu1 %v4842_v19, %s4504_s26 }
  0xec   : > { %v705_v11 = vpop.permute.xlu0 %704  ;;  %v727_v3 = vpop.permute.xlu2 %726 }
  0xed   : > { %797 = vst.msk [vmem:[#allocation3 + $0x20] sm:$0xff] %vm792_vm3, %v705_v11  ;;  %v707_v10 = vpop.permute.xlu1 %706 }
  0xee   : > { %798 = vst.msk [vmem:[#allocation3 + $0x28] sm:$0xff] %vm792_vm3, %v707_v10 }
  0xef   : > { %808 = vst.msk [vmem:[#allocation3 + $0x78] sm:$0xff] %vm792_vm3, %v727_v3 }
  0xf2   : > { %923 = vrot.lane.b32.xlu0 %v4941_v60, %s4504_s26  ;;  %927 = vrot.lane.b32.xlu2 %v4935_v37, %s4504_s26 }
  0xf3   : > { %925 = vrot.lane.b32.xlu1 %v4897_v51, %s4504_s26 }
  0xf4   : > { %v711_v19 = vpop.permute.xlu0 %710  ;;  %v733_v1 = vpop.permute.xlu2 %732 }
  0xf5   : > { %800 = vst.msk [vmem:[#allocation3 + $0x38] sm:$0xff] %vm792_vm3, %v711_v19  ;;  %v713_v43 = vpop.permute.xlu1 %712 }
  0xf6   : > { %801 = vst.msk [vmem:[#allocation3 + $0x40] sm:$0xff] %vm792_vm3, %v713_v43  ;;  %v5230_v43 = vld [vmem:[#allocation2 + $0x181] sm:$0xff] }
  0xf7   : > { %811 = vst.msk [vmem:[#allocation3 + $0x90] sm:$0xff] %vm792_vm3, %v733_v1 }
  0xfa   : > { %929 = vrot.lane.b32.xlu0 %v5000_v16, %s4504_s26  ;;  %933 = vrot.lane.b32.xlu2 %v4994_v22, %s4504_s26 }
  0xfb   : > { %931 = vrot.lane.b32.xlu1 %v4892_v45, %s4504_s26 }
  0xfc   : > { %v717_v51 = vpop.permute.xlu0 %716  ;;  %v739_v39 = vpop.permute.xlu2 %738 }
  0xfd   : > { %803 = vst.msk [vmem:[#allocation3 + $0x50] sm:$0xff] %vm792_vm3, %v717_v51  ;;  %v719_v6 = vpop.permute.xlu1 %718  ;;  %v6952_v51 = vld [vmem:[#allocation4_spill] sm:$0xff] }
  0xfe   : > { %804 = vst.msk [vmem:[#allocation3 + $0x58] sm:$0xff] %vm792_vm3, %v719_v6 }
  0xff   : > { %814 = vst.msk [vmem:[#allocation3 + $0xa8] sm:$0xff] %vm792_vm3, %v739_v39  ;;  %v6953_v39 = vld [vmem:[#allocation7_spill] sm:$0xff] }
 0x102   : > { %935 = vrot.lane.b32.xlu0 %v4983_v13, %s4504_s26  ;;  %939 = vrot.lane.b32.xlu2 %v4977_v0, %s4504_s26 }
 0x103   : > { %937 = vrot.lane.b32.xlu1 %v4967_v50, %s4504_s26 }
 0x104   : > { %v723_v7 = vpop.permute.xlu0 %722  ;;  %v745_v45 = vpop.permute.xlu2 %744 }
 0x105   : > { %806 = vst.msk [vmem:[#allocation3 + $0x68] sm:$0xff] %vm792_vm3, %v723_v7  ;;  %v725_v9 = vpop.permute.xlu1 %724 }
 0x106   : > { %807 = vst.msk [vmem:[#allocation3 + $0x70] sm:$0xff] %vm792_vm3, %v725_v9  ;;  %v5253_v9 = vld [vmem:[#allocation2 + $0x52] sm:$0xff] }
 0x107   : > { %817 = vst.msk [vmem:[#allocation3 + $0xc0] sm:$0xff] %vm792_vm3, %v745_v45 }
 0x10a   : > { %941 = vrot.lane.b32.xlu0 %v5025_v26, %s4504_s26  ;;  %945 = vrot.lane.b32.xlu2 %v5017_v49, %s4504_s26 }
 0x10b   : > { %943 = vrot.lane.b32.xlu1 %v4950_v15, %s4504_s26 }
 0x10c   : > { %v729_v32 = vpop.permute.xlu0 %728  ;;  %v751_v50 = vpop.permute.xlu2 %750 }
 0x10d   : > { %809 = vst.msk [vmem:[#allocation3 + $0x80] sm:$0xff] %vm792_vm3, %v729_v32  ;;  %v731_v58 = vpop.permute.xlu1 %730  ;;  %v6955_v32 = vld [vmem:[#allocation6_spill] sm:$0xff] }
 0x10e   : > { %810 = vst.msk [vmem:[#allocation3 + $0x88] sm:$0xff] %vm792_vm3, %v731_v58 }
 0x10f   : > { %820 = vst.msk [vmem:[#allocation3 + $0xd8] sm:$0xff] %vm792_vm3, %v751_v50  ;;  %v6956_v50 = vld [vmem:[#allocation9_spill] sm:$0xff] }
 0x112   : > { %947 = vrot.lane.b32.xlu0 %v5031_v8, %s4504_s26  ;;  %951 = vrot.lane.b32.xlu2 %v5124_v59, %s4504_s26 }
 0x113   : > { %949 = vrot.lane.b32.xlu1 %v5126_v33, %s4504_s26 }
 0x114   : > { %v735_v15 = vpop.permute.xlu0 %734  ;;  %v757_v31 = vpop.permute.xlu2 %756 }
 0x115   : > { %812 = vst.msk [vmem:[#allocation3 + $0x98] sm:$0xff] %vm792_vm3, %v735_v15  ;;  %v737_v38 = vpop.permute.xlu1 %736 }
 0x116   : > { %813 = vst.msk [vmem:[#allocation3 + $0xa0] sm:$0xff] %vm792_vm3, %v737_v38  ;;  %v5264_v38 = vld [vmem:[#allocation2 + $0x7a] sm:$0xff] }
 0x117   : > { %823 = vst.msk [vmem:[#allocation3 + $0xf0] sm:$0xff] %vm792_vm3, %v757_v31 }
 0x11a   : > { %1082 = vrot.lane.b32.xlu0 %v4579_v12, %s4505_s27  ;;  %1086 = vrot.lane.b32.xlu2 %v5137_v20, %s4505_s27 }
 0x11b   : > { %1084 = vrot.lane.b32.xlu1 %v4595_v17, %s4505_s27 }
 0x11c   : > { %v741_v11 = vpop.permute.xlu0 %740  ;;  %v892_v3 = vpop.permute.xlu2 %891 }
 0x11d   : > { %815 = vst.msk [vmem:[#allocation3 + $0xb0] sm:$0xff] %vm792_vm3, %v741_v11  ;;  %v743_v10 = vpop.permute.xlu1 %742  ;;  %v6957_v11 = vld [vmem:[#allocation8_spill] sm:$0xff] }
 0x11e   : > { %816 = vst.msk [vmem:[#allocation3 + $0xb8] sm:$0xff] %vm792_vm3, %v743_v10 }
 0x11f   : > { %987 = vst.msk [vmem:[#allocation3 + $0x8] sm:$0xff] %vm985_vm4, %v892_v3  ;;  %v6958_v3 = vld [vmem:[#allocation11_spill] sm:$0xff] }
 0x122   : > { %1088 = vrot.lane.b32.xlu0 %v4585_v14, %s4505_s27  ;;  %1092 = vrot.lane.b32.xlu2 %v4610_v24, %s4505_s27 }
 0x123   : > { %1090 = vrot.lane.b32.xlu1 %v5148_v25, %s4505_s27 }
 0x124   : > { %v747_v12 = vpop.permute.xlu0 %746  ;;  %v898_v17 = vpop.permute.xlu2 %897 }
 0x125   : > { %818 = vst.msk [vmem:[#allocation3 + $0xc8] sm:$0xff] %vm792_vm3, %v747_v12  ;;  %v749_v19 = vpop.permute.xlu1 %748 }
 0x126   : > { %819 = vst.msk [vmem:[#allocation3 + $0xd0] sm:$0xff] %vm792_vm3, %v749_v19  ;;  %v6959_v19 = vld [vmem:[#allocation10_spill] sm:$0xff] }
 0x127   : > { %990 = vst.msk [vmem:[#allocation3 + $0x20] sm:$0xff] %vm985_vm4, %v898_v17 }
 0x12a   : > { %1094 = vrot.lane.b32.xlu0 %v4608_v23, %s4505_s27  ;;  %1098 = vrot.lane.b32.xlu2 %v4627_v30, %s4505_s27 }
 0x12b   : > { %1096 = vrot.lane.b32.xlu1 %v4623_v28, %s4505_s27 }
 0x12c   : > { %v753_v14 = vpop.permute.xlu0 %752  ;;  %v904_v24 = vpop.permute.xlu2 %903 }
 0x12d   : > { %821 = vst.msk [vmem:[#allocation3 + $0xe0] sm:$0xff] %vm792_vm3, %v753_v14  ;;  %v755_v1 = vpop.permute.xlu1 %754  ;;  %v6960_v14 = vld [vmem:[#allocation14_spill] sm:$0xff] }
 0x12e   : > { %822 = vst.msk [vmem:[#allocation3 + $0xe8] sm:$0xff] %vm792_vm3, %v755_v1 }
 0x12f   : > { %993 = vst.msk [vmem:[#allocation3 + $0x38] sm:$0xff] %vm985_vm4, %v904_v24  ;;  %v6961_v24 = vld [vmem:[#allocation12_spill] sm:$0xff] }
 0x132   : > { %1100 = vrot.lane.b32.xlu0 %v4625_v29, %s4505_s27  ;;  %1104 = vrot.lane.b32.xlu2 %v4645_v36, %s4505_s27 }
 0x133   : > { %1102 = vrot.lane.b32.xlu1 %v4641_v34, %s4505_s27 }
 0x134   : > { %v759_v23 = vpop.permute.xlu0 %758  ;;  %v910_v28 = vpop.permute.xlu2 %909 }
 0x135   : > { %824 = vst.msk [vmem:[#allocation3 + $0xf8] sm:$0xff] %vm792_vm3, %v759_v23  ;;  %v890_v30 = vpop.permute.xlu1 %889 }
 0x136   : > { %986 = vst.msk [vmem:[#allocation3] sm:$0xff] %vm985_vm4, %v890_v30  ;;  %v6962_v30 = vld [vmem:[#allocation13_spill] sm:$0xff] }
 0x137   : > { %996 = vst.msk [vmem:[#allocation3 + $0x50] sm:$0xff] %vm985_vm4, %v910_v28 }
 0x13a   : > { %1106 = vrot.lane.b32.xlu0 %v4643_v35, %s4505_s27  ;;  %1110 = vrot.lane.b32.xlu2 %v4663_v42, %s4505_s27 }
 0x13b   : > { %1108 = vrot.lane.b32.xlu1 %v4659_v40, %s4505_s27 }
 0x13c   : > { %v894_v29 = vpop.permute.xlu0 %893  ;;  %v916_v34 = vpop.permute.xlu2 %915 }
 0x13d   : > { %988 = vst.msk [vmem:[#allocation3 + $0x10] sm:$0xff] %vm985_vm4, %v894_v29  ;;  %v896_v36 = vpop.permute.xlu1 %895  ;;  %v6963_v29 = vld [vmem:[#allocation17_spill] sm:$0xff] }
 0x13e   : > { %989 = vst.msk [vmem:[#allocation3 + $0x18] sm:$0xff] %vm985_vm4, %v896_v36 }
 0x13f   : > { %999 = vst.msk [vmem:[#allocation3 + $0x68] sm:$0xff] %vm985_vm4, %v916_v34  ;;  %v6964_v34 = vld [vmem:[#allocation15_spill] sm:$0xff] }
 0x142   : > { %1112 = vrot.lane.b32.xlu0 %v4661_v41, %s4505_s27  ;;  %1116 = vrot.lane.b32.xlu2 %v4681_v48, %s4505_s27 }
 0x143   : > { %1114 = vrot.lane.b32.xlu1 %v4677_v46, %s4505_s27 }
 0x144   : > { %v900_v35 = vpop.permute.xlu0 %899  ;;  %v922_v40 = vpop.permute.xlu2 %921 }
 0x145   : > { %991 = vst.msk [vmem:[#allocation3 + $0x28] sm:$0xff] %vm985_vm4, %v900_v35  ;;  %v902_v42 = vpop.permute.xlu1 %901 }
 0x146   : > { %992 = vst.msk [vmem:[#allocation3 + $0x30] sm:$0xff] %vm985_vm4, %v902_v42  ;;  %v355_v42 = vld [vmem:[#allocation2 + $0x18f] sm:$0x1] }
 0x147   : > { %1002 = vst.msk [vmem:[#allocation3 + $0x80] sm:$0xff] %vm985_vm4, %v922_v40 }
 0x148   : > { %373 = vst.msk [vmem:[#allocation2 + $0x191] sm:$0x1] %vm320_vm1, %v355_v42 }
 0x14a   : > { %1118 = vrot.lane.b32.xlu0 %v4679_v47, %s4505_s27  ;;  %1122 = vrot.lane.b32.xlu2 %v4698_v54, %s4505_s27 }
 0x14b   : > { %1120 = vrot.lane.b32.xlu1 %v4694_v52, %s4505_s27 }
 0x14c   : > { %v906_v41 = vpop.permute.xlu0 %905  ;;  %v928_v46 = vpop.permute.xlu2 %927 }
 0x14d   : > { %994 = vst.msk [vmem:[#allocation3 + $0x40] sm:$0xff] %vm985_vm4, %v906_v41  ;;  %v908_v48 = vpop.permute.xlu1 %907  ;;  %v6965_v41 = vld [vmem:[#allocation16_spill] sm:$0xff] }
 0x14e   : > { %995 = vst.msk [vmem:[#allocation3 + $0x48] sm:$0xff] %vm985_vm4, %v908_v48  ;;  %v6967_v48 = vld [vmem:[#allocation18_spill] sm:$0xff] }
 0x14f   : > { %1005 = vst.msk [vmem:[#allocation3 + $0x98] sm:$0xff] %vm985_vm4, %v928_v46  ;;  %v6966_v46 = vld [vmem:[#allocation20_spill] sm:$0xff] }
 0x152   : > { %1124 = vrot.lane.b32.xlu0 %v4696_v53, %s4505_s27  ;;  %1128 = vrot.lane.b32.xlu2 %v4710_v57, %s4505_s27 }
 0x153   : > { %1126 = vrot.lane.b32.xlu1 %v4706_v55, %s4505_s27 }
 0x154   : > { %v912_v47 = vpop.permute.xlu0 %911  ;;  %v934_v52 = vpop.permute.xlu2 %933 }
 0x155   : > { %997 = vst.msk [vmem:[#allocation3 + $0x58] sm:$0xff] %vm985_vm4, %v912_v47  ;;  %v914_v54 = vpop.permute.xlu1 %913 }
 0x156   : > { %998 = vst.msk [vmem:[#allocation3 + $0x60] sm:$0xff] %vm985_vm4, %v914_v54 }
 0x157   : > { %1008 = vst.msk [vmem:[#allocation3 + $0xb0] sm:$0xff] %vm985_vm4, %v934_v52 }
 0x15a   : > { %1130 = vrot.lane.b32.xlu0 %v4708_v56, %s4505_s27  ;;  %1134 = vrot.lane.b32.xlu2 %v4725_v63, %s4505_s27 }
 0x15b   : > { %1132 = vrot.lane.b32.xlu1 %v4721_v61, %s4505_s27 }
 0x15c   : > { %v918_v53 = vpop.permute.xlu0 %917  ;;  %v940_v55 = vpop.permute.xlu2 %939 }
 0x15d   : > { %1000 = vst.msk [vmem:[#allocation3 + $0x70] sm:$0xff] %vm985_vm4, %v918_v53  ;;  %v920_v57 = vpop.permute.xlu1 %919  ;;  %v6968_v53 = vld [vmem:[#allocation19_spill] sm:$0xff] }
 0x15e   : > { %1001 = vst.msk [vmem:[#allocation3 + $0x78] sm:$0xff] %vm985_vm4, %v920_v57  ;;  %v6970_v57 = vld [vmem:[#allocation21_spill] sm:$0xff] }
 0x15f   : > { %1011 = vst.msk [vmem:[#allocation3 + $0xc8] sm:$0xff] %vm985_vm4, %v940_v55  ;;  %v6969_v55 = vld [vmem:[#allocation23_spill] sm:$0xff] }
 0x162   : > { %1136 = vrot.lane.b32.xlu0 %v4723_v62, %s4505_s27  ;;  %1140 = vrot.lane.b32.xlu2 %v4737_v4, %s4505_s27 }
 0x163   : > { %1138 = vrot.lane.b32.xlu1 %v4735_v2, %s4505_s27 }
 0x164   : > { %v924_v56 = vpop.permute.xlu0 %923  ;;  %v946_v61 = vpop.permute.xlu2 %945 }
 0x165   : > { %1003 = vst.msk [vmem:[#allocation3 + $0x88] sm:$0xff] %vm985_vm4, %v924_v56  ;;  %v926_v63 = vpop.permute.xlu1 %925 }
 0x166   : > { %1004 = vst.msk [vmem:[#allocation3 + $0x90] sm:$0xff] %vm985_vm4, %v926_v63 }
 0x167   : > { %1014 = vst.msk [vmem:[#allocation3 + $0xe0] sm:$0xff] %vm985_vm4, %v946_v61 }
 0x16a   : > { %1142 = vrot.lane.b32.xlu0 %v5230_v43, %s4505_s27  ;;  %1275 = vrot.lane.b32.xlu2 %v4761_v18, %s4506_s28  ;;  %v6954_v18 = vld [vmem:[#allocation5_spill] sm:$0xff] }
 0x16b   : > { %1144 = vrot.lane.b32.xlu1 %v5233_v27, %s4505_s27 }
 0x16c   : > { %v930_v62 = vpop.permute.xlu0 %929  ;;  %v952_v2 = vpop.permute.xlu2 %951 }
 0x16d   : > { %1006 = vst.msk [vmem:[#allocation3 + $0xa0] sm:$0xff] %vm985_vm4, %v930_v62  ;;  %v932_v4 = vpop.permute.xlu1 %931  ;;  %v6971_v62 = vld [vmem:[#allocation22_spill] sm:$0xff] }
 0x16e   : > { %1007 = vst.msk [vmem:[#allocation3 + $0xa8] sm:$0xff] %vm985_vm4, %v932_v4  ;;  %v6973_v4 = vld [vmem:[#allocation24_spill] sm:$0xff] }
 0x16f   : > { %1017 = vst.msk [vmem:[#allocation3 + $0xf8] sm:$0xff] %vm985_vm4, %v952_v2  ;;  %v6972_v2 = vld [vmem:[#allocation26_spill] sm:$0xff] }
 0x172   : > { %1277 = vrot.lane.b32.xlu0 %v6952_v51, %s4506_s28  ;;  %1281 = vrot.lane.b32.xlu2 %v6953_v39, %s4506_s28 }
 0x173   : > { %1279 = vrot.lane.b32.xlu1 %v6954_v18, %s4506_s28 }
 0x174   : > { %v936_v6 = vpop.permute.xlu0 %935  ;;  %v1087_v7 = vpop.permute.xlu2 %1086 }
 0x175   : > { %1009 = vst.msk [vmem:[#allocation3 + $0xb8] sm:$0xff] %vm985_vm4, %v936_v6  ;;  %v938_v45 = vpop.permute.xlu1 %937  ;;  %v6974_v6 = vld [vmem:[#allocation25_spill] sm:$0xff] }
 0x176   : > { %1010 = vst.msk [vmem:[#allocation3 + $0xc0] sm:$0xff] %vm985_vm4, %v938_v45 }
 0x177   : > { %1181 = vst.msk [vmem:[#allocation3 + $0x10] sm:$0xff] %vm1178_vm5, %v1087_v7  ;;  %v6975_v7 = vld [vmem:[#allocation27_spill] sm:$0xff] }
 0x17a   : > { %1283 = vrot.lane.b32.xlu0 %v6955_v32, %s4506_s28  ;;  %1287 = vrot.lane.b32.xlu2 %v6956_v50, %s4506_s28 }
 0x17b   : > { %1285 = vrot.lane.b32.xlu1 %v5253_v9, %s4506_s28 }
 0x17c   : > { %v942_v58 = vpop.permute.xlu0 %941  ;;  %v1093_v15 = vpop.permute.xlu2 %1092 }
 0x17d   : > { %1012 = vst.msk [vmem:[#allocation3 + $0xd0] sm:$0xff] %vm985_vm4, %v942_v58  ;;  %v944_v31 = vpop.permute.xlu1 %943  ;;  %v5330_v58 = vld [vmem:[#allocation2 + $0x182] sm:$0xff] }
 0x17e   : > { %1013 = vst.msk [vmem:[#allocation3 + $0xd8] sm:$0xff] %vm985_vm4, %v944_v31 }
 0x17f   : > { %1184 = vst.msk [vmem:[#allocation3 + $0x28] sm:$0xff] %vm1178_vm5, %v1093_v15  ;;  %v6976_v15 = vld [vmem:[#allocation28_spill] sm:$0xff] }
 0x182   : > { %1289 = vrot.lane.b32.xlu0 %v6957_v11, %s4506_s28  ;;  %1293 = vrot.lane.b32.xlu2 %v6958_v3, %s4506_s28 }
 0x183   : > { %1291 = vrot.lane.b32.xlu1 %v5264_v38, %s4506_s28 }
 0x184   : > { %v948_v10 = vpop.permute.xlu0 %947  ;;  %v1099_v12 = vpop.permute.xlu2 %1098 }
 0x185   : > { %1015 = vst.msk [vmem:[#allocation3 + $0xe8] sm:$0xff] %vm985_vm4, %v948_v10  ;;  %v950_v17 = vpop.permute.xlu1 %949  ;;  %v5340_v10 = vld [vmem:[#allocation2 + $0x18a] sm:$0xff] }
 0x186   : > { %1016 = vst.msk [vmem:[#allocation3 + $0xf0] sm:$0xff] %vm985_vm4, %v950_v17  ;;  %v1404_v17 = vld [vmem:[#allocation2 + $0x30] sm:$0xff] }
 0x187   : > { %1187 = vst.msk [vmem:[#allocation3 + $0x40] sm:$0xff] %vm1178_vm5, %v1099_v12  ;;  %v1405_v12 = vld [vmem:[#allocation2 + $0x38] sm:$0xff] }
 0x18a   : > { %1295 = vrot.lane.b32.xlu0 %v6959_v19, %s4506_s28  ;;  %1299 = vrot.lane.b32.xlu2 %v6960_v14, %s4506_s28 }
 0x18b   : > { %1297 = vrot.lane.b32.xlu1 %v6961_v24, %s4506_s28 }
 0x18c   : > { %v1083_v1 = vpop.permute.xlu0 %1082  ;;  %v1105_v23 = vpop.permute.xlu2 %1104 }
 0x18d   : > { %1179 = vst.msk [vmem:[#allocation3] sm:$0xff] %vm1178_vm5, %v1083_v1  ;;  %v1085_v28 = vpop.permute.xlu1 %1084  ;;  %v1406_v1 = vld [vmem:[#allocation2 + $0x48] sm:$0xff] }
 0x18e   : > { %1180 = vst.msk [vmem:[#allocation3 + $0x8] sm:$0xff] %vm1178_vm5, %v1085_v28  ;;  %v1407_v28 = vld [vmem:[#allocation2 + $0x50] sm:$0xff] }
 0x18f   : > { %1190 = vst.msk [vmem:[#allocation3 + $0x58] sm:$0xff] %vm1178_vm5, %v1105_v23  ;;  %v1408_v23 = vld [vmem:[#allocation2 + $0x60] sm:$0xff] }
 0x192   : > { %1301 = vrot.lane.b32.xlu0 %v6962_v30, %s4506_s28  ;;  %1305 = vrot.lane.b32.xlu2 %v6963_v29, %s4506_s28 }
 0x193   : > { %1303 = vrot.lane.b32.xlu1 %v6964_v34, %s4506_s28 }
 0x194   : > { %v1089_v36 = vpop.permute.xlu0 %1088  ;;  %v1111_v35 = vpop.permute.xlu2 %1110 }
 0x195   : > { %1182 = vst.msk [vmem:[#allocation3 + $0x18] sm:$0xff] %vm1178_vm5, %v1089_v36  ;;  %v1091_v40 = vpop.permute.xlu1 %1090  ;;  %v1409_v36 = vld [vmem:[#allocation2 + $0x68] sm:$0xff] }
 0x196   : > { %1183 = vst.msk [vmem:[#allocation3 + $0x20] sm:$0xff] %vm1178_vm5, %v1091_v40  ;;  %v1410_v40 = vld [vmem:[#allocation2 + $0x78] sm:$0xff] }
 0x197   : > { %1193 = vst.msk [vmem:[#allocation3 + $0x70] sm:$0xff] %vm1178_vm5, %v1111_v35  ;;  %v1411_v35 = vld [vmem:[#allocation2 + $0x80] sm:$0xff] }
 0x19a   : > { %1307 = vrot.lane.b32.xlu0 %v6965_v41, %s4506_s28  ;;  %1311 = vrot.lane.b32.xlu2 %v6966_v46, %s4506_s28 }
 0x19b   : > { %1309 = vrot.lane.b32.xlu1 %v6967_v48, %s4506_s28  ;;  %v1412_v48 = vld [vmem:[#allocation2 + $0x90] sm:$0xff] }
 0x19c   : > { %v1095_v47 = vpop.permute.xlu0 %1094  ;;  %v1117_v52 = vpop.permute.xlu2 %1116 }
 0x19d   : > { %1185 = vst.msk [vmem:[#allocation3 + $0x30] sm:$0xff] %vm1178_vm5, %v1095_v47  ;;  %v1097_v54 = vpop.permute.xlu1 %1096  ;;  %v1414_v47 = vld [vmem:[#allocation2 + $0xa8] sm:$0xff] }
 0x19e   : > { %1186 = vst.msk [vmem:[#allocation3 + $0x38] sm:$0xff] %vm1178_vm5, %v1097_v54 }
 0x19f   : > { %1196 = vst.msk [vmem:[#allocation3 + $0x88] sm:$0xff] %vm1178_vm5, %v1117_v52  ;;  %v1413_v52 = vld [vmem:[#allocation2 + $0x98] sm:$0xff] }
 0x1a2   : > { %1313 = vrot.lane.b32.xlu0 %v6968_v53, %s4506_s28  ;;  %1317 = vrot.lane.b32.xlu2 %v6969_v55, %s4506_s28 }
 0x1a3   : > { %1315 = vrot.lane.b32.xlu1 %v6970_v57, %s4506_s28  ;;  %v1415_v57 = vld [vmem:[#allocation2 + $0xb0] sm:$0xff] }
 0x1a4   : > { %v1101_v56 = vpop.permute.xlu0 %1100  ;;  %v1123_v61 = vpop.permute.xlu2 %1122 }
 0x1a5   : > { %1188 = vst.msk [vmem:[#allocation3 + $0x48] sm:$0xff] %vm1178_vm5, %v1101_v56  ;;  %v1103_v63 = vpop.permute.xlu1 %1102  ;;  %v1417_v56 = vld [vmem:[#allocation2 + $0xc8] sm:$0xff] }
 0x1a6   : > { %1189 = vst.msk [vmem:[#allocation3 + $0x50] sm:$0xff] %vm1178_vm5, %v1103_v63 }
 0x1a7   : > { %1199 = vst.msk [vmem:[#allocation3 + $0xa0] sm:$0xff] %vm1178_vm5, %v1123_v61 }
 0x1aa   : > { %1319 = vrot.lane.b32.xlu0 %v6971_v62, %s4506_s28  ;;  %1323 = vrot.lane.b32.xlu2 %v6972_v2, %s4506_s28  ;;  %v1420_v2 = vld [vmem:[#allocation2 + $0xf0] sm:$0xff] }
 0x1ab   : > { %1321 = vrot.lane.b32.xlu1 %v6973_v4, %s4506_s28  ;;  %v5375_v4 = vld [vmem:[#allocation2 + $0x169] sm:$0xff] }
 0x1ac   : > { %v1107_v51 = vpop.permute.xlu0 %1106  ;;  %v1129_v39 = vpop.permute.xlu2 %1128  ;;  %300 = vst.msk [vmem:[#allocation2 + $0x199] sm:$0xff] %vm258_vm0, %v5375_v4 }
 0x1ad   : > { %1191 = vst.msk [vmem:[#allocation3 + $0x60] sm:$0xff] %vm1178_vm5, %v1107_v51  ;;  %v1109_v18 = vpop.permute.xlu1 %1108 }
 0x1ae   : > { %1192 = vst.msk [vmem:[#allocation3 + $0x68] sm:$0xff] %vm1178_vm5, %v1109_v18  ;;  %v1423_v18 = vld [vmem:[#allocation2 + $0x110] sm:$0xff] }
 0x1af   : > { %1202 = vst.msk [vmem:[#allocation3 + $0xb8] sm:$0xff] %vm1178_vm5, %v1129_v39 }
 0x1b2   : > { %1325 = vrot.lane.b32.xlu0 %v6974_v6, %s4506_s28  ;;  %1329 = vrot.lane.b32.xlu2 %v4996_v21, %s4506_s28  ;;  %v6977_v21 = vld [vmem:[#allocation29_spill] sm:$0xff] }
 0x1b3   : > { %1327 = vrot.lane.b32.xlu1 %v6975_v7, %s4506_s28  ;;  %v319_v6 = vld [vmem:[#allocation2 + $0x19a] sm:$0x1] }
 0x1b4   : > { %v1113_v45 = vpop.permute.xlu0 %1112  ;;  %v1135_v32 = vpop.permute.xlu2 %1134  ;;  %338 = vst.msk [vmem:[#allocation2 + $0x198] sm:$0x1] %vm320_vm1, %v319_v6  ;;  %v1616_v6 = vld [vmem:[#allocation2 + $0x111] sm:$0xff] }
 0x1b5   : > { %1194 = vst.msk [vmem:[#allocation3 + $0x78] sm:$0xff] %vm1178_vm5, %v1113_v45  ;;  %v1115_v50 = vpop.permute.xlu1 %1114  ;;  %v1426_v45 = vld [vmem:[#allocation2 + $0x138] sm:$0xff] }
 0x1b6   : > { %1195 = vst.msk [vmem:[#allocation3 + $0x80] sm:$0xff] %vm1178_vm5, %v1115_v50 }
 0x1b7   : > { %1205 = vst.msk [vmem:[#allocation3 + $0xd0] sm:$0xff] %vm1178_vm5, %v1135_v32  ;;  %v5396_v32 = vld [vmem:[#allocation2 + $0x171] sm:$0xff] }
 0x1b8   : > { %301 = vst.msk [vmem:[#allocation2 + $0x1a1] sm:$0xff] %vm258_vm0, %v5396_v32 }
 0x1ba   : > { %1331 = vrot.lane.b32.xlu0 %v6976_v15, %s4506_s28  ;;  %1335 = vrot.lane.b32.xlu2 %v5330_v58, %s4506_s28  ;;  %v1429_v15 = vld [vmem:[#allocation2 + $0x158] sm:$0xff] }
 0x1bb   : > { %1333 = vrot.lane.b32.xlu1 %v6977_v21, %s4506_s28 }
 0x1bc   : > { %v1119_v31 = vpop.permute.xlu0 %1118  ;;  %v1141_v11 = vpop.permute.xlu2 %1140 }
 0x1bd   : > { %1197 = vst.msk [vmem:[#allocation3 + $0x90] sm:$0xff] %vm1178_vm5, %v1119_v31  ;;  %v1121_v3 = vpop.permute.xlu1 %1120 }
 0x1be   : > { %1198 = vst.msk [vmem:[#allocation3 + $0x98] sm:$0xff] %vm1178_vm5, %v1121_v3  ;;  %v1434_v3 = vld [vmem:[#allocation2 + $0x198] sm:$0xff] }
 0x1bf   : > { %1208 = vst.msk [vmem:[#allocation3 + $0xe8] sm:$0xff] %vm1178_vm5, %v1141_v11  ;;  %v1435_v11 = vld [vmem:[#allocation2 + $0x1a0] sm:$0xff] }
 0x1c2   : > { %1337 = vrot.lane.b32.xlu0 %v5340_v10, %s4506_s28  ;;  %1470 = vrot.lane.b32.xlu2 %v1405_v12, %s4507_s29  ;;  %v1598_v12 = vld [vmem:[#allocation2 + $0x39] sm:$0xff] }
 0x1c3   : > { %1468 = vrot.lane.b32.xlu1 %v1404_v17, %s4507_s29 }
 0x1c4   : > { %v1125_v19 = vpop.permute.xlu0 %1124  ;;  %v1276_v14 = vpop.permute.xlu2 %1275 }
 0x1c5   : > { %1200 = vst.msk [vmem:[#allocation3 + $0xa8] sm:$0xff] %vm1178_vm5, %v1125_v19  ;;  %v1127_v24 = vpop.permute.xlu1 %1126 }
 0x1c6   : > { %1201 = vst.msk [vmem:[#allocation3 + $0xb0] sm:$0xff] %vm1178_vm5, %v1127_v24  ;;  %v1602_v24 = vld [vmem:[#allocation2 + $0x69] sm:$0xff] }
 0x1c7   : > { %1372 = vst.msk [vmem:[#allocation3] sm:$0xff] %vm1371_vm6, %v1276_v14  ;;  %v1600_v14 = vld [vmem:[#allocation2 + $0x51] sm:$0xff] }
 0x1ca   : > { %1472 = vrot.lane.b32.xlu0 %v1406_v1, %s4507_s29  ;;  %1476 = vrot.lane.b32.xlu2 %v1408_v23, %s4507_s29  ;;  %v1601_v1 = vld [vmem:[#allocation2 + $0x61] sm:$0xff] }
 0x1cb   : > { %1474 = vrot.lane.b32.xlu1 %v1407_v28, %s4507_s29  ;;  %v1603_v28 = vld [vmem:[#allocation2 + $0x79] sm:$0xff] }
 0x1cc   : > { %v1131_v30 = vpop.permute.xlu0 %1130  ;;  %v1282_v29 = vpop.permute.xlu2 %1281 }
 0x1cd   : > { %1203 = vst.msk [vmem:[#allocation3 + $0xc0] sm:$0xff] %vm1178_vm5, %v1131_v30  ;;  %v1133_v34 = vpop.permute.xlu1 %1132  ;;  %v1605_v30 = vld [vmem:[#allocation2 + $0x91] sm:$0xff] }
 0x1ce   : > { %1204 = vst.msk [vmem:[#allocation3 + $0xc8] sm:$0xff] %vm1178_vm5, %v1133_v34 }
 0x1cf   : > { %1375 = vst.msk [vmem:[#allocation3 + $0x18] sm:$0xff] %vm1371_vm6, %v1282_v29  ;;  %v1604_v29 = vld [vmem:[#allocation2 + $0x81] sm:$0xff] }
 0x1d2   : > { %1478 = vrot.lane.b32.xlu0 %v1409_v36, %s4507_s29  ;;  %1482 = vrot.lane.b32.xlu2 %v1411_v35, %s4507_s29 }
 0x1d3   : > { %1480 = vrot.lane.b32.xlu1 %v1410_v40, %s4507_s29  ;;  %v1606_v40 = vld [vmem:[#allocation2 + $0x99] sm:$0xff] }
 0x1d4   : > { %v1137_v42 = vpop.permute.xlu0 %1136  ;;  %v1288_v41 = vpop.permute.xlu2 %1287 }
 0x1d5   : > { %1206 = vst.msk [vmem:[#allocation3 + $0xd8] sm:$0xff] %vm1178_vm5, %v1137_v42  ;;  %v1139_v46 = vpop.permute.xlu1 %1138  ;;  %v1608_v42 = vld [vmem:[#allocation2 + $0xb1] sm:$0xff] }
 0x1d6   : > { %1207 = vst.msk [vmem:[#allocation3 + $0xe0] sm:$0xff] %vm1178_vm5, %v1139_v46 }
 0x1d7   : > { %1378 = vst.msk [vmem:[#allocation3 + $0x30] sm:$0xff] %vm1371_vm6, %v1288_v41  ;;  %v1607_v41 = vld [vmem:[#allocation2 + $0xa9] sm:$0xff] }
 0x1da   : > { %1484 = vrot.lane.b32.xlu0 %v1412_v48, %s4507_s29  ;;  %1488 = vrot.lane.b32.xlu2 %v1414_v47, %s4507_s29 }
 0x1db   : > { %1486 = vrot.lane.b32.xlu1 %v1413_v52, %s4507_s29  ;;  %v1609_v52 = vld [vmem:[#allocation2 + $0xc1] sm:$0xff] }
 0x1dc   : > { %v1143_v54 = vpop.permute.xlu0 %1142  ;;  %v1294_v53 = vpop.permute.xlu2 %1293 }
 0x1dd   : > { %1209 = vst.msk [vmem:[#allocation3 + $0xf0] sm:$0xff] %vm1178_vm5, %v1143_v54  ;;  %v1145_v55 = vpop.permute.xlu1 %1144  ;;  %v1611_v54 = vld [vmem:[#allocation2 + $0xd9] sm:$0xff] }
 0x1de   : > { %1210 = vst.msk [vmem:[#allocation3 + $0xf8] sm:$0xff] %vm1178_vm5, %v1145_v55 }
 0x1df   : > { %1381 = vst.msk [vmem:[#allocation3 + $0x48] sm:$0xff] %vm1371_vm6, %v1294_v53  ;;  %v1610_v53 = vld [vmem:[#allocation2 + $0xc9] sm:$0xff] }
 0x1e2   : > { %1490 = vrot.lane.b32.xlu0 %v1415_v57, %s4507_s29  ;;  %1494 = vrot.lane.b32.xlu2 %v1417_v56, %s4507_s29 }
 0x1e3   : > { %1492 = vrot.lane.b32.xlu1 %v4933_v5, %s4507_s29 }
 0x1e4   : > { %v1278_v61 = vpop.permute.xlu0 %1277  ;;  %v1300_v63 = vpop.permute.xlu2 %1299 }
 0x1e5   : > { %1373 = vst.msk [vmem:[#allocation3 + $0x8] sm:$0xff] %vm1371_vm6, %v1278_v61  ;;  %v1280_v62 = vpop.permute.xlu1 %1279  ;;  %v1612_v61 = vld [vmem:[#allocation2 + $0xe1] sm:$0xff] }
 0x1e6   : > { %1374 = vst.msk [vmem:[#allocation3 + $0x10] sm:$0xff] %vm1371_vm6, %v1280_v62  ;;  %v1613_v62 = vld [vmem:[#allocation2 + $0xf1] sm:$0xff] }
 0x1e7   : > { %1384 = vst.msk [vmem:[#allocation3 + $0x60] sm:$0xff] %vm1371_vm6, %v1300_v63  ;;  %v1614_v63 = vld [vmem:[#allocation2 + $0xf9] sm:$0xff] }
 0x1ea   : > { %1496 = vrot.lane.b32.xlu0 %v4913_v44, %s4507_s29  ;;  %1500 = vrot.lane.b32.xlu2 %v1420_v2, %s4507_s29 }
 0x1eb   : > { %1498 = vrot.lane.b32.xlu1 %v4941_v60, %s4507_s29 }
 0x1ec   : > { %v1284_v5 = vpop.permute.xlu0 %1283  ;;  %v1306_v51 = vpop.permute.xlu2 %1305 }
 0x1ed   : > { %1376 = vst.msk [vmem:[#allocation3 + $0x20] sm:$0xff] %vm1371_vm6, %v1284_v5  ;;  %v1286_v39 = vpop.permute.xlu1 %1285 }
 0x1ee   : > { %1377 = vst.msk [vmem:[#allocation3 + $0x28] sm:$0xff] %vm1371_vm6, %v1286_v39  ;;  %v1615_v39 = vld [vmem:[#allocation2 + $0x109] sm:$0xff] }
 0x1ef   : > { %1387 = vst.msk [vmem:[#allocation3 + $0x78] sm:$0xff] %vm1371_vm6, %v1306_v51 }
 0x1f2   : > { %1502 = vrot.lane.b32.xlu0 %v4935_v37, %s4507_s29  ;;  %1506 = vrot.lane.b32.xlu2 %v1423_v18, %s4507_s29  ;;  %v1617_v18 = vld [vmem:[#allocation2 + $0x121] sm:$0xff] }
 0x1f3   : > { %1504 = vrot.lane.b32.xlu1 %v5000_v16, %s4507_s29 }
 0x1f4   : > { %v1290_v44 = vpop.permute.xlu0 %1289  ;;  %v1312_v60 = vpop.permute.xlu2 %1311 }
 0x1f5   : > { %1379 = vst.msk [vmem:[#allocation3 + $0x38] sm:$0xff] %vm1371_vm6, %v1290_v44  ;;  %v1292_v7 = vpop.permute.xlu1 %1291 }
 0x1f6   : > { %1380 = vst.msk [vmem:[#allocation3 + $0x40] sm:$0xff] %vm1371_vm6, %v1292_v7 }
 0x1f7   : > { %1390 = vst.msk [vmem:[#allocation3 + $0x90] sm:$0xff] %vm1371_vm6, %v1312_v60 }
 0x1fa   : > { %1508 = vrot.lane.b32.xlu0 %v4994_v22, %s4507_s29  ;;  %1512 = vrot.lane.b32.xlu2 %v1426_v45, %s4507_s29  ;;  %v1618_v45 = vld [vmem:[#allocation2 + $0x129] sm:$0xff] }
 0x1fb   : > { %1510 = vrot.lane.b32.xlu1 %v4983_v13, %s4507_s29 }
 0x1fc   : > { %v1296_v16 = vpop.permute.xlu0 %1295  ;;  %v1318_v37 = vpop.permute.xlu2 %1317 }
 0x1fd   : > { %1382 = vst.msk [vmem:[#allocation3 + $0x50] sm:$0xff] %vm1371_vm6, %v1296_v16  ;;  %v1298_v50 = vpop.permute.xlu1 %1297  ;;  %v1620_v16 = vld [vmem:[#allocation2 + $0x141] sm:$0xff] }
 0x1fe   : > { %1383 = vst.msk [vmem:[#allocation3 + $0x58] sm:$0xff] %vm1371_vm6, %v1298_v50 }
 0x1ff   : > { %1393 = vst.msk [vmem:[#allocation3 + $0xa8] sm:$0xff] %vm1371_vm6, %v1318_v37  ;;  %v1619_v37 = vld [vmem:[#allocation2 + $0x139] sm:$0xff] }
 0x202   : > { %1514 = vrot.lane.b32.xlu0 %v4977_v0, %s4507_s29  ;;  %1518 = vrot.lane.b32.xlu2 %v1429_v15, %s4507_s29 }
 0x203   : > { %1516 = vrot.lane.b32.xlu1 %v5025_v26, %s4507_s29 }
 0x204   : > { %v1302_v22 = vpop.permute.xlu0 %1301  ;;  %v1324_v13 = vpop.permute.xlu2 %1323 }
 0x205   : > { %1385 = vst.msk [vmem:[#allocation3 + $0x68] sm:$0xff] %vm1371_vm6, %v1302_v22  ;;  %v1304_v21 = vpop.permute.xlu1 %1303 }
 0x206   : > { %1386 = vst.msk [vmem:[#allocation3 + $0x70] sm:$0xff] %vm1371_vm6, %v1304_v21  ;;  %v1622_v21 = vld [vmem:[#allocation2 + $0x159] sm:$0xff] }
 0x207   : > { %1396 = vst.msk [vmem:[#allocation3 + $0xc0] sm:$0xff] %vm1371_vm6, %v1324_v13  ;;  %v1621_v13 = vld [vmem:[#allocation2 + $0x151] sm:$0xff] }
 0x20a   : > { %1520 = vrot.lane.b32.xlu0 %v5017_v49, %s4507_s29  ;;  %1524 = vrot.lane.b32.xlu2 %v5126_v33, %s4507_s29 }
 0x20b   : > { %1522 = vrot.lane.b32.xlu1 %v5031_v8, %s4507_s29 }
 0x20c   : > { %v1308_v0 = vpop.permute.xlu0 %1307  ;;  %v1330_v26 = vpop.permute.xlu2 %1329 }
 0x20d   : > { %1388 = vst.msk [vmem:[#allocation3 + $0x80] sm:$0xff] %vm1371_vm6, %v1308_v0  ;;  %v1310_v31 = vpop.permute.xlu1 %1309 }
 0x20e   : > { %1389 = vst.msk [vmem:[#allocation3 + $0x88] sm:$0xff] %vm1371_vm6, %v1310_v31 }
 0x20f   : > { %1399 = vst.msk [vmem:[#allocation3 + $0xd8] sm:$0xff] %vm1371_vm6, %v1330_v26 }
 0x212   : > { %1526 = vrot.lane.b32.xlu0 %v5124_v59, %s4507_s29  ;;  %1530 = vrot.lane.b32.xlu2 %v1435_v11, %s4507_s29 }
 0x213   : > { %1528 = vrot.lane.b32.xlu1 %v1434_v3, %s4507_s29 }
 0x214   : > { %v1314_v49 = vpop.permute.xlu0 %1313  ;;  %v1336_v8 = vpop.permute.xlu2 %1335 }
 0x215   : > { %1391 = vst.msk [vmem:[#allocation3 + $0x98] sm:$0xff] %vm1371_vm6, %v1314_v49  ;;  %v1316_v33 = vpop.permute.xlu1 %1315  ;;  %v1627_v49 = vld [vmem:[#allocation2 + $0x199] sm:$0xff] }
 0x216   : > { %1392 = vst.msk [vmem:[#allocation3 + $0xa0] sm:$0xff] %vm1371_vm6, %v1316_v33  ;;  %v1628_v33 = vld [vmem:[#allocation2 + $0x1a1] sm:$0xff] }
 0x217   : > { %1402 = vst.msk [vmem:[#allocation3 + $0xf0] sm:$0xff] %vm1371_vm6, %v1336_v8  ;;  %v1790_v8 = vld [vmem:[#allocation2 + $0x32] sm:$0xff] }
 0x21a   : > { %1661 = vrot.lane.b32.xlu0 %v5137_v20, %s4508_s30  ;;  %1665 = vrot.lane.b32.xlu2 %v5148_v25, %s4508_s30 }
 0x21b   : > { %1663 = vrot.lane.b32.xlu1 %v1598_v12, %s4508_s30  ;;  %v1791_v12 = vld [vmem:[#allocation2 + $0x3a] sm:$0xff] }
 0x21c   : > { %v1320_v59 = vpop.permute.xlu0 %1319  ;;  %v1471_v17 = vpop.permute.xlu2 %1470 }
 0x21d   : > { %1394 = vst.msk [vmem:[#allocation3 + $0xb0] sm:$0xff] %vm1371_vm6, %v1320_v59  ;;  %v1322_v19 = vpop.permute.xlu1 %1321  ;;  %v1792_v59 = vld [vmem:[#allocation2 + $0x4a] sm:$0xff] }
 0x21e   : > { %1395 = vst.msk [vmem:[#allocation3 + $0xb8] sm:$0xff] %vm1371_vm6, %v1322_v19 }
 0x21f   : > { %1566 = vst.msk [vmem:[#allocation3 + $0x8] sm:$0xff] %vm1564_vm7, %v1471_v17 }
 0x222   : > { %1667 = vrot.lane.b32.xlu0 %v1600_v14, %s4508_s30  ;;  %1671 = vrot.lane.b32.xlu2 %v1602_v24, %s4508_s30  ;;  %v1794_v24 = vld [vmem:[#allocation2 + $0x62] sm:$0xff] }
 0x223   : > { %1669 = vrot.lane.b32.xlu1 %v1601_v1, %s4508_s30  ;;  %v1795_v1 = vld [vmem:[#allocation2 + $0x6a] sm:$0xff] }
 0x224   : > { %v1326_v20 = vpop.permute.xlu0 %1325  ;;  %v1477_v25 = vpop.permute.xlu2 %1476 }
 0x225   : > { %1397 = vst.msk [vmem:[#allocation3 + $0xc8] sm:$0xff] %vm1371_vm6, %v1326_v20  ;;  %v1328_v23 = vpop.permute.xlu1 %1327 }
 0x226   : > { %1398 = vst.msk [vmem:[#allocation3 + $0xd0] sm:$0xff] %vm1371_vm6, %v1328_v23  ;;  %v1797_v23 = vld [vmem:[#allocation2 + $0x82] sm:$0xff] }
 0x227   : > { %1569 = vst.msk [vmem:[#allocation3 + $0x20] sm:$0xff] %vm1564_vm7, %v1477_v25 }
 0x22a   : > { %1673 = vrot.lane.b32.xlu0 %v1603_v28, %s4508_s30  ;;  %1677 = vrot.lane.b32.xlu2 %v1605_v30, %s4508_s30  ;;  %v1798_v28 = vld [vmem:[#allocation2 + $0x92] sm:$0xff] }
 0x22b   : > { %1675 = vrot.lane.b32.xlu1 %v1604_v29, %s4508_s30 }
 0x22c   : > { %v1332_v34 = vpop.permute.xlu0 %1331  ;;  %v1483_v36 = vpop.permute.xlu2 %1482 }
 0x22d   : > { %1400 = vst.msk [vmem:[#allocation3 + $0xe0] sm:$0xff] %vm1371_vm6, %v1332_v34  ;;  %v1334_v35 = vpop.permute.xlu1 %1333  ;;  %v1799_v34 = vld [vmem:[#allocation2 + $0x9a] sm:$0xff] }
 0x22e   : > { %1401 = vst.msk [vmem:[#allocation3 + $0xe8] sm:$0xff] %vm1371_vm6, %v1334_v35  ;;  %v1801_v35 = vld [vmem:[#allocation2 + $0xb2] sm:$0xff] }
 0x22f   : > { %1572 = vst.msk [vmem:[#allocation3 + $0x38] sm:$0xff] %vm1564_vm7, %v1483_v36  ;;  %v1800_v36 = vld [vmem:[#allocation2 + $0xaa] sm:$0xff] }
 0x232   : > { %1679 = vrot.lane.b32.xlu0 %v1606_v40, %s4508_s30  ;;  %1683 = vrot.lane.b32.xlu2 %v1608_v42, %s4508_s30 }
 0x233   : > { %1681 = vrot.lane.b32.xlu1 %v1607_v41, %s4508_s30 }
 0x234   : > { %v1338_v46 = vpop.permute.xlu0 %1337  ;;  %v1489_v48 = vpop.permute.xlu2 %1488 }
 0x235   : > { %1403 = vst.msk [vmem:[#allocation3 + $0xf8] sm:$0xff] %vm1371_vm6, %v1338_v46  ;;  %v1469_v47 = vpop.permute.xlu1 %1468  ;;  %v1802_v46 = vld [vmem:[#allocation2 + $0xc2] sm:$0xff] }
 0x236   : > { %1565 = vst.msk [vmem:[#allocation3] sm:$0xff] %vm1564_vm7, %v1469_v47  ;;  %v1804_v47 = vld [vmem:[#allocation2 + $0xda] sm:$0xff] }
 0x237   : > { %1575 = vst.msk [vmem:[#allocation3 + $0x50] sm:$0xff] %vm1564_vm7, %v1489_v48  ;;  %v1803_v48 = vld [vmem:[#allocation2 + $0xca] sm:$0xff] }
 0x23a   : > { %1685 = vrot.lane.b32.xlu0 %v1609_v52, %s4508_s30  ;;  %1689 = vrot.lane.b32.xlu2 %v1611_v54, %s4508_s30 }
 0x23b   : > { %1687 = vrot.lane.b32.xlu1 %v1610_v53, %s4508_s30 }
 0x23c   : > { %v1473_v55 = vpop.permute.xlu0 %1472  ;;  %v1495_v57 = vpop.permute.xlu2 %1494 }
 0x23d   : > { %1567 = vst.msk [vmem:[#allocation3 + $0x10] sm:$0xff] %vm1564_vm7, %v1473_v55  ;;  %v1475_v56 = vpop.permute.xlu1 %1474  ;;  %v1805_v55 = vld [vmem:[#allocation2 + $0xe2] sm:$0xff] }
 0x23e   : > { %1568 = vst.msk [vmem:[#allocation3 + $0x18] sm:$0xff] %vm1564_vm7, %v1475_v56  ;;  %v1807_v56 = vld [vmem:[#allocation2 + $0xfa] sm:$0xff] }
 0x23f   : > { %1578 = vst.msk [vmem:[#allocation3 + $0x68] sm:$0xff] %vm1564_vm7, %v1495_v57  ;;  %v1806_v57 = vld [vmem:[#allocation2 + $0xf2] sm:$0xff] }
 0x242   : > { %1691 = vrot.lane.b32.xlu0 %v1612_v61, %s4508_s30  ;;  %1695 = vrot.lane.b32.xlu2 %v1614_v63, %s4508_s30 }
 0x243   : > { %1693 = vrot.lane.b32.xlu1 %v1613_v62, %s4508_s30 }
 0x244   : > { %v1479_v2 = vpop.permute.xlu0 %1478  ;;  %v1501_v5 = vpop.permute.xlu2 %1500 }
 0x245   : > { %1570 = vst.msk [vmem:[#allocation3 + $0x28] sm:$0xff] %vm1564_vm7, %v1479_v2  ;;  %v1481_v51 = vpop.permute.xlu1 %1480  ;;  %v1808_v2 = vld [vmem:[#allocation2 + $0x10a] sm:$0xff] }
 0x246   : > { %1571 = vst.msk [vmem:[#allocation3 + $0x30] sm:$0xff] %vm1564_vm7, %v1481_v51  ;;  %v1810_v51 = vld [vmem:[#allocation2 + $0x122] sm:$0xff] }
 0x247   : > { %1581 = vst.msk [vmem:[#allocation3 + $0x80] sm:$0xff] %vm1564_vm7, %v1501_v5  ;;  %v1809_v5 = vld [vmem:[#allocation2 + $0x112] sm:$0xff] }
 0x24a   : > { %1697 = vrot.lane.b32.xlu0 %v1615_v39, %s4508_s30  ;;  %1701 = vrot.lane.b32.xlu2 %v1617_v18, %s4508_s30 }
 0x24b   : > { %1699 = vrot.lane.b32.xlu1 %v1616_v6, %s4508_s30 }
 0x24c   : > { %v1485_v44 = vpop.permute.xlu0 %1484  ;;  %v1507_v60 = vpop.permute.xlu2 %1506 }
 0x24d   : > { %1573 = vst.msk [vmem:[#allocation3 + $0x40] sm:$0xff] %vm1564_vm7, %v1485_v44  ;;  %v1487_v7 = vpop.permute.xlu1 %1486  ;;  %v1812_v44 = vld [vmem:[#allocation2 + $0x13a] sm:$0xff] }
 0x24e   : > { %1574 = vst.msk [vmem:[#allocation3 + $0x48] sm:$0xff] %vm1564_vm7, %v1487_v7 }
 0x24f   : > { %1584 = vst.msk [vmem:[#allocation3 + $0x98] sm:$0xff] %vm1564_vm7, %v1507_v60 }
 0x252   : > { %1703 = vrot.lane.b32.xlu0 %v1618_v45, %s4508_s30  ;;  %1707 = vrot.lane.b32.xlu2 %v1620_v16, %s4508_s30  ;;  %v1813_v16 = vld [vmem:[#allocation2 + $0x142] sm:$0xff] }
 0x253   : > { %1705 = vrot.lane.b32.xlu1 %v1619_v37, %s4508_s30  ;;  %v2019_v37 = vld [vmem:[%s6871_s1 + $0x20] sm:$0xf] }
 0x254   : > { %v1491_v50 = vpop.permute.xlu0 %1490  ;;  %v1513_v15 = vpop.permute.xlu2 %1512  ;;  %4395 = vmatpush.msk.msra.mxu0 %vm2121_vm9, %v2019_v37  ;;  %4465 = vmatpush.msk.msra.mxu2 %vm2121_vm9, %v2019_v37 }
 0x255   : > { %1576 = vst.msk [vmem:[#allocation3 + $0x58] sm:$0xff] %vm1564_vm7, %v1491_v50  ;;  %v1493_v22 = vpop.permute.xlu1 %1492 }
 0x256   : > { %1577 = vst.msk [vmem:[#allocation3 + $0x60] sm:$0xff] %vm1564_vm7, %v1493_v22 }
 0x257   : > { %1587 = vst.msk [vmem:[#allocation3 + $0xb0] sm:$0xff] %vm1564_vm7, %v1513_v15 }
 0x25a   : > { %1709 = vrot.lane.b32.xlu0 %v1621_v13, %s4508_s30  ;;  %1713 = vrot.lane.b32.xlu2 %v5375_v4, %s4508_s30  ;;  %v2018_v13 = vld [vmem:[%s6871_s1 + $0x18] sm:$0xff] }
 0x25b   : > { %1711 = vrot.lane.b32.xlu1 %v1622_v21, %s4508_s30  ;;  %v2017_v21 = vld [vmem:[%s6871_s1 + $0x10] sm:$0xff]  ;;  %2137 = vmatpush.msra.mxu0 %v2018_v13 }
 0x25c   : > { %v1497_v0 = vpop.permute.xlu0 %1496  ;;  %v1519_v26 = vpop.permute.xlu2 %1518  ;;  %4466 = vmatpush.msra.mxu2 %v2018_v13 }
 0x25d   : > { %1579 = vst.msk [vmem:[#allocation3 + $0x70] sm:$0xff] %vm1564_vm7, %v1497_v0  ;;  %v1499_v31 = vpop.permute.xlu1 %1498  ;;  %v1811_v0 = vld [vmem:[#allocation2 + $0x12a] sm:$0xff]  ;;  %2138 = vmatpush.msra.mxu0 %v2017_v21 }
 0x25e   : > { %1580 = vst.msk [vmem:[#allocation3 + $0x78] sm:$0xff] %vm1564_vm7, %v1499_v31  ;;  %4467 = vmatpush.msra.mxu2 %v2017_v21  ;;  %v2015_v31 = vld [vmem:[%s6871_s1] sm:$0xff] }
 0x25f   : > { %1590 = vst.msk [vmem:[#allocation3 + $0xc8] sm:$0xff] %vm1564_vm7, %v1519_v26  ;;  %v2016_v26 = vld [vmem:[%s6871_s1 + $0x8] sm:$0xff]  ;;  %v356_v21 = vld [vmem:[#allocation2 + $0x1a7] sm:$0x1] }
 0x260   : > { %2139 = vmatpush.msra.mxu0 %v2016_v26  ;;  %4468 = vmatpush.msra.mxu2 %v2016_v26  ;;  %374 = vst.msk [vmem:[#allocation2 + $0x1a9] sm:$0x1] %vm320_vm1, %v356_v21 }
 0x262   : > { %1715 = vrot.lane.b32.xlu0 %v5396_v32, %s4508_s30  ;;  %1719 = vrot.lane.b32.xlu2 %v5233_v27, %s4508_s30 }
 0x263   : > { %1717 = vrot.lane.b32.xlu1 %v5230_v43, %s4508_s30  ;;  %2140 = vmatpush.msra.mxu0 %v2015_v31 }
 0x264   : > { %v1503_v4 = vpop.permute.xlu0 %1502  ;;  %v1525_v11 = vpop.permute.xlu2 %1524  ;;  %4469 = vmatpush.msra.mxu2 %v2015_v31 }
 0x265   : > { %1582 = vst.msk [vmem:[#allocation3 + $0x88] sm:$0xff] %vm1564_vm7, %v1503_v4  ;;  %v1505_v3 = vpop.permute.xlu1 %1504 }
 0x266   : > { %1583 = vst.msk [vmem:[#allocation3 + $0x90] sm:$0xff] %vm1564_vm7, %v1505_v3 }
 0x267   : > { %1593 = vst.msk [vmem:[#allocation3 + $0xe0] sm:$0xff] %vm1564_vm7, %v1525_v11 }
 0x26a   : > { %1721 = vrot.lane.b32.xlu0 %v1627_v49, %s4508_s30  ;;  %1854 = vrot.lane.b32.xlu2 %v1790_v8, %s4509_s6  ;;  %v1815_v49 = vld [vmem:[#allocation2 + $0x15a] sm:$0xff] }
 0x26b   : > { %1723 = vrot.lane.b32.xlu1 %v1628_v33, %s4508_s30 }
 0x26c   : > { %v1509_v43 = vpop.permute.xlu0 %1508  ;;  %v1531_v27 = vpop.permute.xlu2 %1530 }
 0x26d   : > { %1585 = vst.msk [vmem:[#allocation3 + $0xa0] sm:$0xff] %vm1564_vm7, %v1509_v43  ;;  %v1511_v32 = vpop.permute.xlu1 %1510 }
 0x26e   : > { %1586 = vst.msk [vmem:[#allocation3 + $0xa8] sm:$0xff] %vm1564_vm7, %v1511_v32 }
 0x26f   : > { %1596 = vst.msk [vmem:[#allocation3 + $0xf8] sm:$0xff] %vm1564_vm7, %v1531_v27  ;;  %v1816_v27 = vld [vmem:[#allocation2 + $0x16a] sm:$0xff] }
 0x272   : > { %1856 = vrot.lane.b32.xlu0 %v1791_v12, %s4509_s6  ;;  %1860 = vrot.lane.b32.xlu2 %v5253_v9, %s4509_s6 }
 0x273   : > { %1858 = vrot.lane.b32.xlu1 %v1792_v59, %s4509_s6  ;;  %v1814_v59 = vld [vmem:[#allocation2 + $0x152] sm:$0xff] }
 0x274   : > { %v1515_v17 = vpop.permute.xlu0 %1514  ;;  %v1666_v19 = vpop.permute.xlu2 %1665 }
 0x275   : > { %1588 = vst.msk [vmem:[#allocation3 + $0xb8] sm:$0xff] %vm1564_vm7, %v1515_v17  ;;  %v1517_v14 = vpop.permute.xlu1 %1516 }
 0x276   : > { %1589 = vst.msk [vmem:[#allocation3 + $0xc0] sm:$0xff] %vm1564_vm7, %v1517_v14 }
 0x277   : > { %1760 = vst.msk [vmem:[#allocation3 + $0x10] sm:$0xff] %vm1757_vm8, %v1666_v19 }
 0x27a   : > { %1862 = vrot.lane.b32.xlu0 %v1794_v24, %s4509_s6  ;;  %1866 = vrot.lane.b32.xlu2 %v5264_v38, %s4509_s6 }
 0x27b   : > { %1864 = vrot.lane.b32.xlu1 %v1795_v1, %s4509_s6 }
 0x27c   : > { %v1521_v9 = vpop.permute.xlu0 %1520  ;;  %v1672_v20 = vpop.permute.xlu2 %1671 }
 0x27d   : > { %1591 = vst.msk [vmem:[#allocation3 + $0xd0] sm:$0xff] %vm1564_vm7, %v1521_v9  ;;  %v1523_v25 = vpop.permute.xlu1 %1522 }
 0x27e   : > { %1592 = vst.msk [vmem:[#allocation3 + $0xd8] sm:$0xff] %vm1564_vm7, %v1523_v25 }
 0x27f   : > { %1763 = vst.msk [vmem:[#allocation3 + $0x28] sm:$0xff] %vm1757_vm8, %v1672_v20 }
 0x282   : > { %1868 = vrot.lane.b32.xlu0 %v1797_v23, %s4509_s6  ;;  %1872 = vrot.lane.b32.xlu2 %v1799_v34, %s4509_s6  ;;  %v1817_v23 = vld [vmem:[#allocation2 + $0x172] sm:$0xff] }
 0x283   : > { %1870 = vrot.lane.b32.xlu1 %v1798_v28, %s4509_s6 }
 0x284   : > { %v1527_v30 = vpop.permute.xlu0 %1526  ;;  %v1678_v29 = vpop.permute.xlu2 %1677 }
 0x285   : > { %1594 = vst.msk [vmem:[#allocation3 + $0xe8] sm:$0xff] %vm1564_vm7, %v1527_v30  ;;  %v1529_v38 = vpop.permute.xlu1 %1528 }
 0x286   : > { %1595 = vst.msk [vmem:[#allocation3 + $0xf0] sm:$0xff] %vm1564_vm7, %v1529_v38 }
 0x287   : > { %1766 = vst.msk [vmem:[#allocation3 + $0x40] sm:$0xff] %vm1757_vm8, %v1678_v29 }
 0x28a   : > { %1874 = vrot.lane.b32.xlu0 %v1800_v36, %s4509_s6  ;;  %1878 = vrot.lane.b32.xlu2 %v1802_v46, %s4509_s6 }
 0x28b   : > { %1876 = vrot.lane.b32.xlu1 %v1801_v35, %s4509_s6 }
 0x28c   : > { %v1662_v40 = vpop.permute.xlu0 %1661  ;;  %v1684_v42 = vpop.permute.xlu2 %1683 }
 0x28d   : > { %1758 = vst.msk [vmem:[#allocation3] sm:$0xff] %vm1757_vm8, %v1662_v40  ;;  %v1664_v41 = vpop.permute.xlu1 %1663 }
 0x28e   : > { %1759 = vst.msk [vmem:[#allocation3 + $0x8] sm:$0xff] %vm1757_vm8, %v1664_v41 }
 0x28f   : > { %1769 = vst.msk [vmem:[#allocation3 + $0x58] sm:$0xff] %vm1757_vm8, %v1684_v42 }
 0x292   : > { %1880 = vrot.lane.b32.xlu0 %v1803_v48, %s4509_s6  ;;  %1884 = vrot.lane.b32.xlu2 %v1805_v55, %s4509_s6 }
 0x293   : > { %1882 = vrot.lane.b32.xlu1 %v1804_v47, %s4509_s6 }
 0x294   : > { %v1668_v52 = vpop.permute.xlu0 %1667  ;;  %v1690_v54 = vpop.permute.xlu2 %1689 }
 0x295   : > { %1761 = vst.msk [vmem:[#allocation3 + $0x18] sm:$0xff] %vm1757_vm8, %v1668_v52  ;;  %v1670_v53 = vpop.permute.xlu1 %1669 }
 0x296   : > { %1762 = vst.msk [vmem:[#allocation3 + $0x20] sm:$0xff] %vm1757_vm8, %v1670_v53 }
 0x297   : > { %1772 = vst.msk [vmem:[#allocation3 + $0x70] sm:$0xff] %vm1757_vm8, %v1690_v54 }
 0x29a   : > { %1886 = vrot.lane.b32.xlu0 %v1806_v57, %s4509_s6  ;;  %1890 = vrot.lane.b32.xlu2 %v1808_v2, %s4509_s6 }
 0x29b   : > { %1888 = vrot.lane.b32.xlu1 %v1807_v56, %s4509_s6 }
 0x29c   : > { %v1674_v61 = vpop.permute.xlu0 %1673  ;;  %v1696_v63 = vpop.permute.xlu2 %1695 }
 0x29d   : > { %1764 = vst.msk [vmem:[#allocation3 + $0x30] sm:$0xff] %vm1757_vm8, %v1674_v61  ;;  %v1676_v62 = vpop.permute.xlu1 %1675 }
 0x29e   : > { %1765 = vst.msk [vmem:[#allocation3 + $0x38] sm:$0xff] %vm1757_vm8, %v1676_v62 }
 0x29f   : > { %1775 = vst.msk [vmem:[#allocation3 + $0x88] sm:$0xff] %vm1757_vm8, %v1696_v63 }
 0x2a2   : > { %1892 = vrot.lane.b32.xlu0 %v1809_v5, %s4509_s6  ;;  %1896 = vrot.lane.b32.xlu2 %v1811_v0, %s4509_s6 }
 0x2a3   : > { %1894 = vrot.lane.b32.xlu1 %v1810_v51, %s4509_s6 }
 0x2a4   : > { %v1680_v39 = vpop.permute.xlu0 %1679  ;;  %v1702_v18 = vpop.permute.xlu2 %1701 }
 0x2a5   : > { %1767 = vst.msk [vmem:[#allocation3 + $0x48] sm:$0xff] %vm1757_vm8, %v1680_v39  ;;  %v1682_v6 = vpop.permute.xlu1 %1681 }
 0x2a6   : > { %1768 = vst.msk [vmem:[#allocation3 + $0x50] sm:$0xff] %vm1757_vm8, %v1682_v6 }
 0x2a7   : > { %1778 = vst.msk [vmem:[#allocation3 + $0xa0] sm:$0xff] %vm1757_vm8, %v1702_v18 }
 0x2aa   : > { %1898 = vrot.lane.b32.xlu0 %v1812_v44, %s4509_s6  ;;  %1902 = vrot.lane.b32.xlu2 %v1814_v59, %s4509_s6 }
 0x2ab   : > { %1900 = vrot.lane.b32.xlu1 %v1813_v16, %s4509_s6 }
 0x2ac   : > { %v1686_v60 = vpop.permute.xlu0 %1685  ;;  %v1708_v7 = vpop.permute.xlu2 %1707 }
 0x2ad   : > { %1770 = vst.msk [vmem:[#allocation3 + $0x60] sm:$0xff] %vm1757_vm8, %v1686_v60  ;;  %v1688_v45 = vpop.permute.xlu1 %1687 }
 0x2ae   : > { %1771 = vst.msk [vmem:[#allocation3 + $0x68] sm:$0xff] %vm1757_vm8, %v1688_v45 }
 0x2af   : > { %1781 = vst.msk [vmem:[#allocation3 + $0xb8] sm:$0xff] %vm1757_vm8, %v1708_v7 }
 0x2b2   : > { %1904 = vrot.lane.b32.xlu0 %v1815_v49, %s4509_s6  ;;  %1908 = vrot.lane.b32.xlu2 %v1817_v23, %s4509_s6 }
 0x2b3   : > { %1906 = vrot.lane.b32.xlu1 %v1816_v27, %s4509_s6 }
 0x2b4   : > { %v1692_v50 = vpop.permute.xlu0 %1691  ;;  %v1714_v15 = vpop.permute.xlu2 %1713 }
 0x2b5   : > { %1773 = vst.msk [vmem:[#allocation3 + $0x78] sm:$0xff] %vm1757_vm8, %v1692_v50  ;;  %v1694_v22 = vpop.permute.xlu1 %1693 }
 0x2b6   : > { %1774 = vst.msk [vmem:[#allocation3 + $0x80] sm:$0xff] %vm1757_vm8, %v1694_v22 }
 0x2b7   : > { %1784 = vst.msk [vmem:[#allocation3 + $0xd0] sm:$0xff] %vm1757_vm8, %v1714_v15 }
 0x2ba   : > { %1910 = vrot.lane.b32.xlu0 %v5330_v58, %s4509_s6 }
 0x2bb   : > { %1912 = vrot.lane.b32.xlu1 %v5340_v10, %s4509_s6 }
 0x2bc   : > { %v1698_v4 = vpop.permute.xlu0 %1697  ;;  %v1720_v11 = vpop.permute.xlu2 %1719 }
 0x2bd   : > { %1776 = vst.msk [vmem:[#allocation3 + $0x90] sm:$0xff] %vm1757_vm8, %v1698_v4  ;;  %v1700_v3 = vpop.permute.xlu1 %1699  ;;  %v1821_v4 = vld [vmem:[#allocation2 + $0x1a2] sm:$0xff] }
 0x2be   : > { %1777 = vst.msk [vmem:[#allocation3 + $0x98] sm:$0xff] %vm1757_vm8, %v1700_v3 }
 0x2bf   : > { %1787 = vst.msk [vmem:[#allocation3 + $0xe8] sm:$0xff] %vm1757_vm8, %v1720_v11  ;;  %v5645_v11 = vld [vmem:[%s6872_s2] ss:$0 sm:$0xff] }
 0x2c2   : > { %1916 = vrot.lane.b32.xlu0 %v1821_v4, %s4509_s6 }
 0x2c4   : > { %v1704_v8 = vpop.permute.xlu0 %1703  ;;  %v1855_v33 = vpop.permute.xlu2 %1854 }
 0x2c5   : > { %1779 = vst.msk [vmem:[#allocation3 + $0xa8] sm:$0xff] %vm1757_vm8, %v1704_v8  ;;  %v1706_v43 = vpop.permute.xlu1 %1705 }
 0x2c6   : > { %1780 = vst.msk [vmem:[#allocation3 + $0xb0] sm:$0xff] %vm1757_vm8, %v1706_v43 }
 0x2c7   : > { %1951 = vst.msk [vmem:[#allocation3] sm:$0xff] %vm1950_vm10, %v1855_v33 }
 0x2cc   : > { %v1710_v32 = vpop.permute.xlu0 %1709  ;;  %v1861_v58 = vpop.permute.xlu2 %1860 }
 0x2cd   : > { %1782 = vst.msk [vmem:[#allocation3 + $0xc0] sm:$0xff] %vm1757_vm8, %v1710_v32  ;;  %v1712_v12 = vpop.permute.xlu1 %1711 }
 0x2ce   : > { %1783 = vst.msk [vmem:[#allocation3 + $0xc8] sm:$0xff] %vm1757_vm8, %v1712_v12  ;;  %v1983_v17 = vld [vmem:[#allocation3] sm:$0xff] }
 0x2cf   : > { %4396 = vmatmul.msk.f32.vlgmr.msra.gmra.mxu0 %vm2024_vm11, %v1983_v17  ;;  %1954 = vst.msk [vmem:[#allocation3 + $0x18] sm:$0xff] %vm1950_vm10, %v1861_v58 }
 0x2d4   : > { %v1716_v19 = vpop.permute.xlu0 %1715  ;;  %v1867_v1 = vpop.permute.xlu2 %1866 }
 0x2d5   : > { %1785 = vst.msk [vmem:[#allocation3 + $0xd8] sm:$0xff] %vm1757_vm8, %v1716_v19  ;;  %v1718_v14 = vpop.permute.xlu1 %1717 }
 0x2d6   : > { %1786 = vst.msk [vmem:[#allocation3 + $0xe0] sm:$0xff] %vm1757_vm8, %v1718_v14  ;;  %v1986_v42 = vld [vmem:[#allocation3 + $0x18] sm:$0xff] }
 0x2d7   : > { %1957 = vst.msk [vmem:[#allocation3 + $0x30] sm:$0xff] %vm1950_vm10, %v1867_v1 }
 0x2dc   : > { %v1722_v24 = vpop.permute.xlu0 %1721  ;;  %v1873_v20 = vpop.permute.xlu2 %1872 }
 0x2dd   : > { %1788 = vst.msk [vmem:[#allocation3 + $0xf0] sm:$0xff] %vm1757_vm8, %v1722_v24  ;;  %v1724_v9 = vpop.permute.xlu1 %1723 }
 0x2de   : > { %1789 = vst.msk [vmem:[#allocation3 + $0xf8] sm:$0xff] %vm1757_vm8, %v1724_v9  ;;  %v1989_v61 = vld [vmem:[#allocation3 + $0x30] sm:$0xff] }
 0x2df   : > { %1960 = vst.msk [vmem:[#allocation3 + $0x48] sm:$0xff] %vm1950_vm10, %v1873_v20  ;;  %v1820_v9 = vld [vmem:[#allocation2 + $0x19a] sm:$0xff] }
 0x2e0   : > { %1914 = vrot.lane.b32.xlu2 %v1820_v9, %s4509_s6 }
 0x2e4   : > { %v1857_v10 = vpop.permute.xlu0 %1856  ;;  %v1879_v29 = vpop.permute.xlu2 %1878 }
 0x2e5   : > { %1952 = vst.msk [vmem:[#allocation3 + $0x8] sm:$0xff] %vm1950_vm10, %v1857_v10  ;;  %v1859_v25 = vpop.permute.xlu1 %1858 }
 0x2e6   : > { %1953 = vst.msk [vmem:[#allocation3 + $0x10] sm:$0xff] %vm1950_vm10, %v1859_v25  ;;  %v1992_v45 = vld [vmem:[#allocation3 + $0x48] sm:$0xff] }
 0x2e7   : > { %1963 = vst.msk [vmem:[#allocation3 + $0x60] sm:$0xff] %vm1950_vm10, %v1879_v29 }
 0x2ec   : > { %v1863_v28 = vpop.permute.xlu0 %1862  ;;  %v1984_v30 = vld [vmem:[#allocation3 + $0x8] sm:$0xff]  ;;  %v1885_v35 = vpop.permute.xlu2 %1884 }
 0x2ed   : > { %1955 = vst.msk [vmem:[#allocation3 + $0x20] sm:$0xff] %vm1950_vm10, %v1863_v28  ;;  %4397 = vmatmul.msk.f32.gmra.mxu0 %vm2024_vm11, %v1984_v30  ;;  %v1865_v38 = vpop.permute.xlu1 %1864  ;;  %v1985_v34 = vld [vmem:[#allocation3 + $0x10] sm:$0xff] }
 0x2ee   : > { %1956 = vst.msk [vmem:[#allocation3 + $0x28] sm:$0xff] %vm1950_vm10, %v1865_v38  ;;  %v1995_v31 = vld [vmem:[#allocation3 + $0x60] sm:$0xff] }
 0x2ef   : > { %1966 = vst.msk [vmem:[#allocation3 + $0x78] sm:$0xff] %vm1950_vm10, %v1885_v35 }
 0x2f4   : > { %v1869_v36 = vpop.permute.xlu0 %1868  ;;  %v1891_v46 = vpop.permute.xlu2 %1890  ;;  %v1987_v52 = vld [vmem:[#allocation3 + $0x20] sm:$0xff] }
 0x2f5   : > { %1958 = vst.msk [vmem:[#allocation3 + $0x38] sm:$0xff] %vm1950_vm10, %v1869_v36  ;;  %4398 = vmatmul.msk.f32.gmra.mxu0 %vm2024_vm11, %v1985_v34  ;;  %v1871_v40 = vpop.permute.xlu1 %1870  ;;  %v1988_v55 = vld [vmem:[#allocation3 + $0x28] sm:$0xff] }
 0x2f6   : > { %1959 = vst.msk [vmem:[#allocation3 + $0x40] sm:$0xff] %vm1950_vm10, %v1871_v40  ;;  %v1998_v14 = vld [vmem:[#allocation3 + $0x78] sm:$0xff] }
 0x2f7   : > { %1969 = vst.msk [vmem:[#allocation3 + $0x90] sm:$0xff] %vm1950_vm10, %v1891_v46 }
 0x2fc   : > { %v1875_v41 = vpop.permute.xlu0 %1874  ;;  %v1897_v56 = vpop.permute.xlu2 %1896  ;;  %v1990_v51 = vld [vmem:[#allocation3 + $0x38] sm:$0xff] }
 0x2fd   : > { %1961 = vst.msk [vmem:[#allocation3 + $0x50] sm:$0xff] %vm1950_vm10, %v1875_v41  ;;  %4399 = vmatmul.msk.f32.gmra.mxu0 %vm2024_vm11, %v1986_v42  ;;  %v1877_v48 = vpop.permute.xlu1 %1876  ;;  %v1991_v44 = vld [vmem:[#allocation3 + $0x40] sm:$0xff] }
 0x2fe   : > { %1962 = vst.msk [vmem:[#allocation3 + $0x58] sm:$0xff] %vm1950_vm10, %v1877_v48  ;;  %v2001_v6 = vld [vmem:[#allocation3 + $0x90] sm:$0xff] }
 0x2ff   : > { %1972 = vst.msk [vmem:[#allocation3 + $0xa8] sm:$0xff] %vm1950_vm10, %v1897_v56 }
 0x304   : > { %v1881_v47 = vpop.permute.xlu0 %1880  ;;  %v1903_v60 = vpop.permute.xlu2 %1902  ;;  %v1993_v50 = vld [vmem:[#allocation3 + $0x50] sm:$0xff] }
 0x305   : > { %1964 = vst.msk [vmem:[#allocation3 + $0x68] sm:$0xff] %vm1950_vm10, %v1881_v47  ;;  %4400 = vmatmul.msk.f32.gmra.mxu0 %vm2024_vm11, %v1987_v52  ;;  %v1883_v54 = vpop.permute.xlu1 %1882  ;;  %v1994_v13 = vld [vmem:[#allocation3 + $0x58] sm:$0xff] }
 0x306   : > { %1965 = vst.msk [vmem:[#allocation3 + $0x70] sm:$0xff] %vm1950_vm10, %v1883_v54  ;;  %v2004_v22 = vld [vmem:[#allocation3 + $0xa8] sm:$0xff] }
 0x307   : > { %1975 = vst.msk [vmem:[#allocation3 + $0xc0] sm:$0xff] %vm1950_vm10, %v1903_v60 }
 0x30c   : > { %v1887_v53 = vpop.permute.xlu0 %1886  ;;  %v1909_v0 = vpop.permute.xlu2 %1908  ;;  %v1996_v49 = vld [vmem:[#allocation3 + $0x68] sm:$0xff] }
 0x30d   : > { %1967 = vst.msk [vmem:[#allocation3 + $0x80] sm:$0xff] %vm1950_vm10, %v1887_v53  ;;  %4401 = vmatmul.msk.f32.gmra.mxu0 %vm2024_vm11, %v1988_v55  ;;  %v1889_v57 = vpop.permute.xlu1 %1888  ;;  %v1997_v12 = vld [vmem:[#allocation3 + $0x70] sm:$0xff] }
 0x30e   : > { %1968 = vst.msk [vmem:[#allocation3 + $0x88] sm:$0xff] %vm1950_vm10, %v1889_v57  ;;  %v2007_v32 = vld [vmem:[#allocation3 + $0xc0] sm:$0xff] }
 0x30f   : > { %1978 = vst.msk [vmem:[#allocation3 + $0xd8] sm:$0xff] %vm1950_vm10, %v1909_v0 }
 0x314   : > { %v1999_v63 = vld [vmem:[#allocation3 + $0x80] sm:$0xff]  ;;  %v1893_v62 = vpop.permute.xlu0 %1892 }
 0x315   : > { %4402 = vmatmul.msk.f32.gmra.mxu0 %vm2024_vm11, %v1989_v61  ;;  %4412 = vmatmul.msk.f32.vlgmr.msra.gmra.mxu2 %vm2024_vm11, %v1999_v63  ;;  %1970 = vst.msk [vmem:[#allocation3 + $0x98] sm:$0xff] %vm1950_vm10, %v1893_v62  ;;  %v1895_v2 = vpop.permute.xlu1 %1894  ;;  %v2000_v5 = vld [vmem:[#allocation3 + $0x88] sm:$0xff] }
 0x316   : > { %1971 = vst.msk [vmem:[#allocation3 + $0xa0] sm:$0xff] %vm1950_vm10, %v1895_v2  ;;  %v2010_v20 = vld [vmem:[#allocation3 + $0xd8] sm:$0xff] }
 0x31c   : > { %v1899_v39 = vpop.permute.xlu0 %1898  ;;  %v2002_v7 = vld [vmem:[#allocation3 + $0x98] sm:$0xff] }
 0x31d   : > { %4403 = vmatmul.msk.f32.gmra.mxu0 %vm2024_vm11, %v1990_v51  ;;  %4413 = vmatmul.msk.f32.gmra.mxu2 %vm2024_vm11, %v2000_v5  ;;  %1973 = vst.msk [vmem:[#allocation3 + $0xb0] sm:$0xff] %vm1950_vm10, %v1899_v39  ;;  %v1901_v18 = vpop.permute.xlu1 %1900  ;;  %v2003_v37 = vld [vmem:[#allocation3 + $0xa0] sm:$0xff] }
 0x31e   : > { %1974 = vst.msk [vmem:[#allocation3 + $0xb8] sm:$0xff] %vm1950_vm10, %v1901_v18 }
 0x324   : > { %v1905_v16 = vpop.permute.xlu0 %1904  ;;  %v2005_v26 = vld [vmem:[#allocation3 + $0xb0] sm:$0xff] }
 0x325   : > { %4404 = vmatmul.msk.f32.gmra.mxu0 %vm2024_vm11, %v1991_v44  ;;  %4414 = vmatmul.msk.f32.gmra.mxu2 %vm2024_vm11, %v2001_v6  ;;  %1976 = vst.msk [vmem:[#allocation3 + $0xc8] sm:$0xff] %vm1950_vm10, %v1905_v16  ;;  %v1907_v15 = vpop.permute.xlu1 %1906  ;;  %v2006_v3 = vld [vmem:[#allocation3 + $0xb8] sm:$0xff] }
 0x326   : > { %1977 = vst.msk [vmem:[#allocation3 + $0xd0] sm:$0xff] %vm1950_vm10, %v1907_v15 }
 0x32c   : > { %v1911_v33 = vpop.permute.xlu0 %1910  ;;  %v2008_v58 = vld [vmem:[#allocation3 + $0xc8] sm:$0xff] }
 0x32d   : > { %4405 = vmatmul.msk.f32.gmra.mxu0 %vm2024_vm11, %v1992_v45  ;;  %4415 = vmatmul.msk.f32.gmra.mxu2 %vm2024_vm11, %v2002_v7  ;;  %1979 = vst.msk [vmem:[#allocation3 + $0xe0] sm:$0xff] %vm1950_vm10, %v1911_v33  ;;  %v1913_v59 = vpop.permute.xlu1 %1912  ;;  %v2009_v1 = vld [vmem:[#allocation3 + $0xd0] sm:$0xff] }
 0x32e   : > { %1980 = vst.msk [vmem:[#allocation3 + $0xe8] sm:$0xff] %vm1950_vm10, %v1913_v59 }
 0x334   : > { %v2011_v30 = vld [vmem:[#allocation3 + $0xe0] sm:$0xff] }
 0x335   : > { %4406 = vmatmul.msk.f32.gmra.mxu0 %vm2024_vm11, %v1993_v50  ;;  %4416 = vmatmul.msk.f32.gmra.mxu2 %vm2024_vm11, %v2003_v37  ;;  %v2012_v40 = vld [vmem:[#allocation3 + $0xe8] sm:$0xff] }
 0x33d   : > { %4407 = vmatmul.msk.f32.gmra.mxu0 %vm2024_vm11, %v1994_v13  ;;  %4417 = vmatmul.msk.f32.gmra.mxu2 %vm2024_vm11, %v2004_v22 }
 0x345   : > { %4408 = vmatmul.msk.f32.gmra.mxu0 %vm2024_vm11, %v1995_v31  ;;  %4418 = vmatmul.msk.f32.gmra.mxu2 %vm2024_vm11, %v2005_v26 }
 0x34c   : > { %v2142_v8 = vpop.f32.mrf.mxu0 }
 0x34d   : > { %4409 = vmatmul.msk.f32.gmra.mxu0 %vm2024_vm11, %v1996_v49  ;;  %4419 = vmatmul.msk.f32.gmra.mxu2 %vm2024_vm11, %v2006_v3  ;;  %v2143_v43 = vadd.f32 %v5645_v11, %v2142_v8 }
 0x34f   : > { %v2238_v27 = vmax.f32 %v2143_v43, 0.0 }
 0x351   : > { %2270 = vst.msk [vmem:[#allocation2 + $0x19] sm:$0xff] %vm258_vm0, %v2238_v27 }
 0x355   : > { %4410 = vmatmul.msk.f32.gmra.mxu0 %vm2024_vm11, %v1997_v12  ;;  %4420 = vmatmul.msk.f32.gmra.mxu2 %vm2024_vm11, %v2007_v32 }
 0x358   : > { %v2448_v17 = vld [vmem:[#allocation2 + $0x19] sm:$0xff] }
 0x359   : > { %v2311_v19 = vld [vmem:[#allocation2 + $0x1a] sm:$0x1]  ;;  %2514 = vrot.lane.b32.xlu0 %v2448_v17, %s4502_s24 }
 0x35a   : > { %2329 = vst.msk [vmem:[#allocation2 + $0x18] sm:$0x1] %vm320_vm1, %v2311_v19 }
 0x35d   : > { %4411 = vmatmul.msk.f32.gmra.mxu0 %vm2024_vm11, %v1998_v14  ;;  %4421 = vmatmul.msk.f32.gmra.mxu2 %vm2024_vm11, %v2008_v58 }
 0x361   : > { %v5659_v24 = vld [vmem:[#allocation2 + $0x18] sm:$0xff] }
 0x362   : > { %2416 = vst.msk [vmem:[#allocation3 + $0x10] sm:$0xff] %vm258_vm0, %v5659_v24 }
 0x365   : > { %4422 = vmatmul.msk.f32.gmra.mxu2 %vm2024_vm11, %v2009_v1 }
 0x36a   : > { %v2145_v10 = vpop.f32.mrf.mxu0 }
 0x36b   : > { %v2146_v25 = vadd.f32 %v5645_v11, %v2145_v10 }
 0x36d   : > { %v2239_v23 = vmax.f32 %v2146_v25, 0.0  ;;  %4423 = vmatmul.msk.f32.gmra.mxu2 %vm2024_vm11, %v2010_v20 }
 0x36f   : > { %2271 = vst.msk [vmem:[#allocation2 + $0x21] sm:$0xff] %vm258_vm0, %v2239_v23 }
 0x372   : > { %v2148_v28 = vpop.f32.mrf.mxu0 }
 0x373   : > { %v2149_v29 = vadd.f32 %v5645_v11, %v2148_v28 }
 0x375   : > { %v2240_v38 = vmax.f32 %v2149_v29, 0.0  ;;  %4424 = vmatmul.msk.f32.gmra.mxu2 %vm2024_vm11, %v2011_v30 }
 0x376   : > { %v5670_v34 = vld [vmem:[#allocation2 + $0x20] sm:$0xff] }
 0x377   : > { %2272 = vst.msk [vmem:[#allocation2 + $0x31] sm:$0xff] %vm258_vm0, %v2240_v38  ;;  %v2347_v36 = vld [vmem:[#allocation2 + $0x27] sm:$0x1] }
 0x378   : > { %2417 = vst.msk [vmem:[#allocation3 + $0x18] sm:$0xff] %vm258_vm0, %v5670_v34  ;;  %v2449_v51 = vld [vmem:[#allocation2 + $0x21] sm:$0xff] }
 0x379   : > { %2365 = vst.msk [vmem:[#allocation2 + $0x29] sm:$0x1] %vm320_vm1, %v2347_v36 }
 0x37a   : > { %v2151_v35 = vpop.f32.mrf.mxu0 }
 0x37b   : > { %v2152_v42 = vadd.f32 %v5645_v11, %v2151_v35 }
 0x37d   : > { %v2241_v41 = vmax.f32 %v2152_v42, 0.0  ;;  %4425 = vmatmul.msk.f32.gmra.mxu2 %vm2024_vm11, %v2012_v40 }
 0x37e   : > { %v2302_v46 = vld [vmem:[#allocation2 + $0x31] sm:$0xff] }
 0x37f   : > { %v2312_v48 = vld [vmem:[#allocation2 + $0x32] sm:$0x1]  ;;  %2273 = vst.msk [vmem:[#allocation2 + $0x39] sm:$0xff] %vm258_vm0, %v2241_v41 }
 0x380   : > { %2304 = vst.msk [vmem:[#allocation2 + $0x1] sm:$0xff] %vm258_vm0, %v2302_v46 }
 0x381   : > { %2330 = vst.msk [vmem:[#allocation2 + $0x30] sm:$0x1] %vm320_vm1, %v2312_v48 }
 0x382   : > { %v2154_v47 = vpop.f32.mrf.mxu0 }
 0x383   : > { %v2155_v52 = vadd.f32 %v5645_v11, %v2154_v47 }
 0x385   : > { %v2242_v54 = vmax.f32 %v2155_v52, 0.0 }
 0x386   : > { %v2451_v53 = vld [vmem:[#allocation2 + $0x39] sm:$0xff] }
 0x387   : > { %2274 = vst.msk [vmem:[#allocation2 + $0x49] sm:$0xff] %vm258_vm0, %v2242_v54  ;;  %2520 = vrot.lane.b32.xlu0 %v2451_v53, %s4502_s24  ;;  %v2446_v55 = vld [vmem:[#allocation2 + $0x1] sm:$0xff]  ;;  %v5684_v57 = vld [vmem:[#allocation2 + $0x38] sm:$0xff] }
 0x388   : > { %2510 = vrot.lane.b32.xlu1 %v2446_v55, %s4502_s24  ;;  %2305 = vst.msk [vmem:[#allocation2 + $0x9] sm:$0xff] %vm258_vm0, %v2451_v53  ;;  %v5688_v56 = vld [vmem:[#allocation2 + $0x30] sm:$0xff]  ;;  %v2310_v61 = vld [vmem:[#allocation2 + $0x2] sm:$0x1]  ;;  %v2348_v63 = vld [vmem:[#allocation2 + $0x3f] sm:$0x1] }
 0x389   : > { %2418 = vst.msk [vmem:[#allocation3 + $0x20] sm:$0xff] %vm258_vm0, %v5688_v56 }
 0x38a   : > { %v2157_v62 = vpop.f32.mrf.mxu0  ;;  %2419 = vst.msk [vmem:[#allocation3 + $0x28] sm:$0xff] %vm258_vm0, %v5684_v57 }
 0x38b   : > { %v2158_v2 = vadd.f32 %v5645_v11, %v2157_v62  ;;  %2328 = vst.msk [vmem:[#allocation2] sm:$0x1] %vm320_vm1, %v2310_v61 }
 0x38c   : > { %2366 = vst.msk [vmem:[#allocation2 + $0x41] sm:$0x1] %vm320_vm1, %v2348_v63 }
 0x38d   : > { %v2243_v5 = vmax.f32 %v2158_v2, 0.0 }
 0x38e   : > { %v2313_v39 = vld [vmem:[#allocation2 + $0x4a] sm:$0x1] }
 0x38f   : > { %2275 = vst.msk [vmem:[#allocation2 + $0x51] sm:$0xff] %vm258_vm0, %v2243_v5  ;;  %v2447_v18 = vld [vmem:[#allocation2 + $0x9] sm:$0xff]  ;;  %v1917_v5 = vpop.permute.xlu0 %1916 }
 0x390   : > { %v2383_v6 = vld [vmem:[#allocation2 + $0x8] sm:$0xff]  ;;  %2512 = vrot.lane.b32.xlu2 %v2447_v18, %s4502_s24  ;;  %2516 = vrot.lane.b32.xlu1 %v2449_v51, %s4502_s24  ;;  %2331 = vst.msk [vmem:[#allocation2 + $0x48] sm:$0x1] %vm320_vm1, %v2313_v39 }
 0x391   : > { %v2346_v44 = vld [vmem:[#allocation2 + $0xf] sm:$0x1]  ;;  %2415 = vst.msk [vmem:[#allocation3 + $0x8] sm:$0xff] %vm258_vm0, %v2383_v6 }
 0x392   : > { %v2160_v60 = vpop.f32.mrf.mxu0  ;;  %v2382_v7 = vld [vmem:[#allocation2] sm:$0xff]  ;;  %2364 = vst.msk [vmem:[#allocation2 + $0x11] sm:$0x1] %vm320_vm1, %v2346_v44  ;;  %v2452_v50 = vld [vmem:[#allocation2 + $0x49] sm:$0xff] }
 0x393   : > { %v2161_v45 = vadd.f32 %v5645_v11, %v2160_v60  ;;  %2414 = vst.msk [vmem:[#allocation3] sm:$0xff] %vm258_vm0, %v2382_v7 }
 0x394   : > { %1982 = vst.msk [vmem:[#allocation3 + $0xf8] sm:$0xff] %vm1950_vm10, %v1917_v5 }
 0x395   : > { %v2244_v16 = vmax.f32 %v2161_v45, 0.0 }
 0x396   : > { %v5705_v37 = vld [vmem:[#allocation2 + $0x50] sm:$0xff] }
 0x397   : > { %2276 = vst.msk [vmem:[#allocation2 + $0x61] sm:$0xff] %vm258_vm0, %v2244_v16  ;;  %v2349_v15 = vld [vmem:[#allocation2 + $0x57] sm:$0x1]  ;;  %v5712_v13 = vld [vmem:[#allocation2 + $0x48] sm:$0xff] }
 0x398   : > { %2518 = vrot.lane.b32.xlu2 %v2302_v46, %s4502_s24  ;;  %2522 = vrot.lane.b32.xlu1 %v2452_v50, %s4502_s24  ;;  %v2190_v22 = vpop.f32.mrf.mxu2  ;;  %2421 = vst.msk [vmem:[#allocation3 + $0x38] sm:$0xff] %vm258_vm0, %v5705_v37  ;;  %v2453_v8 = vld [vmem:[#allocation2 + $0x51] sm:$0xff] }
 0x399   : > { %v2191_v21 = vadd.f32 %v5645_v11, %v2190_v22  ;;  %2420 = vst.msk [vmem:[#allocation3 + $0x30] sm:$0xff] %vm258_vm0, %v5712_v13  ;;  %v1915_v22 = vpop.permute.xlu2 %1914 }
 0x39a   : > { %v2163_v0 = vpop.f32.mrf.mxu0  ;;  %2367 = vst.msk [vmem:[#allocation2 + $0x59] sm:$0x1] %vm320_vm1, %v2349_v15 }
 0x39b   : > { %v2254_v26 = vmax.f32 %v2191_v21, 0.0  ;;  %v2164_v31 = vadd.f32 %v5645_v11, %v2163_v0  ;;  %1981 = vst.msk [vmem:[#allocation3 + $0xf0] sm:$0xff] %vm1950_vm10, %v1915_v22 }
 0x39d   : > { %2286 = vst.msk [vmem:[#allocation2 + $0xd9] sm:$0xff] %vm258_vm0, %v2254_v26  ;;  %v2245_v4 = vmax.f32 %v2164_v31, 0.0 }
 0x39e   : > { %v2454_v3 = vld [vmem:[#allocation2 + $0x61] sm:$0xff] }
 0x39f   : > { %v2314_v49 = vld [vmem:[#allocation2 + $0x62] sm:$0x1]  ;;  %2277 = vst.msk [vmem:[#allocation2 + $0x69] sm:$0xff] %vm258_vm0, %v2245_v4  ;;  %2526 = vrot.lane.b32.xlu0 %v2454_v3, %s4502_s24 }
 0x3a0   : > { %2524 = vrot.lane.b32.xlu2 %v2453_v8, %s4502_s24  ;;  %v2193_v33 = vpop.f32.mrf.mxu2  ;;  %2332 = vst.msk [vmem:[#allocation2 + $0x60] sm:$0x1] %vm320_vm1, %v2314_v49 }
 0x3a1   : > { %v2194_v43 = vadd.f32 %v5645_v11, %v2193_v33 }
 0x3a2   : > { %v2166_v27 = vpop.f32.mrf.mxu0 }
 0x3a3   : > { %v2255_v32 = vmax.f32 %v2194_v43, 0.0  ;;  %v2167_v12 = vadd.f32 %v5645_v11, %v2166_v27 }
 0x3a4   : > { %v2319_v59 = vld [vmem:[#allocation2 + $0xda] sm:$0x1] }
 0x3a5   : > { %2287 = vst.msk [vmem:[#allocation2 + $0xe1] sm:$0xff] %vm258_vm0, %v2255_v32  ;;  %v2246_v17 = vmax.f32 %v2167_v12, 0.0  ;;  %v5841_v5 = vld [vmem:[#allocation2 + $0xd9] sm:$0xff] }
 0x3a6   : > { %v2455_v19 = vld [vmem:[#allocation2 + $0x69] sm:$0xff]  ;;  %2337 = vst.msk [vmem:[#allocation2 + $0xd8] sm:$0x1] %vm320_vm1, %v2319_v59 }
 0x3a7   : > { %v5727_v58 = vld [vmem:[#allocation2 + $0x68] sm:$0xff]  ;;  %2278 = vst.msk [vmem:[#allocation2 + $0x79] sm:$0xff] %vm258_vm0, %v2246_v17  ;;  %2528 = vrot.lane.b32.xlu1 %v2455_v19, %s4502_s24  ;;  %v5732_v14 = vld [vmem:[#allocation2 + $0x60] sm:$0xff] }
 0x3a8   : > { %v2350_v1 = vld [vmem:[#allocation2 + $0x6f] sm:$0x1]  ;;  %v2196_v9 = vpop.f32.mrf.mxu2  ;;  %2422 = vst.msk [vmem:[#allocation3 + $0x40] sm:$0xff] %vm258_vm0, %v5732_v14 }
 0x3a9   : > { %v2197_v10 = vadd.f32 %v5645_v11, %v2196_v9  ;;  %2423 = vst.msk [vmem:[#allocation3 + $0x48] sm:$0xff] %vm258_vm0, %v5727_v58 }
 0x3aa   : > { %v2169_v20 = vpop.f32.mrf.mxu0  ;;  %2368 = vst.msk [vmem:[#allocation2 + $0x71] sm:$0x1] %vm320_vm1, %v2350_v1 }
 0x3ab   : > { %v2256_v25 = vmax.f32 %v2197_v10, 0.0  ;;  %v2170_v23 = vadd.f32 %v5645_v11, %v2169_v20 }
 0x3ac   : > { %v2355_v28 = vld [vmem:[#allocation2 + $0xe7] sm:$0x1] }
 0x3ad   : > { %2288 = vst.msk [vmem:[#allocation2 + $0xf1] sm:$0xff] %vm258_vm0, %v2256_v25  ;;  %v2247_v30 = vmax.f32 %v2170_v23, 0.0  ;;  %v5743_v36 = vld [vmem:[#allocation2 + $0xe0] sm:$0xff]  ;;  %v5747_v35 = vld [vmem:[#allocation2 + $0xd8] sm:$0xff] }
 0x3ae   : > { %v2456_v29 = vld [vmem:[#allocation2 + $0x79] sm:$0xff]  ;;  %2373 = vst.msk [vmem:[#allocation2 + $0xe9] sm:$0x1] %vm320_vm1, %v2355_v28  ;;  %v5864_v22 = vld [vmem:[#allocation2 + $0xe1] sm:$0xff] }
 0x3af   : > { %v2315_v38 = vld [vmem:[#allocation2 + $0x7a] sm:$0x1]  ;;  %2279 = vst.msk [vmem:[#allocation2 + $0x81] sm:$0xff] %vm258_vm0, %v2247_v30  ;;  %2530 = vrot.lane.b32.xlu2 %v2456_v29, %s4502_s24 }
 0x3b0   : > { %v2199_v40 = vpop.f32.mrf.mxu2  ;;  %2333 = vst.msk [vmem:[#allocation2 + $0x78] sm:$0x1] %vm320_vm1, %v2315_v38 }
 0x3b1   : > { %v2200_v42 = vadd.f32 %v5645_v11, %v2199_v40  ;;  %2433 = vst.msk [vmem:[#allocation3 + $0x98] sm:$0xff] %vm258_vm0, %v5743_v36 }
 0x3b2   : > { %v2172_v41 = vpop.f32.mrf.mxu0  ;;  %2432 = vst.msk [vmem:[#allocation3 + $0x90] sm:$0xff] %vm258_vm0, %v5747_v35 }
 0x3b3   : > { %v2257_v46 = vmax.f32 %v2200_v42, 0.0  ;;  %v2173_v48 = vadd.f32 %v5645_v11, %v2172_v41 }
 0x3b4   : > { %v2320_v47 = vld [vmem:[#allocation2 + $0xf2] sm:$0x1] }
 0x3b5   : > { %2289 = vst.msk [vmem:[#allocation2 + $0xf9] sm:$0xff] %vm258_vm0, %v2257_v46  ;;  %v2248_v52 = vmax.f32 %v2173_v48, 0.0 }
 0x3b6   : > { %v2457_v54 = vld [vmem:[#allocation2 + $0x81] sm:$0xff]  ;;  %2338 = vst.msk [vmem:[#allocation2 + $0xf0] sm:$0x1] %vm320_vm1, %v2320_v47 }
 0x3b7   : > { %v5757_v53 = vld [vmem:[#allocation2 + $0x80] sm:$0xff]  ;;  %2280 = vst.msk [vmem:[#allocation2 + $0x91] sm:$0xff] %vm258_vm0, %v2248_v52  ;;  %2532 = vrot.lane.b32.xlu0 %v2457_v54, %s4502_s24  ;;  %v5762_v55 = vld [vmem:[#allocation2 + $0x78] sm:$0xff] }
 0x3b8   : > { %v2351_v61 = vld [vmem:[#allocation2 + $0x87] sm:$0x1]  ;;  %v2202_v63 = vpop.f32.mrf.mxu2  ;;  %2424 = vst.msk [vmem:[#allocation3 + $0x50] sm:$0xff] %vm258_vm0, %v5762_v55 }
 0x3b9   : > { %v2203_v62 = vadd.f32 %v5645_v11, %v2202_v63  ;;  %2425 = vst.msk [vmem:[#allocation3 + $0x58] sm:$0xff] %vm258_vm0, %v5757_v53 }
 0x3ba   : > { %v2175_v2 = vpop.f32.mrf.mxu0  ;;  %2369 = vst.msk [vmem:[#allocation2 + $0x89] sm:$0x1] %vm320_vm1, %v2351_v61 }
 0x3bb   : > { %v2258_v51 = vmax.f32 %v2203_v62, 0.0  ;;  %v2176_v39 = vadd.f32 %v5645_v11, %v2175_v2 }
 0x3bc   : > { %v2356_v18 = vld [vmem:[#allocation2 + $0xff] sm:$0x1] }
 0x3bd   : > { %2290 = vst.msk [vmem:[#allocation2 + $0x109] sm:$0xff] %vm258_vm0, %v2258_v51  ;;  %v2249_v6 = vmax.f32 %v2176_v39, 0.0  ;;  %v5774_v7 = vld [vmem:[#allocation2 + $0xf8] sm:$0xff]  ;;  %v5778_v45 = vld [vmem:[#allocation2 + $0xf0] sm:$0xff] }
 0x3be   : > { %v2458_v44 = vld [vmem:[#allocation2 + $0x91] sm:$0xff]  ;;  %2374 = vst.msk [vmem:[#allocation2 + $0x101] sm:$0x1] %vm320_vm1, %v2356_v18 }
 0x3bf   : > { %v2316_v60 = vld [vmem:[#allocation2 + $0x92] sm:$0x1]  ;;  %2281 = vst.msk [vmem:[#allocation2 + $0x99] sm:$0xff] %vm258_vm0, %v2249_v6  ;;  %2534 = vrot.lane.b32.xlu1 %v2458_v44, %s4502_s24 }
 0x3c0   : > { %v2205_v16 = vpop.f32.mrf.mxu2  ;;  %2334 = vst.msk [vmem:[#allocation2 + $0x90] sm:$0x1] %vm320_vm1, %v2316_v60 }
 0x3c1   : > { %v2206_v50 = vadd.f32 %v5645_v11, %v2205_v16  ;;  %2435 = vst.msk [vmem:[#allocation3 + $0xa8] sm:$0xff] %vm258_vm0, %v5774_v7 }
 0x3c2   : > { %v2178_v15 = vpop.f32.mrf.mxu0  ;;  %2434 = vst.msk [vmem:[#allocation3 + $0xa0] sm:$0xff] %vm258_vm0, %v5778_v45 }
 0x3c3   : > { %v2259_v21 = vmax.f32 %v2206_v50, 0.0  ;;  %v2179_v0 = vadd.f32 %v5645_v11, %v2178_v15 }
 0x3c4   : > { %v2321_v26 = vld [vmem:[#allocation2 + $0x10a] sm:$0x1] }
 0x3c5   : > { %2291 = vst.msk [vmem:[#allocation2 + $0x111] sm:$0xff] %vm258_vm0, %v2259_v21  ;;  %v2250_v31 = vmax.f32 %v2179_v0, 0.0  ;;  %v5871_v0 = vld [vmem:[#allocation2 + $0xf9] sm:$0xff] }
 0x3c6   : > { %v2459_v4 = vld [vmem:[#allocation2 + $0x99] sm:$0xff]  ;;  %2339 = vst.msk [vmem:[#allocation2 + $0x108] sm:$0x1] %vm320_vm1, %v2321_v26 }
 0x3c7   : > { %v5789_v3 = vld [vmem:[#allocation2 + $0x98] sm:$0xff]  ;;  %2282 = vst.msk [vmem:[#allocation2 + $0xa9] sm:$0xff] %vm258_vm0, %v2250_v31  ;;  %2536 = vrot.lane.b32.xlu2 %v2459_v4, %s4502_s24  ;;  %v5794_v8 = vld [vmem:[#allocation2 + $0x90] sm:$0xff] }
 0x3c8   : > { %v2352_v49 = vld [vmem:[#allocation2 + $0x9f] sm:$0x1]  ;;  %v2208_v33 = vpop.f32.mrf.mxu2  ;;  %2427 = vst.msk [vmem:[#allocation3 + $0x68] sm:$0xff] %vm258_vm0, %v5789_v3 }
 0x3c9   : > { %v2209_v43 = vadd.f32 %v5645_v11, %v2208_v33  ;;  %2370 = vst.msk [vmem:[#allocation2 + $0xa1] sm:$0x1] %vm320_vm1, %v2352_v49 }
 0x3ca   : > { %v2181_v27 = vpop.f32.mrf.mxu0  ;;  %2426 = vst.msk [vmem:[#allocation3 + $0x60] sm:$0xff] %vm258_vm0, %v5794_v8 }
 0x3cb   : > { %v2260_v32 = vmax.f32 %v2209_v43, 0.0  ;;  %v2182_v12 = vadd.f32 %v5645_v11, %v2181_v27  ;;  %v2515_v59 = vpop.permute.xlu0 %2514 }
 0x3cc   : > { %2608 = vst.msk [vmem:[#allocation3 + $0x10] sm:$0xff] %vm599_vm2, %v2515_v59  ;;  %v2357_v10 = vld [vmem:[#allocation2 + $0x117] sm:$0x1] }
 0x3cd   : > { %2292 = vst.msk [vmem:[#allocation2 + $0x121] sm:$0xff] %vm258_vm0, %v2260_v32  ;;  %v2251_v17 = vmax.f32 %v2182_v12, 0.0  ;;  %v5805_v19 = vld [vmem:[#allocation2 + $0x108] sm:$0xff]  ;;  %v5814_v20 = vld [vmem:[#allocation2 + $0x110] sm:$0xff] }
 0x3ce   : > { %v5807_v1 = vld [vmem:[#allocation2 + $0xa9] sm:$0xff]  ;;  %2436 = vst.msk [vmem:[#allocation3 + $0xb0] sm:$0xff] %vm258_vm0, %v5805_v19  ;;  %v5891_v59 = vld [vmem:[#allocation2 + $0xf1] sm:$0xff] }
 0x3cf   : > { %v2317_v9 = vld [vmem:[#allocation2 + $0xaa] sm:$0x1]  ;;  %2283 = vst.msk [vmem:[#allocation2 + $0xb1] sm:$0xff] %vm258_vm0, %v2251_v17  ;;  %2538 = vrot.lane.b32.xlu0 %v5807_v1, %s4502_s24 }
 0x3d0   : > { %v2211_v25 = vpop.f32.mrf.mxu2  ;;  %2335 = vst.msk [vmem:[#allocation2 + $0xa8] sm:$0x1] %vm320_vm1, %v2317_v9  ;;  %v5893_v17 = vld [vmem:[#allocation2 + $0x109] sm:$0xff] }
 0x3d1   : > { %v2212_v23 = vadd.f32 %v5645_v11, %v2211_v25  ;;  %2375 = vst.msk [vmem:[#allocation2 + $0x119] sm:$0x1] %vm320_vm1, %v2357_v10  ;;  %v2013_v25 = vld [vmem:[#allocation3 + $0xf0] sm:$0xff] }
 0x3d2   : > { %v2184_v28 = vpop.f32.mrf.mxu0  ;;  %2437 = vst.msk [vmem:[#allocation3 + $0xb8] sm:$0xff] %vm258_vm0, %v5814_v20  ;;  %4426 = vmatmul.msk.f32.gmra.mxu2 %vm2024_vm11, %v2013_v25 }
 0x3d3   : > { %v2261_v30 = vmax.f32 %v2212_v23, 0.0  ;;  %v2185_v29 = vadd.f32 %v5645_v11, %v2184_v28 }
 0x3d4   : > { %v2322_v38 = vld [vmem:[#allocation2 + $0x122] sm:$0x1] }
 0x3d5   : > { %2293 = vst.msk [vmem:[#allocation2 + $0x129] sm:$0xff] %vm258_vm0, %v2261_v30  ;;  %v2252_v40 = vmax.f32 %v2185_v29, 0.0  ;;  %v5900_v9 = vld [vmem:[#allocation2 + $0x121] sm:$0xff] }
 0x3d6   : > { %v5823_v42 = vld [vmem:[#allocation2 + $0xb1] sm:$0xff]  ;;  %2340 = vst.msk [vmem:[#allocation2 + $0x120] sm:$0x1] %vm320_vm1, %v2322_v38 }
 0x3d7   : > { %v2353_v41 = vld [vmem:[#allocation2 + $0xb7] sm:$0x1]  ;;  %2284 = vst.msk [vmem:[#allocation2 + $0xc1] sm:$0xff] %vm258_vm0, %v2252_v40  ;;  %2540 = vrot.lane.b32.xlu1 %v5823_v42, %s4502_s24  ;;  %v5829_v46 = vld [vmem:[#allocation2 + $0xa8] sm:$0xff] }
 0x3d8   : > { %v5831_v48 = vld [vmem:[#allocation2 + $0xb0] sm:$0xff]  ;;  %v2214_v47 = vpop.f32.mrf.mxu2  ;;  %2371 = vst.msk [vmem:[#allocation2 + $0xb9] sm:$0x1] %vm320_vm1, %v2353_v41 }
 0x3d9   : > { %v2215_v52 = vadd.f32 %v5645_v11, %v2214_v47  ;;  %2428 = vst.msk [vmem:[#allocation3 + $0x70] sm:$0xff] %vm258_vm0, %v5829_v46  ;;  %v5912_v38 = vld [vmem:[#allocation2 + $0x111] sm:$0xff] }
 0x3da   : > { %v2187_v54 = vpop.f32.mrf.mxu0  ;;  %2429 = vst.msk [vmem:[#allocation3 + $0x78] sm:$0xff] %vm258_vm0, %v5831_v48 }
 0x3db   : > { %v2262_v61 = vmax.f32 %v2215_v52, 0.0  ;;  %v2188_v63 = vadd.f32 %v5645_v11, %v2187_v54  ;;  %v2014_v52 = vld [vmem:[#allocation3 + $0xf8] sm:$0xff] }
 0x3dc   : > { %v2358_v62 = vld [vmem:[#allocation2 + $0x12f] sm:$0x1]  ;;  %4427 = vmatmul.msk.f32.gmra.mxu2 %vm2024_vm11, %v2014_v52 }
 0x3dd   : > { %2294 = vst.msk [vmem:[#allocation2 + $0x139] sm:$0xff] %vm258_vm0, %v2262_v61  ;;  %v2253_v2 = vmax.f32 %v2188_v63, 0.0  ;;  %v5846_v18 = vld [vmem:[#allocation2 + $0x128] sm:$0xff]  ;;  %v5853_v6 = vld [vmem:[#allocation2 + $0x120] sm:$0xff] }
 0x3de   : > { %v5843_v51 = vld [vmem:[#allocation2 + $0xc1] sm:$0xff]  ;;  %2376 = vst.msk [vmem:[#allocation2 + $0x131] sm:$0x1] %vm320_vm1, %v2358_v62  ;;  %v5914_v40 = vld [vmem:[#allocation2 + $0x129] sm:$0xff] }
 0x3df   : > { %v2318_v39 = vld [vmem:[#allocation2 + $0xc2] sm:$0x1]  ;;  %2285 = vst.msk [vmem:[#allocation2 + $0xc9] sm:$0xff] %vm258_vm0, %v2253_v2  ;;  %2542 = vrot.lane.b32.xlu2 %v5843_v51, %s4502_s24  ;;  %2546 = vrot.lane.b32.xlu1 %v5841_v5, %s4502_s24 }
 0x3e0   : > { %v2217_v44 = vpop.f32.mrf.mxu2  ;;  %2336 = vst.msk [vmem:[#allocation2 + $0xc0] sm:$0x1] %vm320_vm1, %v2318_v39 }
 0x3e1   : > { %v2218_v60 = vadd.f32 %v5645_v11, %v2217_v44  ;;  %2439 = vst.msk [vmem:[#allocation3 + $0xc8] sm:$0xff] %vm258_vm0, %v5846_v18 }
 0x3e2   : > { %2438 = vst.msk [vmem:[#allocation3 + $0xc0] sm:$0xff] %vm258_vm0, %v5853_v6 }
 0x3e3   : > { %v2263_v16 = vmax.f32 %v2218_v60, 0.0 }
 0x3e4   : > { %v2323_v50 = vld [vmem:[#allocation2 + $0x13a] sm:$0x1] }
 0x3e5   : > { %2295 = vst.msk [vmem:[#allocation2 + $0x141] sm:$0xff] %vm258_vm0, %v2263_v16  ;;  %v5935_v16 = vld [vmem:[#allocation2 + $0x139] sm:$0xff] }
 0x3e6   : > { %v5862_v15 = vld [vmem:[#allocation2 + $0xc9] sm:$0xff]  ;;  %2341 = vst.msk [vmem:[#allocation2 + $0x138] sm:$0x1] %vm320_vm1, %v2323_v50 }
 0x3e7   : > { %v2354_v21 = vld [vmem:[#allocation2 + $0xcf] sm:$0x1]  ;;  %2544 = vrot.lane.b32.xlu0 %v5862_v15, %s4502_s24  ;;  %2548 = vrot.lane.b32.xlu2 %v5864_v22, %s4502_s24  ;;  %v5873_v26 = vld [vmem:[#allocation2 + $0xc0] sm:$0xff] }
 0x3e8   : > { %2372 = vst.msk [vmem:[#allocation2 + $0xd1] sm:$0x1] %vm320_vm1, %v2354_v21  ;;  %v5876_v31 = vld [vmem:[#allocation2 + $0xc8] sm:$0xff]  ;;  %2552 = vrot.lane.b32.xlu1 %v5871_v0, %s4502_s24  ;;  %v2220_v4 = vpop.f32.mrf.mxu2 }
 0x3e9   : > { %2430 = vst.msk [vmem:[#allocation3 + $0x80] sm:$0xff] %vm258_vm0, %v5873_v26  ;;  %v2221_v49 = vadd.f32 %v5645_v11, %v2220_v4 }
 0x3ea   : > { %2431 = vst.msk [vmem:[#allocation3 + $0x88] sm:$0xff] %vm258_vm0, %v5876_v31  ;;  %v2513_v33 = vpop.permute.xlu2 %2512 }
 0x3eb   : > { %v2264_v43 = vmax.f32 %v2221_v49, 0.0  ;;  %2607 = vst.msk [vmem:[#allocation3 + $0x8] sm:$0xff] %vm599_vm2, %v2513_v33 }
 0x3ec   : > { %v2359_v27 = vld [vmem:[#allocation2 + $0x147] sm:$0x1] }
 0x3ed   : > { %2296 = vst.msk [vmem:[#allocation2 + $0x151] sm:$0xff] %vm258_vm0, %v2264_v43  ;;  %v5887_v32 = vld [vmem:[#allocation2 + $0x140] sm:$0xff]  ;;  %v5889_v12 = vld [vmem:[#allocation2 + $0x138] sm:$0xff] }
 0x3ee   : > { %2377 = vst.msk [vmem:[#allocation2 + $0x149] sm:$0x1] %vm320_vm1, %v2359_v27  ;;  %v5921_v41 = vld [vmem:[#allocation2 + $0x141] sm:$0xff] }
 0x3ef   : > { %2550 = vrot.lane.b32.xlu0 %v5891_v59, %s4502_s24  ;;  %2554 = vrot.lane.b32.xlu2 %v5893_v17, %s4502_s24  ;;  %2441 = vst.msk [vmem:[#allocation3 + $0xd8] sm:$0xff] %vm258_vm0, %v5887_v32 }
 0x3f0   : > { %2558 = vrot.lane.b32.xlu1 %v5900_v9, %s4502_s24  ;;  %v2223_v10 = vpop.f32.mrf.mxu2  ;;  %2440 = vst.msk [vmem:[#allocation3 + $0xd0] sm:$0xff] %vm258_vm0, %v5889_v12 }
 0x3f1   : > { %v2224_v23 = vadd.f32 %v5645_v11, %v2223_v10 }
 0x3f2   : > { %v2519_v28 = vpop.permute.xlu2 %2518 }
 0x3f3   : > { %v2265_v30 = vmax.f32 %v2224_v23, 0.0  ;;  %2610 = vst.msk [vmem:[#allocation3 + $0x20] sm:$0xff] %vm599_vm2, %v2519_v28 }
 0x3f4   : > { %v2324_v29 = vld [vmem:[#allocation2 + $0x152] sm:$0x1] }
 0x3f5   : > { %2297 = vst.msk [vmem:[#allocation2 + $0x159] sm:$0xff] %vm258_vm0, %v2265_v30  ;;  %v5937_v50 = vld [vmem:[#allocation2 + $0x151] sm:$0xff] }
 0x3f6   : > { %2342 = vst.msk [vmem:[#allocation2 + $0x150] sm:$0x1] %vm320_vm1, %v2324_v29  ;;  %v2639_v29 = vld [vmem:[#allocation2 + $0xa] sm:$0xff] }
 0x3f7   : > { %2556 = vrot.lane.b32.xlu0 %v5912_v38, %s4502_s24  ;;  %2560 = vrot.lane.b32.xlu2 %v5914_v40, %s4502_s24 }
 0x3f8   : > { %2564 = vrot.lane.b32.xlu1 %v5921_v41, %s4502_s24  ;;  %v2226_v47 = vpop.f32.mrf.mxu2 }
 0x3f9   : > { %v2227_v54 = vadd.f32 %v5645_v11, %v2226_v47  ;;  %v2521_v61 = vpop.permute.xlu0 %2520 }
 0x3fa   : > { %2611 = vst.msk [vmem:[#allocation3 + $0x28] sm:$0xff] %vm599_vm2, %v2521_v61  ;;  %v2525_v63 = vpop.permute.xlu2 %2524  ;;  %v2511_v62 = vpop.permute.xlu1 %2510  ;;  %v2638_v61 = vld [vmem:[#allocation2 + $0x2] sm:$0xff] }
 0x3fb   : > { %v2266_v2 = vmax.f32 %v2227_v54, 0.0  ;;  %2613 = vst.msk [vmem:[#allocation3 + $0x38] sm:$0xff] %vm599_vm2, %v2525_v63 }
 0x3fc   : > { %2606 = vst.msk [vmem:[#allocation3] sm:$0xff] %vm599_vm2, %v2511_v62  ;;  %v2360_v39 = vld [vmem:[#allocation2 + $0x15f] sm:$0x1] }
 0x3fd   : > { %2298 = vst.msk [vmem:[#allocation2 + $0x169] sm:$0xff] %vm258_vm0, %v2266_v2  ;;  %v5931_v44 = vld [vmem:[#allocation2 + $0x150] sm:$0xff]  ;;  %v5933_v60 = vld [vmem:[#allocation2 + $0x158] sm:$0xff] }
 0x3fe   : > { %2442 = vst.msk [vmem:[#allocation3 + $0xe0] sm:$0xff] %vm258_vm0, %v5931_v44  ;;  %v5957_v25 = vld [vmem:[#allocation2 + $0x159] sm:$0xff] }
 0x3ff   : > { %2562 = vrot.lane.b32.xlu0 %v5935_v16, %s4502_s24  ;;  %2566 = vrot.lane.b32.xlu2 %v5937_v50, %s4502_s24  ;;  %2378 = vst.msk [vmem:[#allocation2 + $0x161] sm:$0x1] %vm320_vm1, %v2360_v39  ;;  %v5987_v39 = vld [vmem:[#allocation2 + $0x1a] sm:$0xff] }
 0x400   : > { %v2229_v21 = vpop.f32.mrf.mxu2  ;;  %2443 = vst.msk [vmem:[#allocation3 + $0xe8] sm:$0xff] %vm258_vm0, %v5933_v60 }
 0x401   : > { %v2230_v4 = vadd.f32 %v5645_v11, %v2229_v21  ;;  %v5989_v21 = vld [vmem:[#allocation2 + $0x32] sm:$0xff] }
 0x402   : > { %v2517_v49 = vpop.permute.xlu1 %2516 }
 0x403   : > { %v2267_v33 = vmax.f32 %v2230_v4, 0.0  ;;  %2609 = vst.msk [vmem:[#allocation3 + $0x18] sm:$0xff] %vm599_vm2, %v2517_v49  ;;  %v5995_v4 = vld [vmem:[#allocation2 + $0x22] sm:$0xff] }
 0x404   : > { %v5950_v43 = vld [vmem:[#allocation2 + $0x169] sm:$0xff] }
 0x405   : > { %v2325_v27 = vld [vmem:[#allocation2 + $0x16a] sm:$0x1]  ;;  %2299 = vst.msk [vmem:[#allocation2 + $0x171] sm:$0xff] %vm258_vm0, %v2267_v33  ;;  %2570 = vrot.lane.b32.xlu1 %v5950_v43, %s4502_s24 }
 0x406   : > { %v5952_v10 = vld [vmem:[#allocation2 + $0x169] sm:$0xff]  ;;  %2343 = vst.msk [vmem:[#allocation2 + $0x168] sm:$0x1] %vm320_vm1, %v2325_v27  ;;  %v6001_v27 = vld [vmem:[#allocation2 + $0x3a] sm:$0xff] }
 0x407   : > { %6978 = vst [vmem:[#allocation4_spill] sm:$0xff] %v5952_v10  ;;  %2568 = vrot.lane.b32.xlu0 %v5957_v25, %s4502_s24 }
 0x408   : > { %2308 = vst.msk [vmem:[#allocation2 + $0x199] sm:$0xff] %vm258_vm0, %v5952_v10  ;;  %v6040_v10 = vld [vmem:[#allocation2 + $0xaa] sm:$0xff] }
 0x409   : > { %v2531_v23 = vpop.permute.xlu2 %2530  ;;  %6985 = vst [vmem:[#allocation10_spill] sm:$0xff] %v6040_v10 }
 0x40a   : > { %2616 = vst.msk [vmem:[#allocation3 + $0x50] sm:$0xff] %vm599_vm2, %v2531_v23  ;;  %v2523_v28 = vpop.permute.xlu1 %2522  ;;  %v6003_v23 = vld [vmem:[#allocation2 + $0x52] sm:$0xff] }
 0x40b   : > { %2612 = vst.msk [vmem:[#allocation3 + $0x30] sm:$0xff] %vm599_vm2, %v2523_v28  ;;  %v6009_v28 = vld [vmem:[#allocation2 + $0x4a] sm:$0xff] }
 0x40c   : > { %v5966_v30 = vld [vmem:[#allocation2 + $0x171] sm:$0xff] }
 0x40d   : > { %v2361_v47 = vld [vmem:[#allocation2 + $0x177] sm:$0x1]  ;;  %2572 = vrot.lane.b32.xlu2 %v5966_v30, %s4502_s24  ;;  %2704 = vrot.lane.b32.xlu1 %v2639_v29, %s4503_s25  ;;  %v5974_v54 = vld [vmem:[#allocation2 + $0x168] sm:$0xff] }
 0x40e   : > { %2379 = vst.msk [vmem:[#allocation2 + $0x179] sm:$0x1] %vm320_vm1, %v2361_v47  ;;  %v5972_v52 = vld [vmem:[#allocation2 + $0x170] sm:$0xff]  ;;  %v6014_v47 = vld [vmem:[#allocation2 + $0x62] sm:$0xff] }
 0x40f   : > { %2445 = vst.msk [vmem:[#allocation3 + $0xf8] sm:$0xff] %vm258_vm0, %v5972_v52  ;;  %v5978_v63 = vld [vmem:[#allocation2 + $0x171] sm:$0xff]  ;;  %2702 = vrot.lane.b32.xlu0 %v2638_v61, %s4503_s25  ;;  %v2327_v62 = vld [vmem:[#allocation2 + $0x19a] sm:$0x1] }
 0x410   : > { %6979 = vst [vmem:[#allocation7_spill] sm:$0xff] %v5978_v63  ;;  %v6016_v61 = vld [vmem:[#allocation2 + $0x7a] sm:$0xff] }
 0x411   : > { %2444 = vst.msk [vmem:[#allocation3 + $0xf0] sm:$0xff] %vm258_vm0, %v5974_v54  ;;  %v2527_v2 = vpop.permute.xlu0 %2526 }
 0x412   : > { %2345 = vst.msk [vmem:[#allocation2 + $0x198] sm:$0x1] %vm320_vm1, %v2327_v62  ;;  %v6022_v62 = vld [vmem:[#allocation2 + $0x6a] sm:$0xff] }
 0x413   : > { %2309 = vst.msk [vmem:[#allocation2 + $0x1a1] sm:$0xff] %vm258_vm0, %v5978_v63 }
 0x414   : > { %2614 = vst.msk [vmem:[#allocation3 + $0x40] sm:$0xff] %vm599_vm2, %v2527_v2 }
 0x415   : > { %2706 = vrot.lane.b32.xlu2 %v5987_v39, %s4503_s25  ;;  %2710 = vrot.lane.b32.xlu1 %v5989_v21, %s4503_s25  ;;  %6980 = vst [vmem:[#allocation5_spill] sm:$0xff] %v6014_v47 }
 0x416   : > { %6981 = vst [vmem:[#allocation6_spill] sm:$0xff] %v6016_v61 }
 0x417   : > { %2708 = vrot.lane.b32.xlu0 %v5995_v4, %s4503_s25 }
 0x419   : > { %v2529_v33 = vpop.permute.xlu1 %2528 }
 0x41a   : > { %v2363_v49 = vld [vmem:[#allocation2 + $0x1a7] sm:$0x1]  ;;  %2615 = vst.msk [vmem:[#allocation3 + $0x48] sm:$0xff] %vm599_vm2, %v2529_v33  ;;  %v6029_v33 = vld [vmem:[#allocation2 + $0x9a] sm:$0xff] }
 0x41b   : > { %2381 = vst.msk [vmem:[#allocation2 + $0x1a9] sm:$0x1] %vm320_vm1, %v2363_v49  ;;  %v6027_v49 = vld [vmem:[#allocation2 + $0x82] sm:$0xff] }
 0x41c   : > { %6982 = vst [vmem:[#allocation9_spill] sm:$0xff] %v6027_v49 }
 0x41d   : > { %2712 = vrot.lane.b32.xlu2 %v6001_v27, %s4503_s25  ;;  %2716 = vrot.lane.b32.xlu1 %v6003_v23, %s4503_s25  ;;  %6983 = vst [vmem:[#allocation8_spill] sm:$0xff] %v6029_v33 }
 0x41f   : > { %2714 = vrot.lane.b32.xlu0 %v6009_v28, %s4503_s25 }
 0x421   : > { %v2537_v29 = vpop.permute.xlu2 %2536 }
 0x422   : > { %2619 = vst.msk [vmem:[#allocation3 + $0x68] sm:$0xff] %vm599_vm2, %v2537_v29  ;;  %v6035_v29 = vld [vmem:[#allocation2 + $0x92] sm:$0xff] }
 0x423   : > { %6984 = vst [vmem:[#allocation11_spill] sm:$0xff] %v6035_v29 }
 0x425   : > { %2718 = vrot.lane.b32.xlu2 %v6014_v47, %s4503_s25  ;;  %2722 = vrot.lane.b32.xlu1 %v6016_v61, %s4503_s25  ;;  %v6069_v61 = vld [vmem:[#allocation2 + $0x10a] sm:$0xff]  ;;  %v2669_v47 = vld [vmem:[#allocation2 + $0x172] sm:$0xff] }
 0x426   : > { %6992 = vst [vmem:[#allocation20_spill] sm:$0xff] %v6069_v61 }
 0x427   : > { %2720 = vrot.lane.b32.xlu0 %v6022_v62, %s4503_s25 }
 0x429   : > { %v2533_v2 = vpop.permute.xlu0 %2532 }
 0x42a   : > { %2617 = vst.msk [vmem:[#allocation3 + $0x58] sm:$0xff] %vm599_vm2, %v2533_v2  ;;  %v6042_v2 = vld [vmem:[#allocation2 + $0xc2] sm:$0xff] }
 0x42b   : > { %6986 = vst [vmem:[#allocation14_spill] sm:$0xff] %v6042_v2 }
 0x42d   : > { %2724 = vrot.lane.b32.xlu2 %v6027_v49, %s4503_s25  ;;  %2728 = vrot.lane.b32.xlu1 %v6029_v33, %s4503_s25  ;;  %v6048_v49 = vld [vmem:[#allocation2 + $0xb2] sm:$0xff] }
 0x42e   : > { %6987 = vst [vmem:[#allocation12_spill] sm:$0xff] %v6048_v49 }
 0x42f   : > { %2726 = vrot.lane.b32.xlu0 %v6035_v29, %s4503_s25  ;;  %v6053_v29 = vld [vmem:[#allocation2 + $0xca] sm:$0xff] }
 0x430   : > { %6988 = vst [vmem:[#allocation13_spill] sm:$0xff] %v6053_v29 }
 0x431   : > { %v2535_v63 = vpop.permute.xlu1 %2534 }
 0x432   : > { %2618 = vst.msk [vmem:[#allocation3 + $0x60] sm:$0xff] %vm599_vm2, %v2535_v63  ;;  %v6055_v63 = vld [vmem:[#allocation2 + $0xe2] sm:$0xff] }
 0x433   : > { %6989 = vst [vmem:[#allocation17_spill] sm:$0xff] %v6055_v63 }
 0x435   : > { %2730 = vrot.lane.b32.xlu2 %v6040_v10, %s4503_s25  ;;  %2734 = vrot.lane.b32.xlu1 %v6042_v2, %s4503_s25  ;;  %v6061_v10 = vld [vmem:[#allocation2 + $0xda] sm:$0xff] }
 0x436   : > { %6990 = vst [vmem:[#allocation15_spill] sm:$0xff] %v6061_v10 }
 0x437   : > { %2732 = vrot.lane.b32.xlu0 %v6048_v49, %s4503_s25 }
 0x439   : > { %v2543_v33 = vpop.permute.xlu2 %2542 }
 0x43a   : > { %2622 = vst.msk [vmem:[#allocation3 + $0x80] sm:$0xff] %vm599_vm2, %v2543_v33  ;;  %v6067_v33 = vld [vmem:[#allocation2 + $0xf2] sm:$0xff] }
 0x43b   : > { %6991 = vst [vmem:[#allocation16_spill] sm:$0xff] %v6067_v33 }
 0x43d   : > { %2736 = vrot.lane.b32.xlu2 %v6053_v29, %s4503_s25  ;;  %2740 = vrot.lane.b32.xlu1 %v6055_v63, %s4503_s25  ;;  %v6075_v63 = vld [vmem:[#allocation2 + $0xfa] sm:$0xff] }
 0x43e   : > { %6993 = vst [vmem:[#allocation18_spill] sm:$0xff] %v6075_v63 }
 0x43f   : > { %2738 = vrot.lane.b32.xlu0 %v6061_v10, %s4503_s25 }
 0x441   : > { %v2539_v2 = vpop.permute.xlu0 %2538  ;;  %v2549_v49 = vpop.permute.xlu2 %2548 }
 0x442   : > { %2620 = vst.msk [vmem:[#allocation3 + $0x70] sm:$0xff] %vm599_vm2, %v2539_v2  ;;  %v6083_v2 = vld [vmem:[#allocation2 + $0x12a] sm:$0xff] }
 0x443   : > { %2625 = vst.msk [vmem:[#allocation3 + $0x98] sm:$0xff] %vm599_vm2, %v2549_v49  ;;  %v6081_v49 = vld [vmem:[#allocation2 + $0x112] sm:$0xff] }
 0x444   : > { %6994 = vst [vmem:[#allocation19_spill] sm:$0xff] %v6081_v49 }
 0x445   : > { %2742 = vrot.lane.b32.xlu2 %v6067_v33, %s4503_s25  ;;  %2746 = vrot.lane.b32.xlu1 %v6069_v61, %s4503_s25  ;;  %6995 = vst [vmem:[#allocation23_spill] sm:$0xff] %v6083_v2  ;;  %v6089_v61 = vld [vmem:[#allocation2 + $0x122] sm:$0xff] }
 0x446   : > { %6996 = vst [vmem:[#allocation21_spill] sm:$0xff] %v6089_v61 }
 0x447   : > { %2744 = vrot.lane.b32.xlu0 %v6075_v63, %s4503_s25 }
 0x449   : > { %v2555_v29 = vpop.permute.xlu2 %2554  ;;  %v2541_v10 = vpop.permute.xlu1 %2540 }
 0x44a   : > { %2628 = vst.msk [vmem:[#allocation3 + $0xb0] sm:$0xff] %vm599_vm2, %v2555_v29  ;;  %v6097_v29 = vld [vmem:[#allocation2 + $0x152] sm:$0xff] }
 0x44b   : > { %2621 = vst.msk [vmem:[#allocation3 + $0x78] sm:$0xff] %vm599_vm2, %v2541_v10  ;;  %v6095_v10 = vld [vmem:[#allocation2 + $0x13a] sm:$0xff] }
 0x44c   : > { %6997 = vst [vmem:[#allocation22_spill] sm:$0xff] %v6095_v10 }
 0x44d   : > { %2748 = vrot.lane.b32.xlu2 %v6081_v49, %s4503_s25  ;;  %2752 = vrot.lane.b32.xlu1 %v6083_v2, %s4503_s25  ;;  %6998 = vst [vmem:[#allocation26_spill] sm:$0xff] %v6097_v29  ;;  %v6103_v2 = vld [vmem:[#allocation2 + $0x142] sm:$0xff] }
 0x44e   : > { %6999 = vst [vmem:[#allocation24_spill] sm:$0xff] %v6103_v2 }
 0x44f   : > { %2750 = vrot.lane.b32.xlu0 %v6089_v61, %s4503_s25 }
 0x451   : > { %v2561_v33 = vpop.permute.xlu2 %2560  ;;  %v2547_v63 = vpop.permute.xlu1 %2546 }
 0x452   : > { %2631 = vst.msk [vmem:[#allocation3 + $0xc8] sm:$0xff] %vm599_vm2, %v2561_v33  ;;  %v2667_v33 = vld [vmem:[#allocation2 + $0x15a] sm:$0xff] }
 0x453   : > { %2624 = vst.msk [vmem:[#allocation3 + $0x90] sm:$0xff] %vm599_vm2, %v2547_v63 }
 0x455   : > { %2754 = vrot.lane.b32.xlu2 %v6095_v10, %s4503_s25  ;;  %2758 = vrot.lane.b32.xlu1 %v6097_v29, %s4503_s25  ;;  %v2668_v29 = vld [vmem:[#allocation2 + $0x16a] sm:$0xff] }
 0x457   : > { %2756 = vrot.lane.b32.xlu0 %v6103_v2, %s4503_s25 }
 0x459   : > { %v2545_v49 = vpop.permute.xlu0 %2544  ;;  %v2567_v61 = vpop.permute.xlu2 %2566 }
 0x45a   : > { %2623 = vst.msk [vmem:[#allocation3 + $0x88] sm:$0xff] %vm599_vm2, %v2545_v49  ;;  %v2553_v63 = vpop.permute.xlu1 %2552 }
 0x45b   : > { %2634 = vst.msk [vmem:[#allocation3 + $0xe0] sm:$0xff] %vm599_vm2, %v2567_v61 }
 0x45c   : > { %2627 = vst.msk [vmem:[#allocation3 + $0xa8] sm:$0xff] %vm599_vm2, %v2553_v63 }
 0x45d   : > { %2760 = vrot.lane.b32.xlu2 %v2667_v33, %s4503_s25  ;;  %2764 = vrot.lane.b32.xlu1 %v2669_v47, %s4503_s25 }
 0x45f   : > { %2762 = vrot.lane.b32.xlu0 %v2668_v29, %s4503_s25 }
 0x461   : > { %v2551_v10 = vpop.permute.xlu0 %2550 }
 0x462   : > { %2626 = vst.msk [vmem:[#allocation3 + $0xa0] sm:$0xff] %vm599_vm2, %v2551_v10  ;;  %v2559_v2 = vpop.permute.xlu1 %2558 }
 0x463   : > { %2630 = vst.msk [vmem:[#allocation3 + $0xc0] sm:$0xff] %vm599_vm2, %v2559_v2 }
 0x465   : > { %2894 = vrot.lane.b32.xlu2 %v5659_v24, %s4504_s26  ;;  %2898 = vrot.lane.b32.xlu1 %v5688_v56, %s4504_s26 }
 0x467   : > { %v2573_v61 = vpop.permute.xlu2 %2572  ;;  %2896 = vrot.lane.b32.xlu0 %v5670_v34, %s4504_s26 }
 0x468   : > { %2637 = vst.msk [vmem:[#allocation3 + $0xf8] sm:$0xff] %vm599_vm2, %v2573_v61 }
 0x469   : > { %v2557_v47 = vpop.permute.xlu0 %2556 }
 0x46a   : > { %2629 = vst.msk [vmem:[#allocation3 + $0xb8] sm:$0xff] %vm599_vm2, %v2557_v47  ;;  %v2565_v49 = vpop.permute.xlu1 %2564 }
 0x46b   : > { %2633 = vst.msk [vmem:[#allocation3 + $0xd8] sm:$0xff] %vm599_vm2, %v2565_v49 }
 0x46d   : > { %2900 = vrot.lane.b32.xlu2 %v5684_v57, %s4504_s26  ;;  %2904 = vrot.lane.b32.xlu1 %v5705_v37, %s4504_s26 }
 0x46f   : > { %v2707_v24 = vpop.permute.xlu2 %2706  ;;  %2902 = vrot.lane.b32.xlu0 %v5712_v13, %s4504_s26  ;;  %v2232_v13 = vpop.f32.mrf.mxu2 }
 0x470   : > { %2800 = vst.msk [vmem:[#allocation3 + $0x10] sm:$0xff] %vm792_vm3, %v2707_v24  ;;  %v2233_v2 = vadd.f32 %v5645_v11, %v2232_v13 }
 0x471   : > { %v2563_v34 = vpop.permute.xlu0 %2562 }
 0x472   : > { %2632 = vst.msk [vmem:[#allocation3 + $0xd0] sm:$0xff] %vm599_vm2, %v2563_v34 }
 0x475   : > { %2906 = vrot.lane.b32.xlu2 %v5732_v14, %s4504_s26  ;;  %2910 = vrot.lane.b32.xlu1 %v5762_v55, %s4504_s26  ;;  %v2268_v14 = vmax.f32 %v2233_v2, 0.0  ;;  %v3022_v2 = vld [vmem:[#allocation2 + $0x19] sm:$0xff] }
 0x477   : > { %v2713_v56 = vpop.permute.xlu2 %2712  ;;  %2908 = vrot.lane.b32.xlu0 %v5727_v58, %s4504_s26  ;;  %v2571_v57 = vpop.permute.xlu1 %2570  ;;  %2300 = vst.msk [vmem:[#allocation2 + $0x181] sm:$0xff] %vm258_vm0, %v2268_v14 }
 0x478   : > { %2803 = vst.msk [vmem:[#allocation3 + $0x28] sm:$0xff] %vm792_vm3, %v2713_v56  ;;  %v2235_v11 = vpop.f32.mrf.mxu2 }
 0x479   : > { %2636 = vst.msk [vmem:[#allocation3 + $0xf0] sm:$0xff] %vm599_vm2, %v2571_v57  ;;  %v2569_v37 = vpop.permute.xlu0 %2568 }
 0x47a   : > { %2635 = vst.msk [vmem:[#allocation3 + $0xe8] sm:$0xff] %vm599_vm2, %v2569_v37 }
 0x47d   : > { %2912 = vrot.lane.b32.xlu2 %v5757_v53, %s4504_s26  ;;  %2916 = vrot.lane.b32.xlu1 %v5789_v3, %s4504_s26  ;;  %v4493_v53 = vld [vmem:[%s6872_s2] ss:$0 sm:$0xff] }
 0x47e   : > { %v2236_v3 = vadd.f32 %v4493_v53, %v2235_v11  ;;  %v2326_v61 = vld [vmem:[#allocation2 + $0x182] sm:$0x1] }
 0x47f   : > { %v2719_v55 = vpop.permute.xlu2 %2718  ;;  %2914 = vrot.lane.b32.xlu0 %v5794_v8, %s4504_s26  ;;  %v2705_v58 = vpop.permute.xlu1 %2704  ;;  %2344 = vst.msk [vmem:[#allocation2 + $0x180] sm:$0x1] %vm320_vm1, %v2326_v61 }
 0x480   : > { %2806 = vst.msk [vmem:[#allocation3 + $0x40] sm:$0xff] %vm792_vm3, %v2719_v55  ;;  %v2269_v8 = vmax.f32 %v2236_v3, 0.0  ;;  %v3023_v55 = vld [vmem:[#allocation2 + $0x21] sm:$0xff] }
 0x481   : > { %2799 = vst.msk [vmem:[#allocation3 + $0x8] sm:$0xff] %vm792_vm3, %v2705_v58  ;;  %v2703_v10 = vpop.permute.xlu0 %2702  ;;  %v6218_v58 = vld [vmem:[#allocation2 + $0x39] sm:$0xff] }
 0x482   : > { %2798 = vst.msk [vmem:[#allocation3] sm:$0xff] %vm792_vm3, %v2703_v10  ;;  %v6223_v10 = vld [vmem:[#allocation2 + $0x31] sm:$0xff] }
 0x483   : > { %2301 = vst.msk [vmem:[#allocation2 + $0x189] sm:$0xff] %vm258_vm0, %v2269_v8  ;;  %v6230_v8 = vld [vmem:[#allocation2 + $0x49] sm:$0xff] }
 0x485   : > { %2918 = vrot.lane.b32.xlu2 %v5829_v46, %s4504_s26  ;;  %2922 = vrot.lane.b32.xlu1 %v5873_v26, %s4504_s26 }
 0x486   : > { %v2860_v13 = vld [vmem:[#allocation2 + $0x180] sm:$0xff] }
 0x487   : > { %v2725_v29 = vpop.permute.xlu2 %2724  ;;  %2920 = vrot.lane.b32.xlu0 %v5831_v48, %s4504_s26  ;;  %v2711_v63 = vpop.permute.xlu1 %2710 }
 0x488   : > { %2809 = vst.msk [vmem:[#allocation3 + $0x58] sm:$0xff] %vm792_vm3, %v2725_v29  ;;  %v6232_v29 = vld [vmem:[#allocation2 + $0x61] sm:$0xff] }
 0x489   : > { %2802 = vst.msk [vmem:[#allocation3 + $0x20] sm:$0xff] %vm792_vm3, %v2711_v63  ;;  %v2709_v33 = vpop.permute.xlu0 %2708  ;;  %v6238_v63 = vld [vmem:[#allocation2 + $0x51] sm:$0xff] }
 0x48a   : > { %2801 = vst.msk [vmem:[#allocation3 + $0x18] sm:$0xff] %vm792_vm3, %v2709_v33 }
 0x48d   : > { %2924 = vrot.lane.b32.xlu2 %v5876_v31, %s4504_s26  ;;  %2928 = vrot.lane.b32.xlu1 %v5743_v36, %s4504_s26  ;;  %v2362_v31 = vld [vmem:[#allocation2 + $0x18f] sm:$0x1] }
 0x48e   : > { %2380 = vst.msk [vmem:[#allocation2 + $0x191] sm:$0x1] %vm320_vm1, %v2362_v31  ;;  %v6253_v31 = vld [vmem:[#allocation2 + $0x79] sm:$0xff] }
 0x48f   : > { %v2731_v46 = vpop.permute.xlu2 %2730  ;;  %2926 = vrot.lane.b32.xlu0 %v5747_v35, %s4504_s26  ;;  %v2717_v48 = vpop.permute.xlu1 %2716 }
 0x490   : > { %2812 = vst.msk [vmem:[#allocation3 + $0x70] sm:$0xff] %vm792_vm3, %v2731_v46 }
 0x491   : > { %2805 = vst.msk [vmem:[#allocation3 + $0x38] sm:$0xff] %vm792_vm3, %v2717_v48  ;;  %v2715_v26 = vpop.permute.xlu0 %2714  ;;  %v6245_v48 = vld [vmem:[#allocation2 + $0x69] sm:$0xff] }
 0x492   : > { %2804 = vst.msk [vmem:[#allocation3 + $0x30] sm:$0xff] %vm792_vm3, %v2715_v26  ;;  %v6247_v26 = vld [vmem:[#allocation2 + $0x81] sm:$0xff] }
 0x495   : > { %2930 = vrot.lane.b32.xlu2 %v5778_v45, %s4504_s26  ;;  %2934 = vrot.lane.b32.xlu1 %v5805_v19, %s4504_s26 }
 0x497   : > { %v2737_v36 = vpop.permute.xlu2 %2736  ;;  %2932 = vrot.lane.b32.xlu0 %v5774_v7, %s4504_s26  ;;  %v2723_v35 = vpop.permute.xlu1 %2722 }
 0x498   : > { %2815 = vst.msk [vmem:[#allocation3 + $0x88] sm:$0xff] %vm792_vm3, %v2737_v36 }
 0x499   : > { %2808 = vst.msk [vmem:[#allocation3 + $0x50] sm:$0xff] %vm792_vm3, %v2723_v35  ;;  %v2721_v47 = vpop.permute.xlu0 %2720 }
 0x49a   : > { %2807 = vst.msk [vmem:[#allocation3 + $0x48] sm:$0xff] %vm792_vm3, %v2721_v47 }
 0x49d   : > { %2936 = vrot.lane.b32.xlu2 %v5814_v20, %s4504_s26  ;;  %2940 = vrot.lane.b32.xlu1 %v5846_v18, %s4504_s26 }
 0x49f   : > { %v2743_v49 = vpop.permute.xlu2 %2742  ;;  %2938 = vrot.lane.b32.xlu0 %v5853_v6, %s4504_s26  ;;  %v2729_v24 = vpop.permute.xlu1 %2728 }
 0x4a0   : > { %2818 = vst.msk [vmem:[#allocation3 + $0xa0] sm:$0xff] %vm792_vm3, %v2743_v49  ;;  %v6260_v49 = vld [vmem:[#allocation2 + $0x91] sm:$0xff] }
 0x4a1   : > { %2811 = vst.msk [vmem:[#allocation3 + $0x68] sm:$0xff] %vm792_vm3, %v2729_v24  ;;  %v2727_v34 = vpop.permute.xlu0 %2726  ;;  %v6266_v24 = vld [vmem:[#allocation2 + $0x99] sm:$0xff] }
 0x4a2   : > { %2810 = vst.msk [vmem:[#allocation3 + $0x60] sm:$0xff] %vm792_vm3, %v2727_v34 }
 0x4a5   : > { %2942 = vrot.lane.b32.xlu2 %v5889_v12, %s4504_s26  ;;  %2946 = vrot.lane.b32.xlu1 %v5931_v44, %s4504_s26 }
 0x4a7   : > { %v2749_v56 = vpop.permute.xlu2 %2748  ;;  %2944 = vrot.lane.b32.xlu0 %v5887_v32, %s4504_s26  ;;  %v2735_v18 = vpop.permute.xlu1 %2734 }
 0x4a8   : > { %2821 = vst.msk [vmem:[#allocation3 + $0xb8] sm:$0xff] %vm792_vm3, %v2749_v56 }
 0x4a9   : > { %2814 = vst.msk [vmem:[#allocation3 + $0x80] sm:$0xff] %vm792_vm3, %v2735_v18  ;;  %v2733_v57 = vpop.permute.xlu0 %2732 }
 0x4aa   : > { %2813 = vst.msk [vmem:[#allocation3 + $0x78] sm:$0xff] %vm792_vm3, %v2733_v57 }
 0x4ad   : > { %2948 = vrot.lane.b32.xlu2 %v5933_v60, %s4504_s26  ;;  %2952 = vrot.lane.b32.xlu1 %v5972_v52, %s4504_s26  ;;  %v2861_v60 = vld [vmem:[#allocation2 + $0x188] sm:$0xff] }
 0x4af   : > { %v2755_v37 = vpop.permute.xlu2 %2754  ;;  %2950 = vrot.lane.b32.xlu0 %v5974_v54, %s4504_s26  ;;  %v2741_v44 = vpop.permute.xlu1 %2740 }
 0x4b0   : > { %2824 = vst.msk [vmem:[#allocation3 + $0xd0] sm:$0xff] %vm792_vm3, %v2755_v37 }
 0x4b1   : > { %2817 = vst.msk [vmem:[#allocation3 + $0x98] sm:$0xff] %vm792_vm3, %v2741_v44  ;;  %v2739_v32 = vpop.permute.xlu0 %2738  ;;  %v6318_v44 = vld [vmem:[#allocation2 + $0x181] sm:$0xff] }
 0x4b2   : > { %2816 = vst.msk [vmem:[#allocation3 + $0x90] sm:$0xff] %vm792_vm3, %v2739_v32  ;;  %v6329_v32 = vld [vmem:[#allocation2 + $0x189] sm:$0xff] }
 0x4b5   : > { %2954 = vrot.lane.b32.xlu2 %v2860_v13, %s4504_s26  ;;  %3086 = vrot.lane.b32.xlu1 %v3022_v2, %s4505_s27 }
 0x4b7   : > { %v2761_v52 = vpop.permute.xlu2 %2760  ;;  %2956 = vrot.lane.b32.xlu0 %v2861_v60, %s4504_s26  ;;  %v2747_v14 = vpop.permute.xlu1 %2746 }
 0x4b8   : > { %2827 = vst.msk [vmem:[#allocation3 + $0xe8] sm:$0xff] %vm792_vm3, %v2761_v52  ;;  %v7001_v52 = vld [vmem:[#allocation6_spill] sm:$0xff] }
 0x4b9   : > { %2820 = vst.msk [vmem:[#allocation3 + $0xb0] sm:$0xff] %vm792_vm3, %v2747_v14  ;;  %v2745_v54 = vpop.permute.xlu0 %2744 }
 0x4ba   : > { %2819 = vst.msk [vmem:[#allocation3 + $0xa8] sm:$0xff] %vm792_vm3, %v2745_v54 }
 0x4bd   : > { %3088 = vrot.lane.b32.xlu2 %v3023_v55, %s4505_s27  ;;  %3092 = vrot.lane.b32.xlu1 %v6218_v58, %s4505_s27 }
 0x4bf   : > { %v2895_v11 = vpop.permute.xlu2 %2894  ;;  %3090 = vrot.lane.b32.xlu0 %v6223_v10, %s4505_s27  ;;  %v2753_v53 = vpop.permute.xlu1 %2752 }
 0x4c0   : > { %2990 = vst.msk [vmem:[#allocation3] sm:$0xff] %vm985_vm4, %v2895_v11  ;;  %v7004_v11 = vld [vmem:[#allocation8_spill] sm:$0xff] }
 0x4c1   : > { %2823 = vst.msk [vmem:[#allocation3 + $0xc8] sm:$0xff] %vm792_vm3, %v2753_v53  ;;  %v2751_v3 = vpop.permute.xlu0 %2750  ;;  %v7005_v53 = vld [vmem:[#allocation12_spill] sm:$0xff] }
 0x4c2   : > { %2822 = vst.msk [vmem:[#allocation3 + $0xc0] sm:$0xff] %vm792_vm3, %v2751_v3 }
 0x4c5   : > { %3094 = vrot.lane.b32.xlu2 %v6230_v8, %s4505_s27  ;;  %3098 = vrot.lane.b32.xlu1 %v6232_v29, %s4505_s27 }
 0x4c7   : > { %v2901_v33 = vpop.permute.xlu2 %2900  ;;  %3096 = vrot.lane.b32.xlu0 %v6238_v63, %s4505_s27  ;;  %v2759_v61 = vpop.permute.xlu1 %2758 }
 0x4c8   : > { %2993 = vst.msk [vmem:[#allocation3 + $0x18] sm:$0xff] %vm985_vm4, %v2901_v33  ;;  %v7006_v33 = vld [vmem:[#allocation10_spill] sm:$0xff] }
 0x4c9   : > { %2826 = vst.msk [vmem:[#allocation3 + $0xe0] sm:$0xff] %vm792_vm3, %v2759_v61  ;;  %v2757_v46 = vpop.permute.xlu0 %2756 }
 0x4ca   : > { %2825 = vst.msk [vmem:[#allocation3 + $0xd8] sm:$0xff] %vm792_vm3, %v2757_v46 }
 0x4cd   : > { %3100 = vrot.lane.b32.xlu2 %v6245_v48, %s4505_s27  ;;  %3104 = vrot.lane.b32.xlu1 %v6247_v26, %s4505_s27 }
 0x4cf   : > { %v2907_v36 = vpop.permute.xlu2 %2906  ;;  %3102 = vrot.lane.b32.xlu0 %v6253_v31, %s4505_s27  ;;  %v2765_v35 = vpop.permute.xlu1 %2764 }
 0x4d0   : > { %2996 = vst.msk [vmem:[#allocation3 + $0x30] sm:$0xff] %vm985_vm4, %v2907_v36  ;;  %v7007_v36 = vld [vmem:[#allocation14_spill] sm:$0xff] }
 0x4d1   : > { %2829 = vst.msk [vmem:[#allocation3 + $0xf8] sm:$0xff] %vm792_vm3, %v2765_v35  ;;  %v2763_v47 = vpop.permute.xlu0 %2762  ;;  %v7008_v35 = vld [vmem:[#allocation15_spill] sm:$0xff] }
 0x4d2   : > { %2828 = vst.msk [vmem:[#allocation3 + $0xf0] sm:$0xff] %vm792_vm3, %v2763_v47 }
 0x4d5   : > { %3106 = vrot.lane.b32.xlu2 %v6260_v49, %s4505_s27  ;;  %3110 = vrot.lane.b32.xlu1 %v5807_v1, %s4505_s27 }
 0x4d7   : > { %v2913_v34 = vpop.permute.xlu2 %2912  ;;  %3108 = vrot.lane.b32.xlu0 %v6266_v24, %s4505_s27  ;;  %v2899_v56 = vpop.permute.xlu1 %2898 }
 0x4d8   : > { %2999 = vst.msk [vmem:[#allocation3 + $0x48] sm:$0xff] %vm985_vm4, %v2913_v34  ;;  %v7009_v34 = vld [vmem:[#allocation13_spill] sm:$0xff] }
 0x4d9   : > { %2992 = vst.msk [vmem:[#allocation3 + $0x10] sm:$0xff] %vm985_vm4, %v2899_v56  ;;  %v2897_v18 = vpop.permute.xlu0 %2896 }
 0x4da   : > { %2991 = vst.msk [vmem:[#allocation3 + $0x8] sm:$0xff] %vm985_vm4, %v2897_v18 }
 0x4dd   : > { %3112 = vrot.lane.b32.xlu2 %v5823_v42, %s4505_s27  ;;  %3116 = vrot.lane.b32.xlu1 %v5862_v15, %s4505_s27 }
 0x4df   : > { %v2919_v1 = vpop.permute.xlu2 %2918  ;;  %3114 = vrot.lane.b32.xlu0 %v5843_v51, %s4505_s27  ;;  %v2905_v57 = vpop.permute.xlu1 %2904 }
 0x4e0   : > { %3002 = vst.msk [vmem:[#allocation3 + $0x60] sm:$0xff] %vm985_vm4, %v2919_v1  ;;  %v7010_v1 = vld [vmem:[#allocation17_spill] sm:$0xff] }
 0x4e1   : > { %2995 = vst.msk [vmem:[#allocation3 + $0x28] sm:$0xff] %vm985_vm4, %v2905_v57  ;;  %v2903_v37 = vpop.permute.xlu0 %2902  ;;  %v7011_v57 = vld [vmem:[#allocation18_spill] sm:$0xff] }
 0x4e2   : > { %2994 = vst.msk [vmem:[#allocation3 + $0x20] sm:$0xff] %vm985_vm4, %v2903_v37 }
 0x4e5   : > { %3118 = vrot.lane.b32.xlu2 %v5841_v5, %s4505_s27  ;;  %3122 = vrot.lane.b32.xlu1 %v5891_v59, %s4505_s27 }
 0x4e7   : > { %v2925_v42 = vpop.permute.xlu2 %2924  ;;  %3120 = vrot.lane.b32.xlu0 %v5864_v22, %s4505_s27  ;;  %v2911_v15 = vpop.permute.xlu1 %2910 }
 0x4e8   : > { %3005 = vst.msk [vmem:[#allocation3 + $0x78] sm:$0xff] %vm985_vm4, %v2925_v42  ;;  %v7012_v42 = vld [vmem:[#allocation16_spill] sm:$0xff] }
 0x4e9   : > { %2998 = vst.msk [vmem:[#allocation3 + $0x40] sm:$0xff] %vm985_vm4, %v2911_v15  ;;  %v2909_v51 = vpop.permute.xlu0 %2908 }
 0x4ea   : > { %2997 = vst.msk [vmem:[#allocation3 + $0x38] sm:$0xff] %vm985_vm4, %v2909_v51 }
 0x4ed   : > { %3124 = vrot.lane.b32.xlu2 %v5871_v0, %s4505_s27  ;;  %3128 = vrot.lane.b32.xlu1 %v5912_v38, %s4505_s27 }
 0x4ef   : > { %v2931_v5 = vpop.permute.xlu2 %2930  ;;  %3126 = vrot.lane.b32.xlu0 %v5893_v17, %s4505_s27  ;;  %v2917_v59 = vpop.permute.xlu1 %2916 }
 0x4f0   : > { %3008 = vst.msk [vmem:[#allocation3 + $0x90] sm:$0xff] %vm985_vm4, %v2931_v5  ;;  %v7013_v5 = vld [vmem:[#allocation20_spill] sm:$0xff] }
 0x4f1   : > { %3001 = vst.msk [vmem:[#allocation3 + $0x58] sm:$0xff] %vm985_vm4, %v2917_v59  ;;  %v2915_v22 = vpop.permute.xlu0 %2914  ;;  %v7014_v59 = vld [vmem:[#allocation21_spill] sm:$0xff] }
 0x4f2   : > { %3000 = vst.msk [vmem:[#allocation3 + $0x50] sm:$0xff] %vm985_vm4, %v2915_v22 }
 0x4f5   : > { %3130 = vrot.lane.b32.xlu2 %v5900_v9, %s4505_s27  ;;  %3134 = vrot.lane.b32.xlu1 %v5935_v16, %s4505_s27 }
 0x4f7   : > { %v2937_v0 = vpop.permute.xlu2 %2936  ;;  %3132 = vrot.lane.b32.xlu0 %v5914_v40, %s4505_s27  ;;  %v2923_v38 = vpop.permute.xlu1 %2922 }
 0x4f8   : > { %3011 = vst.msk [vmem:[#allocation3 + $0xa8] sm:$0xff] %vm985_vm4, %v2937_v0  ;;  %v7015_v0 = vld [vmem:[#allocation19_spill] sm:$0xff] }
 0x4f9   : > { %3004 = vst.msk [vmem:[#allocation3 + $0x70] sm:$0xff] %vm985_vm4, %v2923_v38  ;;  %v2921_v17 = vpop.permute.xlu0 %2920 }
 0x4fa   : > { %3003 = vst.msk [vmem:[#allocation3 + $0x68] sm:$0xff] %vm985_vm4, %v2921_v17 }
 0x4fd   : > { %3136 = vrot.lane.b32.xlu2 %v5921_v41, %s4505_s27  ;;  %3140 = vrot.lane.b32.xlu1 %v5957_v25, %s4505_s27 }
 0x4ff   : > { %v2943_v9 = vpop.permute.xlu2 %2942  ;;  %3138 = vrot.lane.b32.xlu0 %v5937_v50, %s4505_s27  ;;  %v2929_v16 = vpop.permute.xlu1 %2928 }
 0x500   : > { %3014 = vst.msk [vmem:[#allocation3 + $0xc0] sm:$0xff] %vm985_vm4, %v2943_v9  ;;  %v7016_v9 = vld [vmem:[#allocation23_spill] sm:$0xff] }
 0x501   : > { %3007 = vst.msk [vmem:[#allocation3 + $0x88] sm:$0xff] %vm985_vm4, %v2929_v16  ;;  %v2927_v40 = vpop.permute.xlu0 %2926  ;;  %v7017_v16 = vld [vmem:[#allocation24_spill] sm:$0xff] }
 0x502   : > { %3006 = vst.msk [vmem:[#allocation3 + $0x80] sm:$0xff] %vm985_vm4, %v2927_v40 }
 0x505   : > { %3142 = vrot.lane.b32.xlu2 %v5950_v43, %s4505_s27  ;;  %3146 = vrot.lane.b32.xlu1 %v6318_v44, %s4505_s27 }
 0x507   : > { %v2949_v41 = vpop.permute.xlu2 %2948  ;;  %3144 = vrot.lane.b32.xlu0 %v5966_v30, %s4505_s27  ;;  %v2935_v50 = vpop.permute.xlu1 %2934 }
 0x508   : > { %3017 = vst.msk [vmem:[#allocation3 + $0xd8] sm:$0xff] %vm985_vm4, %v2949_v41  ;;  %v7018_v41 = vld [vmem:[#allocation22_spill] sm:$0xff] }
 0x509   : > { %3010 = vst.msk [vmem:[#allocation3 + $0xa0] sm:$0xff] %vm985_vm4, %v2935_v50  ;;  %v2933_v25 = vpop.permute.xlu0 %2932 }
 0x50a   : > { %3009 = vst.msk [vmem:[#allocation3 + $0x98] sm:$0xff] %vm985_vm4, %v2933_v25 }
 0x50d   : > { %3148 = vrot.lane.b32.xlu2 %v6329_v32, %s4505_s27  ;;  %3280 = vrot.lane.b32.xlu1 %v5995_v4, %s4506_s28 }
 0x50f   : > { %v2955_v43 = vpop.permute.xlu2 %2954  ;;  %3278 = vrot.lane.b32.xlu0 %v5987_v39, %s4506_s28  ;;  %v2941_v30 = vpop.permute.xlu1 %2940 }
 0x510   : > { %3020 = vst.msk [vmem:[#allocation3 + $0xf0] sm:$0xff] %vm985_vm4, %v2955_v43  ;;  %v3614_v43 = vld [vmem:[#allocation2 + $0xf1] sm:$0xff] }
 0x511   : > { %3013 = vst.msk [vmem:[#allocation3 + $0xb8] sm:$0xff] %vm985_vm4, %v2941_v30  ;;  %v2939_v13 = vpop.permute.xlu0 %2938  ;;  %v7019_v30 = vld [vmem:[#allocation26_spill] sm:$0xff] }
 0x512   : > { %3012 = vst.msk [vmem:[#allocation3 + $0xb0] sm:$0xff] %vm985_vm4, %v2939_v13 }
 0x515   : > { %3282 = vrot.lane.b32.xlu2 %v5989_v21, %s4506_s28  ;;  %3286 = vrot.lane.b32.xlu1 %v6009_v28, %s4506_s28  ;;  %v7000_v28 = vld [vmem:[#allocation5_spill] sm:$0xff] }
 0x517   : > { %v3089_v2 = vpop.permute.xlu2 %3088  ;;  %3284 = vrot.lane.b32.xlu0 %v6001_v27, %s4506_s28  ;;  %v2947_v4 = vpop.permute.xlu1 %2946 }
 0x518   : > { %3183 = vst.msk [vmem:[#allocation3 + $0x8] sm:$0xff] %vm1178_vm5, %v3089_v2 }
 0x519   : > { %3016 = vst.msk [vmem:[#allocation3 + $0xd0] sm:$0xff] %vm985_vm4, %v2947_v4  ;;  %v2945_v39 = vpop.permute.xlu0 %2944 }
 0x51a   : > { %3015 = vst.msk [vmem:[#allocation3 + $0xc8] sm:$0xff] %vm985_vm4, %v2945_v39  ;;  %v3406_v39 = vld [vmem:[#allocation2 + $0x30] sm:$0xff] }
 0x51d   : > { %3288 = vrot.lane.b32.xlu2 %v6003_v23, %s4506_s28  ;;  %3292 = vrot.lane.b32.xlu1 %v6022_v62, %s4506_s28  ;;  %v7002_v23 = vld [vmem:[#allocation11_spill] sm:$0xff]  ;;  %v7003_v62 = vld [vmem:[#allocation9_spill] sm:$0xff] }
 0x51f   : > { %v3095_v21 = vpop.permute.xlu2 %3094  ;;  %3290 = vrot.lane.b32.xlu0 %v7000_v28, %s4506_s28  ;;  %v2953_v60 = vpop.permute.xlu1 %2952 }
 0x520   : > { %3186 = vst.msk [vmem:[#allocation3 + $0x20] sm:$0xff] %vm1178_vm5, %v3095_v21 }
 0x521   : > { %3019 = vst.msk [vmem:[#allocation3 + $0xe8] sm:$0xff] %vm985_vm4, %v2953_v60  ;;  %v2951_v27 = vpop.permute.xlu0 %2950  ;;  %v3615_v60 = vld [vmem:[#allocation2 + $0xf9] sm:$0xff] }
 0x522   : > { %3018 = vst.msk [vmem:[#allocation3 + $0xe0] sm:$0xff] %vm985_vm4, %v2951_v27  ;;  %v3790_v27 = vld [vmem:[#allocation2 + $0x32] sm:$0xff] }
 0x525   : > { %3294 = vrot.lane.b32.xlu2 %v7001_v52, %s4506_s28  ;;  %3298 = vrot.lane.b32.xlu1 %v7002_v23, %s4506_s28 }
 0x527   : > { %v3101_v14 = vpop.permute.xlu2 %3100  ;;  %3296 = vrot.lane.b32.xlu0 %v7003_v62, %s4506_s28  ;;  %v3087_v54 = vpop.permute.xlu1 %3086 }
 0x528   : > { %3189 = vst.msk [vmem:[#allocation3 + $0x38] sm:$0xff] %vm1178_vm5, %v3101_v14 }
 0x529   : > { %3182 = vst.msk [vmem:[#allocation3] sm:$0xff] %vm1178_vm5, %v3087_v54  ;;  %v2957_v55 = vpop.permute.xlu0 %2956 }
 0x52a   : > { %3021 = vst.msk [vmem:[#allocation3 + $0xf8] sm:$0xff] %vm985_vm4, %v2957_v55  ;;  %v3616_v55 = vld [vmem:[#allocation2 + $0x109] sm:$0xff] }
 0x52d   : > { %3300 = vrot.lane.b32.xlu2 %v7004_v11, %s4506_s28  ;;  %3304 = vrot.lane.b32.xlu1 %v7005_v53, %s4506_s28  ;;  %v3791_v11 = vld [vmem:[#allocation2 + $0x3a] sm:$0xff] }
 0x52f   : > { %v3107_v3 = vpop.permute.xlu2 %3106  ;;  %3302 = vrot.lane.b32.xlu0 %v7006_v33, %s4506_s28  ;;  %v3093_v61 = vpop.permute.xlu1 %3092  ;;  %v3808_v33 = vld [vmem:[#allocation2 + $0x10a] sm:$0xff] }
 0x530   : > { %3192 = vst.msk [vmem:[#allocation3 + $0x50] sm:$0xff] %vm1178_vm5, %v3107_v3 }
 0x531   : > { %3185 = vst.msk [vmem:[#allocation3 + $0x18] sm:$0xff] %vm1178_vm5, %v3093_v61  ;;  %v3091_v46 = vpop.permute.xlu0 %3090 }
 0x532   : > { %3184 = vst.msk [vmem:[#allocation3 + $0x10] sm:$0xff] %vm1178_vm5, %v3091_v46 }
 0x535   : > { %3306 = vrot.lane.b32.xlu2 %v7007_v36, %s4506_s28  ;;  %3310 = vrot.lane.b32.xlu1 %v7008_v35, %s4506_s28  ;;  %v3617_v35 = vld [vmem:[#allocation2 + $0x111] sm:$0xff] }
 0x537   : > { %v3113_v47 = vpop.permute.xlu2 %3112  ;;  %3308 = vrot.lane.b32.xlu0 %v7009_v34, %s4506_s28  ;;  %v3099_v56 = vpop.permute.xlu1 %3098 }
 0x538   : > { %3195 = vst.msk [vmem:[#allocation3 + $0x68] sm:$0xff] %vm1178_vm5, %v3113_v47  ;;  %v3792_v47 = vld [vmem:[#allocation2 + $0x4a] sm:$0xff] }
 0x539   : > { %3188 = vst.msk [vmem:[#allocation3 + $0x30] sm:$0xff] %vm1178_vm5, %v3099_v56  ;;  %v3097_v18 = vpop.permute.xlu0 %3096 }
 0x53a   : > { %3187 = vst.msk [vmem:[#allocation3 + $0x28] sm:$0xff] %vm1178_vm5, %v3097_v18  ;;  %v3809_v18 = vld [vmem:[#allocation2 + $0x112] sm:$0xff] }
 0x53d   : > { %3312 = vrot.lane.b32.xlu2 %v7010_v1, %s4506_s28  ;;  %3316 = vrot.lane.b32.xlu1 %v7011_v57, %s4506_s28 }
 0x53f   : > { %v3119_v37 = vpop.permute.xlu2 %3118  ;;  %3314 = vrot.lane.b32.xlu0 %v7012_v42, %s4506_s28  ;;  %v3105_v15 = vpop.permute.xlu1 %3104 }
 0x540   : > { %3198 = vst.msk [vmem:[#allocation3 + $0x80] sm:$0xff] %vm1178_vm5, %v3119_v37 }
 0x541   : > { %3191 = vst.msk [vmem:[#allocation3 + $0x48] sm:$0xff] %vm1178_vm5, %v3105_v15  ;;  %v3103_v51 = vpop.permute.xlu0 %3102  ;;  %v3793_v15 = vld [vmem:[#allocation2 + $0x52] sm:$0xff] }
 0x542   : > { %3190 = vst.msk [vmem:[#allocation3 + $0x40] sm:$0xff] %vm1178_vm5, %v3103_v51 }
 0x545   : > { %3318 = vrot.lane.b32.xlu2 %v7013_v5, %s4506_s28  ;;  %3322 = vrot.lane.b32.xlu1 %v7014_v59, %s4506_s28  ;;  %v3810_v59 = vld [vmem:[#allocation2 + $0x122] sm:$0xff] }
 0x547   : > { %v3125_v22 = vpop.permute.xlu2 %3124  ;;  %3320 = vrot.lane.b32.xlu0 %v7015_v0, %s4506_s28  ;;  %v3111_v38 = vpop.permute.xlu1 %3110 }
 0x548   : > { %3201 = vst.msk [vmem:[#allocation3 + $0x98] sm:$0xff] %vm1178_vm5, %v3125_v22 }
 0x549   : > { %3194 = vst.msk [vmem:[#allocation3 + $0x60] sm:$0xff] %vm1178_vm5, %v3111_v38  ;;  %v3109_v17 = vpop.permute.xlu0 %3108 }
 0x54a   : > { %3193 = vst.msk [vmem:[#allocation3 + $0x58] sm:$0xff] %vm1178_vm5, %v3109_v17  ;;  %v3427_v17 = vld [vmem:[#allocation2 + $0x128] sm:$0xff] }
 0x54d   : > { %3324 = vrot.lane.b32.xlu2 %v7016_v9, %s4506_s28  ;;  %3328 = vrot.lane.b32.xlu1 %v7017_v16, %s4506_s28  ;;  %v3619_v9 = vld [vmem:[#allocation2 + $0x129] sm:$0xff] }
 0x54e   : > { %v3794_v16 = vld [vmem:[#allocation2 + $0x62] sm:$0xff] }
 0x54f   : > { %v3131_v40 = vpop.permute.xlu2 %3130  ;;  %3326 = vrot.lane.b32.xlu0 %v7018_v41, %s4506_s28  ;;  %v3117_v50 = vpop.permute.xlu1 %3116 }
 0x550   : > { %3204 = vst.msk [vmem:[#allocation3 + $0xb0] sm:$0xff] %vm1178_vm5, %v3131_v40 }
 0x551   : > { %3197 = vst.msk [vmem:[#allocation3 + $0x78] sm:$0xff] %vm1178_vm5, %v3117_v50  ;;  %v3115_v25 = vpop.permute.xlu0 %3114  ;;  %v3811_v50 = vld [vmem:[#allocation2 + $0x12a] sm:$0xff] }
 0x552   : > { %3196 = vst.msk [vmem:[#allocation3 + $0x70] sm:$0xff] %vm1178_vm5, %v3115_v25  ;;  %v4018_v25 = vld [vmem:[%s6873_s3 + $0x20] sm:$0xf] }
 0x553   : > { %4470 = vmatpush.msk.msra.mxu3 %vm2121_vm9, %v4018_v25  ;;  %4428 = vmatpush.msk.msra.mxu1 %vm2121_vm9, %v4018_v25 }
 0x555   : > { %3330 = vrot.lane.b32.xlu2 %v7019_v30, %s4506_s28  ;;  %3694 = vrot.lane.b32.xlu1 %v3614_v43, %s4508_s30  ;;  %v4017_v43 = vld [vmem:[%s6873_s3 + $0x18] sm:$0xff]  ;;  %v3411_v30 = vld [vmem:[#allocation2 + $0x68] sm:$0xff] }
 0x556   : > { %4471 = vmatpush.msra.mxu3 %v4017_v43  ;;  %4134 = vmatpush.msra.mxu1 %v4017_v43  ;;  %v3816_v43 = vld [vmem:[#allocation2 + $0x16a] sm:$0xff] }
 0x557   : > { %v3137_v13 = vpop.permute.xlu2 %3136  ;;  %3502 = vrot.lane.b32.xlu0 %v5778_v45, %s4507_s29  ;;  %v3123_v2 = vpop.permute.xlu1 %3122 }
 0x558   : > { %3207 = vst.msk [vmem:[#allocation3 + $0xc8] sm:$0xff] %vm1178_vm5, %v3137_v13 }
 0x559   : > { %3200 = vst.msk [vmem:[#allocation3 + $0x90] sm:$0xff] %vm1178_vm5, %v3123_v2  ;;  %v3121_v4 = vpop.permute.xlu0 %3120 }
 0x55a   : > { %3199 = vst.msk [vmem:[#allocation3 + $0x88] sm:$0xff] %vm1178_vm5, %v3121_v4  ;;  %v4016_v4 = vld [vmem:[%s6873_s3 + $0x10] sm:$0xff] }
 0x55b   : > { %4472 = vmatpush.msra.mxu3 %v4016_v4  ;;  %4135 = vmatpush.msra.mxu1 %v4016_v4 }
 0x55d   : > { %3886 = vrot.lane.b32.xlu2 %v7012_v42, %s4509_s6  ;;  %3662 = vrot.lane.b32.xlu1 %v6223_v10, %s4508_s30  ;;  %v3618_v42 = vld [vmem:[#allocation2 + $0x121] sm:$0xff] }
 0x55f   : > { %v3143_v21 = vpop.permute.xlu2 %3142  ;;  %3470 = vrot.lane.b32.xlu0 %v3406_v39, %s4507_s29  ;;  %v3129_v28 = vpop.permute.xlu1 %3128  ;;  %v4015_v39 = vld [vmem:[%s6873_s3 + $0x8] sm:$0xff] }
 0x560   : > { %3210 = vst.msk [vmem:[#allocation3 + $0xe0] sm:$0xff] %vm1178_vm5, %v3143_v21  ;;  %v4014_v21 = vld [vmem:[%s6873_s3] sm:$0xff]  ;;  %4473 = vmatpush.msra.mxu3 %v4015_v39  ;;  %4136 = vmatpush.msra.mxu1 %v4015_v39 }
 0x561   : > { %3203 = vst.msk [vmem:[#allocation3 + $0xa8] sm:$0xff] %vm1178_vm5, %v3129_v28  ;;  %v3127_v45 = vpop.permute.xlu0 %3126  ;;  %v3620_v28 = vld [vmem:[#allocation2 + $0x139] sm:$0xff] }
 0x562   : > { %3202 = vst.msk [vmem:[#allocation3 + $0xa0] sm:$0xff] %vm1178_vm5, %v3127_v45  ;;  %v3795_v45 = vld [vmem:[#allocation2 + $0x6a] sm:$0xff]  ;;  %4474 = vmatpush.msra.mxu3 %v4014_v21  ;;  %4137 = vmatpush.msra.mxu1 %v4014_v21 }
 0x563   : > { %v3608_v21 = vld [vmem:[#allocation2 + $0xa9] sm:$0xff] }
 0x565   : > { %3504 = vrot.lane.b32.xlu2 %v5774_v7, %s4507_s29  ;;  %3696 = vrot.lane.b32.xlu1 %v3615_v60, %s4508_s30  ;;  %v3407_v7 = vld [vmem:[#allocation2 + $0x38] sm:$0xff] }
 0x567   : > { %v3149_v10 = vpop.permute.xlu2 %3148  ;;  %3854 = vrot.lane.b32.xlu0 %v3790_v27, %s4509_s6  ;;  %v3135_v52 = vpop.permute.xlu1 %3134 }
 0x568   : > { %3213 = vst.msk [vmem:[#allocation3 + $0xf8] sm:$0xff] %vm1178_vm5, %v3149_v10 }
 0x569   : > { %3206 = vst.msk [vmem:[#allocation3 + $0xc0] sm:$0xff] %vm1178_vm5, %v3135_v52  ;;  %v3133_v23 = vpop.permute.xlu0 %3132  ;;  %v3812_v52 = vld [vmem:[#allocation2 + $0x13a] sm:$0xff] }
 0x56a   : > { %3205 = vst.msk [vmem:[#allocation3 + $0xb8] sm:$0xff] %vm1178_vm5, %v3133_v23 }
 0x56d   : > { %3888 = vrot.lane.b32.xlu2 %v7011_v57, %s4509_s6  ;;  %3664 = vrot.lane.b32.xlu1 %v6218_v58, %s4508_s30 }
 0x56f   : > { %v3283_v14 = vpop.permute.xlu2 %3282  ;;  %3472 = vrot.lane.b32.xlu0 %v3407_v7, %s4507_s29  ;;  %v3141_v62 = vpop.permute.xlu1 %3140 }
 0x570   : > { %3376 = vst.msk [vmem:[#allocation3 + $0x10] sm:$0xff] %vm1371_vm6, %v3283_v14 }
 0x571   : > { %3209 = vst.msk [vmem:[#allocation3 + $0xd8] sm:$0xff] %vm1178_vm5, %v3141_v62  ;;  %v3139_v54 = vpop.permute.xlu0 %3138  ;;  %v3429_v62 = vld [vmem:[#allocation2 + $0x140] sm:$0xff] }
 0x572   : > { %3208 = vst.msk [vmem:[#allocation3 + $0xd0] sm:$0xff] %vm1178_vm5, %v3139_v54  ;;  %v3621_v54 = vld [vmem:[#allocation2 + $0x141] sm:$0xff] }
 0x575   : > { %3506 = vrot.lane.b32.xlu2 %v5805_v19, %s4507_s29  ;;  %3698 = vrot.lane.b32.xlu1 %v3616_v55, %s4508_s30  ;;  %v3408_v19 = vld [vmem:[#allocation2 + $0x48] sm:$0xff]  ;;  %v3796_v55 = vld [vmem:[#allocation2 + $0x7a] sm:$0xff] }
 0x577   : > { %v3289_v58 = vpop.permute.xlu2 %3288  ;;  %3856 = vrot.lane.b32.xlu0 %v3791_v11, %s4509_s6  ;;  %v3147_v53 = vpop.permute.xlu1 %3146 }
 0x578   : > { %3379 = vst.msk [vmem:[#allocation3 + $0x28] sm:$0xff] %vm1371_vm6, %v3289_v58 }
 0x579   : > { %3212 = vst.msk [vmem:[#allocation3 + $0xf0] sm:$0xff] %vm1178_vm5, %v3147_v53  ;;  %v3145_v3 = vpop.permute.xlu0 %3144  ;;  %v3813_v53 = vld [vmem:[#allocation2 + $0x142] sm:$0xff] }
 0x57a   : > { %3211 = vst.msk [vmem:[#allocation3 + $0xe8] sm:$0xff] %vm1178_vm5, %v3145_v3  ;;  %v3413_v3 = vld [vmem:[#allocation2 + $0x80] sm:$0xff] }
 0x57d   : > { %3890 = vrot.lane.b32.xlu2 %v3808_v33, %s4509_s6  ;;  %3666 = vrot.lane.b32.xlu1 %v6230_v8, %s4508_s30 }
 0x57f   : > { %v3295_v61 = vpop.permute.xlu2 %3294  ;;  %3474 = vrot.lane.b32.xlu0 %v3408_v19, %s4507_s29  ;;  %v3281_v46 = vpop.permute.xlu1 %3280 }
 0x580   : > { %3382 = vst.msk [vmem:[#allocation3 + $0x40] sm:$0xff] %vm1371_vm6, %v3295_v61 }
 0x581   : > { %3375 = vst.msk [vmem:[#allocation3 + $0x8] sm:$0xff] %vm1371_vm6, %v3281_v46  ;;  %v3279_v36 = vpop.permute.xlu0 %3278 }
 0x582   : > { %3374 = vst.msk [vmem:[#allocation3] sm:$0xff] %vm1371_vm6, %v3279_v36  ;;  %v3430_v36 = vld [vmem:[#allocation2 + $0x150] sm:$0xff] }
 0x585   : > { %3508 = vrot.lane.b32.xlu2 %v5814_v20, %s4507_s29  ;;  %3700 = vrot.lane.b32.xlu1 %v3617_v35, %s4508_s30  ;;  %v3409_v20 = vld [vmem:[#allocation2 + $0x50] sm:$0xff] }
 0x586   : > { %v3622_v35 = vld [vmem:[#allocation2 + $0x151] sm:$0xff] }
 0x587   : > { %v3301_v8 = vpop.permute.xlu2 %3300  ;;  %3858 = vrot.lane.b32.xlu0 %v3792_v47, %s4509_s6  ;;  %v3287_v34 = vpop.permute.xlu1 %3286 }
 0x588   : > { %3385 = vst.msk [vmem:[#allocation3 + $0x58] sm:$0xff] %vm1371_vm6, %v3301_v8 }
 0x589   : > { %3378 = vst.msk [vmem:[#allocation3 + $0x20] sm:$0xff] %vm1371_vm6, %v3287_v34  ;;  %v3285_v56 = vpop.permute.xlu0 %3284 }
 0x58a   : > { %3377 = vst.msk [vmem:[#allocation3 + $0x18] sm:$0xff] %vm1371_vm6, %v3285_v56  ;;  %v3814_v56 = vld [vmem:[#allocation2 + $0x152] sm:$0xff] }
 0x58d   : > { %3892 = vrot.lane.b32.xlu2 %v3809_v18, %s4509_s6  ;;  %3668 = vrot.lane.b32.xlu1 %v6238_v63, %s4508_s30  ;;  %v3414_v18 = vld [vmem:[#allocation2 + $0x90] sm:$0xff] }
 0x58f   : > { %v3307_v1 = vpop.permute.xlu2 %3306  ;;  %3476 = vrot.lane.b32.xlu0 %v3409_v20, %s4507_s29  ;;  %v3293_v57 = vpop.permute.xlu1 %3292 }
 0x590   : > { %3388 = vst.msk [vmem:[#allocation3 + $0x70] sm:$0xff] %vm1371_vm6, %v3307_v1 }
 0x591   : > { %3381 = vst.msk [vmem:[#allocation3 + $0x38] sm:$0xff] %vm1371_vm6, %v3293_v57  ;;  %v3291_v37 = vpop.permute.xlu0 %3290 }
 0x592   : > { %3380 = vst.msk [vmem:[#allocation3 + $0x30] sm:$0xff] %vm1371_vm6, %v3291_v37 }
 0x595   : > { %3510 = vrot.lane.b32.xlu2 %v5853_v6, %s4507_s29  ;;  %3702 = vrot.lane.b32.xlu1 %v3618_v42, %s4508_s30  ;;  %v3410_v6 = vld [vmem:[#allocation2 + $0x60] sm:$0xff] }
 0x597   : > { %v3313_v63 = vpop.permute.xlu2 %3312  ;;  %3860 = vrot.lane.b32.xlu0 %v3793_v15, %s4509_s6  ;;  %v3299_v51 = vpop.permute.xlu1 %3298  ;;  %v3431_v15 = vld [vmem:[#allocation2 + $0x158] sm:$0xff] }
 0x598   : > { %3391 = vst.msk [vmem:[#allocation3 + $0x88] sm:$0xff] %vm1371_vm6, %v3313_v63  ;;  %v3798_v63 = vld [vmem:[#allocation2 + $0x92] sm:$0xff] }
 0x599   : > { %3384 = vst.msk [vmem:[#allocation3 + $0x50] sm:$0xff] %vm1371_vm6, %v3299_v51  ;;  %v3297_v5 = vpop.permute.xlu0 %3296 }
 0x59a   : > { %3383 = vst.msk [vmem:[#allocation3 + $0x48] sm:$0xff] %vm1371_vm6, %v3297_v5 }
 0x59d   : > { %3894 = vrot.lane.b32.xlu2 %v3810_v59, %s4509_s6  ;;  %3670 = vrot.lane.b32.xlu1 %v6232_v29, %s4508_s30 }
 0x59f   : > { %v3319_v22 = vpop.permute.xlu2 %3318  ;;  %3478 = vrot.lane.b32.xlu0 %v3410_v6, %s4507_s29  ;;  %v3305_v0 = vpop.permute.xlu1 %3304  ;;  %v3815_v6 = vld [vmem:[#allocation2 + $0x15a] sm:$0xff] }
 0x5a0   : > { %3394 = vst.msk [vmem:[#allocation3 + $0xa0] sm:$0xff] %vm1371_vm6, %v3319_v22  ;;  %v3415_v22 = vld [vmem:[#allocation2 + $0x98] sm:$0xff] }
 0x5a1   : > { %3387 = vst.msk [vmem:[#allocation3 + $0x68] sm:$0xff] %vm1371_vm6, %v3305_v0  ;;  %v3303_v38 = vpop.permute.xlu0 %3302 }
 0x5a2   : > { %3386 = vst.msk [vmem:[#allocation3 + $0x60] sm:$0xff] %vm1371_vm6, %v3303_v38 }
 0x5a5   : > { %3512 = vrot.lane.b32.xlu2 %v3427_v17, %s4507_s29  ;;  %3704 = vrot.lane.b32.xlu1 %v3619_v9, %s4508_s30 }
 0x5a7   : > { %v3325_v29 = vpop.permute.xlu2 %3324  ;;  %3862 = vrot.lane.b32.xlu0 %v3794_v16, %s4509_s6  ;;  %v3311_v40 = vpop.permute.xlu1 %3310 }
 0x5a8   : > { %3397 = vst.msk [vmem:[#allocation3 + $0xb8] sm:$0xff] %vm1371_vm6, %v3325_v29  ;;  %v3432_v29 = vld [vmem:[#allocation2 + $0x168] sm:$0xff] }
 0x5a9   : > { %3390 = vst.msk [vmem:[#allocation3 + $0x80] sm:$0xff] %vm1371_vm6, %v3311_v40  ;;  %v3309_v41 = vpop.permute.xlu0 %3308  ;;  %v3799_v40 = vld [vmem:[#allocation2 + $0x9a] sm:$0xff] }
 0x5aa   : > { %3389 = vst.msk [vmem:[#allocation3 + $0x78] sm:$0xff] %vm1371_vm6, %v3309_v41 }
 0x5ad   : > { %3896 = vrot.lane.b32.xlu2 %v3811_v50, %s4509_s6  ;;  %3672 = vrot.lane.b32.xlu1 %v6245_v48, %s4508_s30 }
 0x5af   : > { %v3331_v13 = vpop.permute.xlu2 %3330  ;;  %3480 = vrot.lane.b32.xlu0 %v3411_v30, %s4507_s29  ;;  %v3317_v2 = vpop.permute.xlu1 %3316  ;;  %v3416_v30 = vld [vmem:[#allocation2 + $0xa8] sm:$0xff] }
 0x5b0   : > { %3400 = vst.msk [vmem:[#allocation3 + $0xd0] sm:$0xff] %vm1371_vm6, %v3331_v13 }
 0x5b1   : > { %3393 = vst.msk [vmem:[#allocation3 + $0x98] sm:$0xff] %vm1371_vm6, %v3317_v2  ;;  %v3315_v48 = vpop.permute.xlu0 %3314 }
 0x5b2   : > { %3392 = vst.msk [vmem:[#allocation3 + $0x90] sm:$0xff] %vm1371_vm6, %v3315_v48 }
 0x5b5   : > { %3514 = vrot.lane.b32.xlu2 %v5889_v12, %s4507_s29  ;;  %3706 = vrot.lane.b32.xlu1 %v3620_v28, %s4508_s30  ;;  %v3412_v12 = vld [vmem:[#allocation2 + $0x78] sm:$0xff]  ;;  %v3800_v28 = vld [vmem:[#allocation2 + $0xaa] sm:$0xff] }
 0x5b7   : > { %v3887_v60 = vpop.permute.xlu2 %3886  ;;  %3864 = vrot.lane.b32.xlu0 %v3795_v45, %s4509_s6  ;;  %v3323_v27 = vpop.permute.xlu1 %3322  ;;  %v3433_v45 = vld [vmem:[#allocation2 + $0x170] sm:$0xff] }
 0x5b8   : > { %3396 = vst.msk [vmem:[#allocation3 + $0xb0] sm:$0xff] %vm1371_vm6, %v3323_v27 }
 0x5b9   : > { %v3321_v10 = vpop.permute.xlu0 %3320 }
 0x5ba   : > { %3395 = vst.msk [vmem:[#allocation3 + $0xa8] sm:$0xff] %vm1371_vm6, %v3321_v10 }
 0x5bd   : > { %3898 = vrot.lane.b32.xlu2 %v3812_v52, %s4509_s6  ;;  %3674 = vrot.lane.b32.xlu1 %v6253_v31, %s4508_s30  ;;  %v3417_v52 = vld [vmem:[#allocation2 + $0xb0] sm:$0xff] }
 0x5bf   : > { %v3505_v23 = vpop.permute.xlu2 %3504  ;;  %3482 = vrot.lane.b32.xlu0 %v3412_v12, %s4507_s29  ;;  %v3329_v7 = vpop.permute.xlu1 %3328  ;;  %v7021_v12 = vld [vmem:[#allocation7_spill] sm:$0xff] }
 0x5c0   : > { %3583 = vst.msk [vmem:[#allocation3 + $0x88] sm:$0xff] %vm1564_vm7, %v3505_v23  ;;  %v3817_v23 = vld [vmem:[#allocation2 + $0x172] sm:$0xff] }
 0x5c1   : > { %3399 = vst.msk [vmem:[#allocation3 + $0xc8] sm:$0xff] %vm1371_vm6, %v3329_v7  ;;  %v3327_v14 = vpop.permute.xlu0 %3326 }
 0x5c2   : > { %3398 = vst.msk [vmem:[#allocation3 + $0xc0] sm:$0xff] %vm1371_vm6, %v3327_v14 }
 0x5c5   : > { %3516 = vrot.lane.b32.xlu2 %v3429_v62, %s4507_s29  ;;  %3708 = vrot.lane.b32.xlu1 %v3621_v54, %s4508_s30 }
 0x5c7   : > { %v3889_v31 = vpop.permute.xlu2 %3888  ;;  %3866 = vrot.lane.b32.xlu0 %v3796_v55, %s4509_s6  ;;  %v3695_v11 = vpop.permute.xlu1 %3694 }
 0x5c9   : > { %v3503_v58 = vpop.permute.xlu0 %3502 }
 0x5ca   : > { %3582 = vst.msk [vmem:[#allocation3 + $0x80] sm:$0xff] %vm1564_vm7, %v3503_v58 }
 0x5cb   : > { %3774 = vst.msk [vmem:[#allocation3 + $0x80] sm:$0xff] %vm1757_vm8, %v3695_v11  ;;  %v3609_v11 = vld [vmem:[#allocation2 + $0xb1] sm:$0xff] }
 0x5cc   : > { %3966 = vst.msk [vmem:[#allocation3 + $0x80] sm:$0xff] %vm1950_vm10, %v3887_v60 }
 0x5cd   : > { %3900 = vrot.lane.b32.xlu2 %v3813_v53, %s4509_s6  ;;  %3676 = vrot.lane.b32.xlu1 %v6247_v26, %s4508_s30  ;;  %v3797_v26 = vld [vmem:[#allocation2 + $0x82] sm:$0xff] }
 0x5cf   : > { %v3507_v33 = vpop.permute.xlu2 %3506  ;;  %3484 = vrot.lane.b32.xlu0 %v3413_v3, %s4507_s29  ;;  %v3663_v19 = vpop.permute.xlu1 %3662 }
 0x5d0   : > { %3584 = vst.msk [vmem:[#allocation3 + $0x90] sm:$0xff] %vm1564_vm7, %v3507_v33  ;;  %v3801_v33 = vld [vmem:[#allocation2 + $0xb2] sm:$0xff] }
 0x5d1   : > { %v3471_v61 = vpop.permute.xlu0 %3470 }
 0x5d2   : > { %3566 = vst.msk [vmem:[#allocation3] sm:$0xff] %vm1564_vm7, %v3471_v61 }
 0x5d3   : > { %3758 = vst.msk [vmem:[#allocation3] sm:$0xff] %vm1757_vm8, %v3663_v19  ;;  %v3998_v46 = vld [vmem:[#allocation3 + $0x80] sm:$0xff]  ;;  %v3818_v19 = vld [vmem:[#allocation2 + $0x182] sm:$0xff] }
 0x5d4   : > { %4445 = vmatmul.msk.f32.vlgmr.msra.gmra.mxu3 %vm2024_vm11, %v3998_v46 }
 0x5d5   : > { %3518 = vrot.lane.b32.xlu2 %v3430_v36, %s4507_s29  ;;  %3710 = vrot.lane.b32.xlu1 %v3622_v35, %s4508_s30 }
 0x5d7   : > { %v3891_v47 = vpop.permute.xlu2 %3890  ;;  %3868 = vrot.lane.b32.xlu0 %v3797_v26, %s4509_s6  ;;  %v3697_v8 = vpop.permute.xlu1 %3696 }
 0x5d8   : > { %3775 = vst.msk [vmem:[#allocation3 + $0x88] sm:$0xff] %vm1757_vm8, %v3697_v8  ;;  %v3610_v8 = vld [vmem:[#allocation2 + $0xc1] sm:$0xff] }
 0x5d9   : > { %3967 = vst.msk [vmem:[#allocation3 + $0x88] sm:$0xff] %vm1950_vm10, %v3889_v31  ;;  %v3855_v34 = vpop.permute.xlu0 %3854  ;;  %v3434_v31 = vld [vmem:[#allocation2 + $0x180] sm:$0xff] }
 0x5da   : > { %3950 = vst.msk [vmem:[#allocation3] sm:$0xff] %vm1950_vm10, %v3855_v34 }
 0x5dd   : > { %3902 = vrot.lane.b32.xlu2 %v3814_v56, %s4509_s6  ;;  %3678 = vrot.lane.b32.xlu1 %v6260_v49, %s4508_s30  ;;  %v3623_v49 = vld [vmem:[#allocation2 + $0x159] sm:$0xff] }
 0x5df   : > { %v3509_v20 = vpop.permute.xlu2 %3508  ;;  %3486 = vrot.lane.b32.xlu0 %v3414_v18, %s4507_s29  ;;  %v3665_v1 = vpop.permute.xlu1 %3664  ;;  %v3435_v18 = vld [vmem:[#allocation2 + $0x188] sm:$0xff] }
 0x5e0   : > { %3585 = vst.msk [vmem:[#allocation3 + $0x98] sm:$0xff] %vm1564_vm7, %v3509_v20  ;;  %v3999_v57 = vld [vmem:[#allocation3 + $0x88] sm:$0xff]  ;;  %v3802_v20 = vld [vmem:[#allocation2 + $0xc2] sm:$0xff] }
 0x5e1   : > { %v3473_v37 = vpop.permute.xlu0 %3472  ;;  %4446 = vmatmul.msk.f32.gmra.mxu3 %vm2024_vm11, %v3999_v57  ;;  %v3982_v42 = vld [vmem:[#allocation3] sm:$0xff] }
 0x5e2   : > { %3567 = vst.msk [vmem:[#allocation3 + $0x8] sm:$0xff] %vm1564_vm7, %v3473_v37  ;;  %4429 = vmatmul.msk.f32.vlgmr.msra.gmra.mxu1 %vm2024_vm11, %v3982_v42 }
 0x5e3   : > { %3759 = vst.msk [vmem:[#allocation3 + $0x8] sm:$0xff] %vm1757_vm8, %v3665_v1 }
 0x5e5   : > { %3520 = vrot.lane.b32.xlu2 %v3431_v15, %s4507_s29  ;;  %3712 = vrot.lane.b32.xlu1 %v3623_v49, %s4508_s30  ;;  %v3819_v49 = vld [vmem:[#allocation2 + $0x18a] sm:$0xff] }
 0x5e7   : > { %v3893_v51 = vpop.permute.xlu2 %3892  ;;  %3870 = vrot.lane.b32.xlu0 %v3798_v63, %s4509_s6  ;;  %v3699_v5 = vpop.permute.xlu1 %3698 }
 0x5e8   : > { %3776 = vst.msk [vmem:[#allocation3 + $0x90] sm:$0xff] %vm1757_vm8, %v3699_v5 }
 0x5e9   : > { %3968 = vst.msk [vmem:[#allocation3 + $0x90] sm:$0xff] %vm1950_vm10, %v3891_v47  ;;  %v3857_v59 = vpop.permute.xlu0 %3856  ;;  %v3418_v47 = vld [vmem:[#allocation2 + $0xc0] sm:$0xff] }
 0x5ea   : > { %3951 = vst.msk [vmem:[#allocation3 + $0x8] sm:$0xff] %vm1950_vm10, %v3857_v59  ;;  %v3611_v59 = vld [vmem:[#allocation2 + $0xc9] sm:$0xff] }
 0x5ed   : > { %3904 = vrot.lane.b32.xlu2 %v3815_v6, %s4509_s6  ;;  %3680 = vrot.lane.b32.xlu1 %v6266_v24, %s4508_s30  ;;  %v7020_v24 = vld [vmem:[#allocation4_spill] sm:$0xff] }
 0x5ef   : > { %v3511_v0 = vpop.permute.xlu2 %3510  ;;  %3488 = vrot.lane.b32.xlu0 %v3415_v22, %s4507_s29  ;;  %v3667_v38 = vpop.permute.xlu1 %3666  ;;  %v3436_v22 = vld [vmem:[#allocation2 + $0x198] sm:$0xff] }
 0x5f0   : > { %3586 = vst.msk [vmem:[#allocation3 + $0xa0] sm:$0xff] %vm1564_vm7, %v3511_v0  ;;  %v4000_v17 = vld [vmem:[#allocation3 + $0x90] sm:$0xff] }
 0x5f1   : > { %v3475_v9 = vpop.permute.xlu0 %3474  ;;  %4447 = vmatmul.msk.f32.gmra.mxu3 %vm2024_vm11, %v4000_v17  ;;  %v3983_v16 = vld [vmem:[#allocation3 + $0x8] sm:$0xff] }
 0x5f2   : > { %3568 = vst.msk [vmem:[#allocation3 + $0x10] sm:$0xff] %vm1564_vm7, %v3475_v9  ;;  %4430 = vmatmul.msk.f32.gmra.mxu1 %vm2024_vm11, %v3983_v16 }
 0x5f3   : > { %3760 = vst.msk [vmem:[#allocation3 + $0x10] sm:$0xff] %vm1757_vm8, %v3667_v38 }
 0x5f5   : > { %3522 = vrot.lane.b32.xlu2 %v3432_v29, %s4507_s29  ;;  %3714 = vrot.lane.b32.xlu1 %v7020_v24, %s4508_s30  ;;  %v3628_v29 = vld [vmem:[#allocation2 + $0x199] sm:$0xff] }
 0x5f6   : > { %v3420_v24 = vld [vmem:[#allocation2 + $0xd8] sm:$0xff] }
 0x5f7   : > { %v3895_v41 = vpop.permute.xlu2 %3894  ;;  %3872 = vrot.lane.b32.xlu0 %v3799_v40, %s4509_s6  ;;  %v3701_v50 = vpop.permute.xlu1 %3700  ;;  %v3820_v40 = vld [vmem:[#allocation2 + $0x19a] sm:$0xff] }
 0x5f8   : > { %3777 = vst.msk [vmem:[#allocation3 + $0x98] sm:$0xff] %vm1757_vm8, %v3701_v50 }
 0x5f9   : > { %3969 = vst.msk [vmem:[#allocation3 + $0x98] sm:$0xff] %vm1950_vm10, %v3893_v51  ;;  %v3859_v25 = vpop.permute.xlu0 %3858 }
 0x5fa   : > { %3952 = vst.msk [vmem:[#allocation3 + $0x10] sm:$0xff] %vm1950_vm10, %v3859_v25 }
 0x5fd   : > { %3906 = vrot.lane.b32.xlu2 %v3816_v43, %s4509_s6  ;;  %3332 = vrot.lane.b32.xlu1 %v3815_v6, %s4506_s28  ;;  %v3803_v6 = vld [vmem:[#allocation2 + $0xca] sm:$0xff] }
 0x5ff   : > { %v3513_v13 = vpop.permute.xlu2 %3512  ;;  %3490 = vrot.lane.b32.xlu0 %v3416_v30, %s4507_s29  ;;  %v3669_v2 = vpop.permute.xlu1 %3668  ;;  %v3612_v30 = vld [vmem:[#allocation2 + $0xd9] sm:$0xff] }
 0x600   : > { %3587 = vst.msk [vmem:[#allocation3 + $0xa8] sm:$0xff] %vm1564_vm7, %v3513_v13  ;;  %v4001_v4 = vld [vmem:[#allocation3 + $0x98] sm:$0xff] }
 0x601   : > { %v3477_v48 = vpop.permute.xlu0 %3476  ;;  %4448 = vmatmul.msk.f32.gmra.mxu3 %vm2024_vm11, %v4001_v4  ;;  %v3984_v39 = vld [vmem:[#allocation3 + $0x10] sm:$0xff] }
 0x602   : > { %3569 = vst.msk [vmem:[#allocation3 + $0x18] sm:$0xff] %vm1564_vm7, %v3477_v48  ;;  %4431 = vmatmul.msk.f32.gmra.mxu1 %vm2024_vm11, %v3984_v39 }
 0x603   : > { %3761 = vst.msk [vmem:[#allocation3 + $0x18] sm:$0xff] %vm1757_vm8, %v3669_v2 }
 0x605   : > { %3682 = vrot.lane.b32.xlu2 %v3608_v21, %s4508_s30  ;;  %3874 = vrot.lane.b32.xlu1 %v3800_v28, %s4509_s6  ;;  %v3804_v21 = vld [vmem:[#allocation2 + $0xda] sm:$0xff]  ;;  %v3821_v28 = vld [vmem:[#allocation2 + $0x1a2] sm:$0xff] }
 0x607   : > { %v3897_v60 = vpop.permute.xlu2 %3896  ;;  %3524 = vrot.lane.b32.xlu0 %v3433_v45, %s4507_s29  ;;  %v3703_v27 = vpop.permute.xlu1 %3702  ;;  %v6663_v45 = vld [vmem:[%s6874_s4] ss:$0 sm:$0xff] }
 0x608   : > { %3778 = vst.msk [vmem:[#allocation3 + $0xa0] sm:$0xff] %vm1757_vm8, %v3703_v27 }
 0x609   : > { %3970 = vst.msk [vmem:[#allocation3 + $0xa0] sm:$0xff] %vm1950_vm10, %v3895_v41  ;;  %v3861_v10 = vpop.permute.xlu0 %3860 }
 0x60a   : > { %3953 = vst.msk [vmem:[#allocation3 + $0x18] sm:$0xff] %vm1950_vm10, %v3861_v10 }
 0x60d   : > { %3716 = vrot.lane.b32.xlu2 %v7021_v12, %s4508_s30  ;;  %3492 = vrot.lane.b32.xlu1 %v3417_v52, %s4507_s29  ;;  %v4251_v52 = vld [vmem:[%s4556_s23 + $0x80] sm:$0xff] }
 0x60f   : > { %v3515_v7 = vpop.permute.xlu2 %3514  ;;  %3908 = vrot.lane.b32.xlu0 %v3817_v23, %s4509_s6  ;;  %v3671_v14 = vpop.permute.xlu1 %3670 }
 0x610   : > { %3588 = vst.msk [vmem:[#allocation3 + $0xb0] sm:$0xff] %vm1564_vm7, %v3515_v7  ;;  %v4002_v62 = vld [vmem:[#allocation3 + $0xa0] sm:$0xff] }
 0x611   : > { %v3479_v54 = vpop.permute.xlu0 %3478  ;;  %4449 = vmatmul.msk.f32.gmra.mxu3 %vm2024_vm11, %v4002_v62  ;;  %v3985_v55 = vld [vmem:[#allocation3 + $0x18] sm:$0xff]  ;;  %v3421_v62 = vld [vmem:[#allocation2 + $0xe0] sm:$0xff] }
 0x612   : > { %3570 = vst.msk [vmem:[#allocation3 + $0x20] sm:$0xff] %vm1564_vm7, %v3479_v54  ;;  %4432 = vmatmul.msk.f32.gmra.mxu1 %vm2024_vm11, %v3985_v55  ;;  %v3805_v54 = vld [vmem:[#allocation2 + $0xe2] sm:$0xff] }
 0x613   : > { %3762 = vst.msk [vmem:[#allocation3 + $0x20] sm:$0xff] %vm1757_vm8, %v3671_v14  ;;  %v3613_v55 = vld [vmem:[#allocation2 + $0xe1] sm:$0xff] }
 0x615   : > { %3334 = vrot.lane.b32.xlu2 %v3816_v43, %s4506_s28  ;;  %3526 = vrot.lane.b32.xlu1 %v3434_v31, %s4507_s29  ;;  %v3437_v43 = vld [vmem:[#allocation2 + $0x1a0] sm:$0xff] }
 0x617   : > { %v3899_v58 = vpop.permute.xlu2 %3898  ;;  %3684 = vrot.lane.b32.xlu0 %v3609_v11, %s4508_s30  ;;  %v3705_v53 = vpop.permute.xlu1 %3704 }
 0x618   : > { %3779 = vst.msk [vmem:[#allocation3 + $0xa8] sm:$0xff] %vm1757_vm8, %v3705_v53 }
 0x619   : > { %3971 = vst.msk [vmem:[#allocation3 + $0xa8] sm:$0xff] %vm1950_vm10, %v3897_v60  ;;  %v3863_v3 = vpop.permute.xlu0 %3862  ;;  %v3629_v60 = vld [vmem:[#allocation2 + $0x1a1] sm:$0xff] }
 0x61a   : > { %3954 = vst.msk [vmem:[#allocation3 + $0x20] sm:$0xff] %vm1950_vm10, %v3863_v3 }
 0x61d   : > { %3876 = vrot.lane.b32.xlu2 %v3801_v33, %s4509_s6  ;;  %3910 = vrot.lane.b32.xlu1 %v3818_v19, %s4509_s6 }
 0x61f   : > { %v3517_v61 = vpop.permute.xlu2 %3516  ;;  %3718 = vrot.lane.b32.xlu0 %v6318_v44, %s4508_s30  ;;  %v3673_v46 = vpop.permute.xlu1 %3672 }
 0x620   : > { %3589 = vst.msk [vmem:[#allocation3 + $0xb8] sm:$0xff] %vm1564_vm7, %v3517_v61  ;;  %v4003_v36 = vld [vmem:[#allocation3 + $0xa8] sm:$0xff] }
 0x621   : > { %v3481_v35 = vpop.permute.xlu0 %3480  ;;  %4450 = vmatmul.msk.f32.gmra.mxu3 %vm2024_vm11, %v4003_v36  ;;  %v3986_v26 = vld [vmem:[#allocation3 + $0x20] sm:$0xff] }
 0x622   : > { %3571 = vst.msk [vmem:[#allocation3 + $0x28] sm:$0xff] %vm1564_vm7, %v3481_v35  ;;  %4433 = vmatmul.msk.f32.gmra.mxu1 %vm2024_vm11, %v3986_v26  ;;  %v4252_v35 = vld [vmem:[%s4556_s23 + $0x88] sm:$0xff] }
 0x623   : > { %3763 = vst.msk [vmem:[#allocation3 + $0x28] sm:$0xff] %vm1757_vm8, %v3673_v46 }
 0x625   : > { %3494 = vrot.lane.b32.xlu2 %v3418_v47, %s4507_s29  ;;  %3686 = vrot.lane.b32.xlu1 %v3610_v8, %s4508_s30 }
 0x627   : > { %v3901_v44 = vpop.permute.xlu2 %3900  ;;  %3336 = vrot.lane.b32.xlu0 %v3817_v23, %s4506_s28  ;;  %v3707_v34 = vpop.permute.xlu1 %3706 }
 0x628   : > { %3780 = vst.msk [vmem:[#allocation3 + $0xb0] sm:$0xff] %vm1757_vm8, %v3707_v34 }
 0x629   : > { %3972 = vst.msk [vmem:[#allocation3 + $0xb0] sm:$0xff] %vm1950_vm10, %v3899_v58  ;;  %v3865_v56 = vpop.permute.xlu0 %3864  ;;  %v4235_v58 = vld [vmem:[%s4556_s23] sm:$0xff] }
 0x62a   : > { %3955 = vst.msk [vmem:[#allocation3 + $0x28] sm:$0xff] %vm1950_vm10, %v3865_v56 }
 0x62d   : > { %3528 = vrot.lane.b32.xlu2 %v3435_v18, %s4507_s29  ;;  %3720 = vrot.lane.b32.xlu1 %v6329_v32, %s4508_s30  ;;  %v3419_v32 = vld [vmem:[#allocation2 + $0xc8] sm:$0xff] }
 0x62f   : > { %v3519_v1 = vpop.permute.xlu2 %3518  ;;  %3878 = vrot.lane.b32.xlu0 %v3802_v20, %s4509_s6  ;;  %v3675_v57 = vpop.permute.xlu1 %3674  ;;  %v4236_v20 = vld [vmem:[%s4556_s23 + $0x8] sm:$0xff] }
 0x630   : > { %3590 = vst.msk [vmem:[#allocation3 + $0xc0] sm:$0xff] %vm1564_vm7, %v3519_v1  ;;  %v4004_v37 = vld [vmem:[#allocation3 + $0xb0] sm:$0xff] }
 0x631   : > { %v3483_v42 = vpop.permute.xlu0 %3482  ;;  %4451 = vmatmul.msk.f32.gmra.mxu3 %vm2024_vm11, %v4004_v37  ;;  %v3987_v15 = vld [vmem:[#allocation3 + $0x28] sm:$0xff] }
 0x632   : > { %3572 = vst.msk [vmem:[#allocation3 + $0x30] sm:$0xff] %vm1564_vm7, %v3483_v42  ;;  %4434 = vmatmul.msk.f32.gmra.mxu1 %vm2024_vm11, %v3987_v15 }
 0x633   : > { %3764 = vst.msk [vmem:[#allocation3 + $0x30] sm:$0xff] %vm1757_vm8, %v3675_v57 }
 0x635   : > { %3912 = vrot.lane.b32.xlu2 %v3819_v49, %s4509_s6  ;;  %3338 = vrot.lane.b32.xlu1 %v3818_v19, %s4506_s28 }
 0x637   : > { %v3903_v63 = vpop.permute.xlu2 %3902  ;;  %3496 = vrot.lane.b32.xlu0 %v3419_v32, %s4507_s29  ;;  %v3709_v51 = vpop.permute.xlu1 %3708 }
 0x638   : > { %3781 = vst.msk [vmem:[#allocation3 + $0xb8] sm:$0xff] %vm1757_vm8, %v3709_v51 }
 0x639   : > { %3973 = vst.msk [vmem:[#allocation3 + $0xb8] sm:$0xff] %vm1950_vm10, %v3901_v44  ;;  %v3867_v5 = vpop.permute.xlu0 %3866 }
 0x63a   : > { %3956 = vst.msk [vmem:[#allocation3 + $0x30] sm:$0xff] %vm1950_vm10, %v3867_v5 }
 0x63d   : > { %3688 = vrot.lane.b32.xlu2 %v3611_v59, %s4508_s30  ;;  %3880 = vrot.lane.b32.xlu1 %v3803_v6, %s4509_s6 }
 0x63f   : > { %v3521_v0 = vpop.permute.xlu2 %3520  ;;  %3530 = vrot.lane.b32.xlu0 %v3436_v22, %s4507_s29  ;;  %v3677_v38 = vpop.permute.xlu1 %3676 }
 0x640   : > { %3591 = vst.msk [vmem:[#allocation3 + $0xc8] sm:$0xff] %vm1564_vm7, %v3521_v0  ;;  %v4005_v17 = vld [vmem:[#allocation3 + $0xb8] sm:$0xff] }
 0x641   : > { %v3485_v9 = vpop.permute.xlu0 %3484  ;;  %4452 = vmatmul.msk.f32.gmra.mxu3 %vm2024_vm11, %v4005_v17  ;;  %v3988_v16 = vld [vmem:[#allocation3 + $0x30] sm:$0xff]  ;;  %v4237_v17 = vld [vmem:[%s4556_s23 + $0x10] sm:$0xff] }
 0x642   : > { %3573 = vst.msk [vmem:[#allocation3 + $0x38] sm:$0xff] %vm1564_vm7, %v3485_v9  ;;  %4435 = vmatmul.msk.f32.gmra.mxu1 %vm2024_vm11, %v3988_v16 }
 0x643   : > { %3765 = vst.msk [vmem:[#allocation3 + $0x38] sm:$0xff] %vm1757_vm8, %v3677_v38 }
 0x645   : > { %3722 = vrot.lane.b32.xlu2 %v3628_v29, %s4508_s30  ;;  %3498 = vrot.lane.b32.xlu1 %v3420_v24, %s4507_s29 }
 0x647   : > { %v3905_v41 = vpop.permute.xlu2 %3904  ;;  %3914 = vrot.lane.b32.xlu0 %v3820_v40, %s4509_s6  ;;  %v3711_v50 = vpop.permute.xlu1 %3710 }
 0x648   : > { %3782 = vst.msk [vmem:[#allocation3 + $0xc0] sm:$0xff] %vm1757_vm8, %v3711_v50  ;;  %v4254_v50 = vld [vmem:[%s4556_s23 + $0x98] sm:$0xff] }
 0x649   : > { %3974 = vst.msk [vmem:[#allocation3 + $0xc0] sm:$0xff] %vm1950_vm10, %v3903_v63  ;;  %v3869_v25 = vpop.permute.xlu0 %3868  ;;  %v4253_v63 = vld [vmem:[%s4556_s23 + $0x90] sm:$0xff] }
 0x64a   : > { %3957 = vst.msk [vmem:[#allocation3 + $0x38] sm:$0xff] %vm1950_vm10, %v3869_v25 }
 0x64d   : > { %3340 = vrot.lane.b32.xlu2 %v3819_v49, %s4506_s28  ;;  %3532 = vrot.lane.b32.xlu1 %v3437_v43, %s4507_s29 }
 0x64f   : > { %v3523_v13 = vpop.permute.xlu2 %3522  ;;  %3690 = vrot.lane.b32.xlu0 %v3612_v30, %s4508_s30  ;;  %v3679_v2 = vpop.permute.xlu1 %3678 }
 0x650   : > { %3592 = vst.msk [vmem:[#allocation3 + $0xd0] sm:$0xff] %vm1564_vm7, %v3523_v13  ;;  %v4006_v4 = vld [vmem:[#allocation3 + $0xc0] sm:$0xff] }
 0x651   : > { %v3487_v48 = vpop.permute.xlu0 %3486  ;;  %4453 = vmatmul.msk.f32.gmra.mxu3 %vm2024_vm11, %v4006_v4  ;;  %v3989_v39 = vld [vmem:[#allocation3 + $0x38] sm:$0xff] }
 0x652   : > { %3574 = vst.msk [vmem:[#allocation3 + $0x40] sm:$0xff] %vm1564_vm7, %v3487_v48  ;;  %4436 = vmatmul.msk.f32.gmra.mxu1 %vm2024_vm11, %v3989_v39 }
 0x653   : > { %3766 = vst.msk [vmem:[#allocation3 + $0x40] sm:$0xff] %vm1757_vm8, %v3679_v2 }
 0x655   : > { %3882 = vrot.lane.b32.xlu2 %v3804_v21, %s4509_s6  ;;  %3916 = vrot.lane.b32.xlu1 %v3821_v28, %s4509_s6  ;;  %v4238_v21 = vld [vmem:[%s4556_s23 + $0x18] sm:$0xff] }
 0x657   : > { %v3907_v27 = vpop.permute.xlu2 %3906  ;;  %3724 = vrot.lane.b32.xlu0 %v3629_v60, %s4508_s30  ;;  %v4187_v10 = vpop.f32.mrf.mxu3 }
 0x658   : > { %v4188_v12 = vadd.f32 %v6663_v45, %v4187_v10  ;;  %v3713_v23 = vpop.permute.xlu1 %3712 }
 0x659   : > { %3783 = vst.msk [vmem:[#allocation3 + $0xc8] sm:$0xff] %vm1757_vm8, %v3713_v23  ;;  %v3871_v7 = vpop.permute.xlu0 %3870  ;;  %v4255_v23 = vld [vmem:[%s4556_s23 + $0xa0] sm:$0xff] }
 0x65a   : > { %v4283_v14 = vadd.f32 %v4251_v52, %v4188_v12  ;;  %3975 = vst.msk [vmem:[#allocation3 + $0xc8] sm:$0xff] %vm1950_vm10, %v3905_v41 }
 0x65b   : > { %3958 = vst.msk [vmem:[#allocation3 + $0x40] sm:$0xff] %vm1950_vm10, %v3871_v7 }
 0x65c   : > { %4315 = vst.msk [vmem:[%s6675_s17 + $0x80] sm:$0xff] %vm258_vm0, %v4283_v14 }
 0x65d   : > { %3500 = vrot.lane.b32.xlu2 %v3421_v62, %s4507_s29  ;;  %3884 = vrot.lane.b32.xlu1 %v3805_v54, %s4509_s6 }
 0x65f   : > { %v3683_v31 = vpop.permute.xlu2 %3682  ;;  %3692 = vrot.lane.b32.xlu0 %v3613_v55, %s4508_s30  ;;  %v4139_v11 = vpop.f32.mrf.mxu1 }
 0x660   : > { %v3681_v53 = vpop.permute.xlu1 %3680  ;;  %v4140_v3 = vadd.f32 %v6663_v45, %v4139_v11 }
 0x661   : > { %v3489_v33 = vpop.permute.xlu0 %3488  ;;  %v4007_v19 = vld [vmem:[#allocation3 + $0xc8] sm:$0xff] }
 0x662   : > { %v4267_v61 = vadd.f32 %v4235_v58, %v4140_v3  ;;  %3575 = vst.msk [vmem:[#allocation3 + $0x48] sm:$0xff] %vm1564_vm7, %v3489_v33  ;;  %4454 = vmatmul.msk.f32.gmra.mxu3 %vm2024_vm11, %v4007_v19  ;;  %v3990_v46 = vld [vmem:[#allocation3 + $0x40] sm:$0xff] }
 0x663   : > { %3767 = vst.msk [vmem:[#allocation3 + $0x48] sm:$0xff] %vm1757_vm8, %v3681_v53  ;;  %4437 = vmatmul.msk.f32.gmra.mxu1 %vm2024_vm11, %v3990_v46  ;;  %v4239_v53 = vld [vmem:[%s4556_s23 + $0x20] sm:$0xff] }
 0x664   : > { %4299 = vst.msk [vmem:[%s6675_s17] sm:$0xff] %vm258_vm0, %v4267_v61  ;;  %v4190_v36 = vpop.f32.mrf.mxu3 }
 0x665   : > { %v4191_v26 = vadd.f32 %v6663_v45, %v4190_v36  ;;  %v4256_v36 = vld [vmem:[%s4556_s23 + $0xa8] sm:$0xff] }
 0x667   : > { %v4284_v47 = vadd.f32 %v4252_v35, %v4191_v26  ;;  %v3717_v8 = vpop.permute.xlu2 %3716 }
 0x668   : > { %v3715_v44 = vpop.permute.xlu1 %3714 }
 0x669   : > { %4316 = vst.msk [vmem:[%s6675_s17 + $0x88] sm:$0xff] %vm258_vm0, %v4284_v47  ;;  %v3873_v34 = vpop.permute.xlu0 %3872 }
 0x66a   : > { %3784 = vst.msk [vmem:[#allocation3 + $0xd0] sm:$0xff] %vm1757_vm8, %v3715_v44 }
 0x66b   : > { %3976 = vst.msk [vmem:[#allocation3 + $0xd0] sm:$0xff] %vm1950_vm10, %v3907_v27 }
 0x66c   : > { %3959 = vst.msk [vmem:[#allocation3 + $0x48] sm:$0xff] %vm1950_vm10, %v3873_v34 }
 0x66f   : > { %v3335_v56 = vpop.permute.xlu2 %3334  ;;  %v4142_v18 = vpop.f32.mrf.mxu1 }
 0x670   : > { %3402 = vst.msk [vmem:[#allocation3 + $0xe0] sm:$0xff] %vm1371_vm6, %v3335_v56  ;;  %v3333_v1 = vpop.permute.xlu1 %3332  ;;  %v4143_v57 = vadd.f32 %v6663_v45, %v4142_v18 }
 0x671   : > { %3401 = vst.msk [vmem:[#allocation3 + $0xd8] sm:$0xff] %vm1371_vm6, %v3333_v1  ;;  %v3491_v37 = vpop.permute.xlu0 %3490  ;;  %v4240_v1 = vld [vmem:[%s4556_s23 + $0x28] sm:$0xff] }
 0x672   : > { %v4268_v42 = vadd.f32 %v4236_v20, %v4143_v57  ;;  %3576 = vst.msk [vmem:[#allocation3 + $0x50] sm:$0xff] %vm1564_vm7, %v3491_v37  ;;  %v4008_v15 = vld [vmem:[#allocation3 + $0xd0] sm:$0xff] }
 0x673   : > { %3768 = vst.msk [vmem:[#allocation3 + $0x50] sm:$0xff] %vm1757_vm8, %v3683_v31  ;;  %4455 = vmatmul.msk.f32.gmra.mxu3 %vm2024_vm11, %v4008_v15  ;;  %v3991_v49 = vld [vmem:[#allocation3 + $0x48] sm:$0xff] }
 0x674   : > { %4300 = vst.msk [vmem:[%s6675_s17 + $0x8] sm:$0xff] %vm258_vm0, %v4268_v42  ;;  %4438 = vmatmul.msk.f32.gmra.mxu1 %vm2024_vm11, %v3991_v49  ;;  %v4193_v32 = vpop.f32.mrf.mxu3 }
 0x675   : > { %v4194_v51 = vadd.f32 %v6663_v45, %v4193_v32  ;;  %v4257_v32 = vld [vmem:[%s4556_s23 + $0xb0] sm:$0xff] }
 0x677   : > { %v4285_v5 = vadd.f32 %v4253_v63, %v4194_v51  ;;  %v3877_v59 = vpop.permute.xlu2 %3876 }
 0x678   : > { %v3875_v6 = vpop.permute.xlu1 %3874 }
 0x679   : > { %4317 = vst.msk [vmem:[%s6675_s17 + $0x90] sm:$0xff] %vm258_vm0, %v4285_v5  ;;  %v3525_v22 = vpop.permute.xlu0 %3524 }
 0x67a   : > { %3960 = vst.msk [vmem:[#allocation3 + $0x50] sm:$0xff] %vm1950_vm10, %v3875_v6 }
 0x67b   : > { %3593 = vst.msk [vmem:[#allocation3 + $0xd8] sm:$0xff] %vm1564_vm7, %v3525_v22 }
 0x67c   : > { %3785 = vst.msk [vmem:[#allocation3 + $0xd8] sm:$0xff] %vm1757_vm8, %v3717_v8 }
 0x67f   : > { %v3495_v0 = vpop.permute.xlu2 %3494  ;;  %v4145_v38 = vpop.f32.mrf.mxu1 }
 0x680   : > { %3578 = vst.msk [vmem:[#allocation3 + $0x60] sm:$0xff] %vm1564_vm7, %v3495_v0  ;;  %v3493_v9 = vpop.permute.xlu1 %3492  ;;  %v4146_v16 = vadd.f32 %v6663_v45, %v4145_v38  ;;  %v4241_v38 = vld [vmem:[%s4556_s23 + $0x30] sm:$0xff] }
 0x681   : > { %3577 = vst.msk [vmem:[#allocation3 + $0x58] sm:$0xff] %vm1564_vm7, %v3493_v9  ;;  %v3992_v29 = vld [vmem:[#allocation3 + $0x50] sm:$0xff]  ;;  %v3909_v24 = vpop.permute.xlu0 %3908 }
 0x682   : > { %v4269_v40 = vadd.f32 %v4237_v17, %v4146_v16  ;;  %4439 = vmatmul.msk.f32.gmra.mxu1 %vm2024_vm11, %v3992_v29  ;;  %3977 = vst.msk [vmem:[#allocation3 + $0xd8] sm:$0xff] %vm1950_vm10, %v3909_v24 }
 0x684   : > { %4301 = vst.msk [vmem:[%s6675_s17 + $0x10] sm:$0xff] %vm258_vm0, %v4269_v40  ;;  %v4196_v41 = vpop.f32.mrf.mxu3 }
 0x685   : > { %v4197_v25 = vadd.f32 %v6663_v45, %v4196_v41  ;;  %v4258_v41 = vld [vmem:[%s4556_s23 + $0xb8] sm:$0xff] }
 0x687   : > { %v4286_v43 = vadd.f32 %v4254_v50, %v4197_v25  ;;  %v3529_v30 = vpop.permute.xlu2 %3528 }
 0x688   : > { %v3527_v13 = vpop.permute.xlu1 %3526 }
 0x689   : > { %4318 = vst.msk [vmem:[%s6675_s17 + $0x98] sm:$0xff] %vm258_vm0, %v4286_v43  ;;  %v3685_v2 = vpop.permute.xlu0 %3684  ;;  %v4009_v4 = vld [vmem:[#allocation3 + $0xd8] sm:$0xff] }
 0x68a   : > { %3594 = vst.msk [vmem:[#allocation3 + $0xe0] sm:$0xff] %vm1564_vm7, %v3527_v13  ;;  %4456 = vmatmul.msk.f32.gmra.mxu3 %vm2024_vm11, %v4009_v4  ;;  %v4242_v4 = vld [vmem:[%s4556_s23 + $0x38] sm:$0xff] }
 0x68b   : > { %3769 = vst.msk [vmem:[#allocation3 + $0x58] sm:$0xff] %vm1757_vm8, %v3685_v2 }
 0x68c   : > { %3961 = vst.msk [vmem:[#allocation3 + $0x58] sm:$0xff] %vm1950_vm10, %v3877_v59 }
 0x68f   : > { %v3913_v48 = vpop.permute.xlu2 %3912  ;;  %v4148_v39 = vpop.f32.mrf.mxu1 }
 0x690   : > { %v3911_v28 = vpop.permute.xlu1 %3910  ;;  %v4149_v60 = vadd.f32 %v6663_v45, %v4148_v39 }
 0x691   : > { %v3719_v27 = vpop.permute.xlu0 %3718 }
 0x692   : > { %v4270_v10 = vadd.f32 %v4238_v21, %v4149_v60  ;;  %3786 = vst.msk [vmem:[#allocation3 + $0xe0] sm:$0xff] %vm1757_vm8, %v3719_v27 }
 0x693   : > { %3978 = vst.msk [vmem:[#allocation3 + $0xe0] sm:$0xff] %vm1950_vm10, %v3911_v28  ;;  %v3993_v52 = vld [vmem:[#allocation3 + $0x58] sm:$0xff] }
 0x694   : > { %4302 = vst.msk [vmem:[%s6675_s17 + $0x18] sm:$0xff] %vm258_vm0, %v4270_v10  ;;  %4440 = vmatmul.msk.f32.gmra.mxu1 %vm2024_vm11, %v3993_v52  ;;  %v4199_v12 = vpop.f32.mrf.mxu3  ;;  %v4259_v10 = vld [vmem:[%s4556_s23 + $0xc0] sm:$0xff] }
 0x695   : > { %v4200_v7 = vadd.f32 %v6663_v45, %v4199_v12 }
 0x697   : > { %v4287_v14 = vadd.f32 %v4255_v23, %v4200_v7  ;;  %v3689_v62 = vpop.permute.xlu2 %3688 }
 0x698   : > { %v3687_v54 = vpop.permute.xlu1 %3686 }
 0x699   : > { %4319 = vst.msk [vmem:[%s6675_s17 + $0xa0] sm:$0xff] %vm258_vm0, %v4287_v14  ;;  %v3337_v55 = vpop.permute.xlu0 %3336  ;;  %v4243_v14 = vld [vmem:[%s4556_s23 + $0x40] sm:$0xff] }
 0x69a   : > { %3770 = vst.msk [vmem:[#allocation3 + $0x60] sm:$0xff] %vm1757_vm8, %v3687_v54  ;;  %v4010_v31 = vld [vmem:[#allocation3 + $0xe0] sm:$0xff] }
 0x69b   : > { %3403 = vst.msk [vmem:[#allocation3 + $0xe8] sm:$0xff] %vm1371_vm6, %v3337_v55  ;;  %4457 = vmatmul.msk.f32.gmra.mxu3 %vm2024_vm11, %v4010_v31  ;;  %v4260_v31 = vld [vmem:[%s4556_s23 + $0xc8] sm:$0xff] }
 0x69c   : > { %3595 = vst.msk [vmem:[#allocation3 + $0xe8] sm:$0xff] %vm1564_vm7, %v3529_v30 }
 0x69f   : > { %v3723_v11 = vpop.permute.xlu2 %3722  ;;  %v4151_v58 = vpop.f32.mrf.mxu1 }
 0x6a0   : > { %v3721_v3 = vpop.permute.xlu1 %3720  ;;  %v4152_v33 = vadd.f32 %v6663_v45, %v4151_v58 }
 0x6a1   : > { %3787 = vst.msk [vmem:[#allocation3 + $0xe8] sm:$0xff] %vm1757_vm8, %v3721_v3  ;;  %v3879_v19 = vpop.permute.xlu0 %3878  ;;  %v4244_v3 = vld [vmem:[%s4556_s23 + $0x48] sm:$0xff] }
 0x6a2   : > { %3979 = vst.msk [vmem:[#allocation3 + $0xe8] sm:$0xff] %vm1950_vm10, %v3913_v48  ;;  %v4271_v61 = vadd.f32 %v4239_v53, %v4152_v33 }
 0x6a3   : > { %3962 = vst.msk [vmem:[#allocation3 + $0x60] sm:$0xff] %vm1950_vm10, %v3879_v19 }
 0x6a4   : > { %4303 = vst.msk [vmem:[%s6675_s17 + $0x20] sm:$0xff] %vm258_vm0, %v4271_v61  ;;  %v4202_v46 = vpop.f32.mrf.mxu3 }
 0x6a5   : > { %v4203_v35 = vadd.f32 %v6663_v45, %v4202_v46  ;;  %v4261_v46 = vld [vmem:[%s4556_s23 + $0xd0] sm:$0xff] }
 0x6a7   : > { %v4288_v26 = vadd.f32 %v4256_v36, %v4203_v35  ;;  %v3341_v47 = vpop.permute.xlu2 %3340 }
 0x6a8   : > { %3405 = vst.msk [vmem:[#allocation3 + $0xf8] sm:$0xff] %vm1371_vm6, %v3341_v47  ;;  %v3339_v8 = vpop.permute.xlu1 %3338  ;;  %v4245_v47 = vld [vmem:[%s4556_s23 + $0x50] sm:$0xff] }
 0x6a9   : > { %4320 = vst.msk [vmem:[%s6675_s17 + $0xa8] sm:$0xff] %vm258_vm0, %v4288_v26  ;;  %v3497_v44 = vpop.permute.xlu0 %3496  ;;  %v4011_v34 = vld [vmem:[#allocation3 + $0xe8] sm:$0xff] }
 0x6aa   : > { %3404 = vst.msk [vmem:[#allocation3 + $0xf0] sm:$0xff] %vm1371_vm6, %v3339_v8  ;;  %4458 = vmatmul.msk.f32.gmra.mxu3 %vm2024_vm11, %v4011_v34  ;;  %v3994_v56 = vld [vmem:[#allocation3 + $0x60] sm:$0xff] }
 0x6ab   : > { %3579 = vst.msk [vmem:[#allocation3 + $0x68] sm:$0xff] %vm1564_vm7, %v3497_v44  ;;  %4441 = vmatmul.msk.f32.gmra.mxu1 %vm2024_vm11, %v3994_v56  ;;  %v4262_v56 = vld [vmem:[%s4556_s23 + $0xd8] sm:$0xff] }
 0x6ac   : > { %3771 = vst.msk [vmem:[#allocation3 + $0x68] sm:$0xff] %vm1757_vm8, %v3689_v62 }
 0x6af   : > { %v3883_v18 = vpop.permute.xlu2 %3882  ;;  %v4154_v20 = vpop.f32.mrf.mxu1 }
 0x6b0   : > { %v3881_v57 = vpop.permute.xlu1 %3880  ;;  %v4155_v37 = vadd.f32 %v6663_v45, %v4154_v20 }
 0x6b1   : > { %3963 = vst.msk [vmem:[#allocation3 + $0x68] sm:$0xff] %vm1950_vm10, %v3881_v57  ;;  %v3531_v42 = vpop.permute.xlu0 %3530  ;;  %v4246_v57 = vld [vmem:[%s4556_s23 + $0x58] sm:$0xff] }
 0x6b2   : > { %v4272_v15 = vadd.f32 %v4240_v1, %v4155_v37  ;;  %3596 = vst.msk [vmem:[#allocation3 + $0xf0] sm:$0xff] %vm1564_vm7, %v3531_v42 }
 0x6b3   : > { %3788 = vst.msk [vmem:[#allocation3 + $0xf0] sm:$0xff] %vm1757_vm8, %v3723_v11 }
 0x6b4   : > { %4304 = vst.msk [vmem:[%s6675_s17 + $0x28] sm:$0xff] %vm258_vm0, %v4272_v15  ;;  %v4205_v49 = vpop.f32.mrf.mxu3 }
 0x6b5   : > { %v4206_v63 = vadd.f32 %v6663_v45, %v4205_v49  ;;  %v4263_v49 = vld [vmem:[%s4556_s23 + $0xe0] sm:$0xff] }
 0x6b7   : > { %v4289_v51 = vadd.f32 %v4257_v32, %v4206_v63  ;;  %v3501_v5 = vpop.permute.xlu2 %3500 }
 0x6b8   : > { %3581 = vst.msk [vmem:[#allocation3 + $0x78] sm:$0xff] %vm1564_vm7, %v3501_v5  ;;  %v3499_v59 = vpop.permute.xlu1 %3498  ;;  %v3995_v6 = vld [vmem:[#allocation3 + $0x68] sm:$0xff]  ;;  %v4247_v5 = vld [vmem:[%s4556_s23 + $0x60] sm:$0xff] }
 0x6b9   : > { %4321 = vst.msk [vmem:[%s6675_s17 + $0xb0] sm:$0xff] %vm258_vm0, %v4289_v51  ;;  %4442 = vmatmul.msk.f32.gmra.mxu1 %vm2024_vm11, %v3995_v6  ;;  %v3915_v22 = vpop.permute.xlu0 %3914 }
 0x6ba   : > { %3580 = vst.msk [vmem:[#allocation3 + $0x70] sm:$0xff] %vm1564_vm7, %v3499_v59 }
 0x6bb   : > { %3980 = vst.msk [vmem:[#allocation3 + $0xf0] sm:$0xff] %vm1950_vm10, %v3915_v22 }
 0x6bf   : > { %v4157_v0 = vpop.f32.mrf.mxu1 }
 0x6c0   : > { %v3533_v17 = vpop.permute.xlu1 %3532  ;;  %v4158_v9 = vadd.f32 %v6663_v45, %v4157_v0  ;;  %v4264_v0 = vld [vmem:[%s4556_s23 + $0xe8] sm:$0xff] }
 0x6c1   : > { %3597 = vst.msk [vmem:[#allocation3 + $0xf8] sm:$0xff] %vm1564_vm7, %v3533_v17  ;;  %v3691_v16 = vpop.permute.xlu0 %3690 }
 0x6c2   : > { %v4273_v29 = vadd.f32 %v4241_v38, %v4158_v9  ;;  %3772 = vst.msk [vmem:[#allocation3 + $0x70] sm:$0xff] %vm1757_vm8, %v3691_v16  ;;  %v4012_v24 = vld [vmem:[#allocation3 + $0xf0] sm:$0xff]  ;;  %v4248_v16 = vld [vmem:[%s4556_s23 + $0x68] sm:$0xff] }
 0x6c3   : > { %3964 = vst.msk [vmem:[#allocation3 + $0x70] sm:$0xff] %vm1950_vm10, %v3883_v18  ;;  %4459 = vmatmul.msk.f32.gmra.mxu3 %vm2024_vm11, %v4012_v24 }
 0x6c4   : > { %4305 = vst.msk [vmem:[%s6675_s17 + $0x30] sm:$0xff] %vm258_vm0, %v4273_v29  ;;  %v4208_v40 = vpop.f32.mrf.mxu3 }
 0x6c5   : > { %v4209_v50 = vadd.f32 %v6663_v45, %v4208_v40 }
 0x6c7   : > { %v4290_v25 = vadd.f32 %v4258_v41, %v4209_v50  ;;  %v4265_v41 = vld [vmem:[%s4556_s23 + $0xf0] sm:$0xff] }
 0x6c8   : > { %v3917_v43 = vpop.permute.xlu1 %3916 }
 0x6c9   : > { %4322 = vst.msk [vmem:[%s6675_s17 + $0xb8] sm:$0xff] %vm258_vm0, %v4290_v25  ;;  %v3725_v30 = vpop.permute.xlu0 %3724 }
 0x6ca   : > { %3789 = vst.msk [vmem:[#allocation3 + $0xf8] sm:$0xff] %vm1757_vm8, %v3725_v30  ;;  %v3996_v13 = vld [vmem:[#allocation3 + $0x70] sm:$0xff] }
 0x6cb   : > { %3981 = vst.msk [vmem:[#allocation3 + $0xf8] sm:$0xff] %vm1950_vm10, %v3917_v43  ;;  %4443 = vmatmul.msk.f32.gmra.mxu1 %vm2024_vm11, %v3996_v13  ;;  %v4249_v43 = vld [vmem:[%s4556_s23 + $0x70] sm:$0xff] }
 0x6cf   : > { %v4160_v2 = vpop.f32.mrf.mxu1 }
 0x6d0   : > { %v4161_v48 = vadd.f32 %v6663_v45, %v4160_v2  ;;  %v3885_v21 = vpop.permute.xlu1 %3884 }
 0x6d1   : > { %v3693_v39 = vpop.permute.xlu0 %3692 }
 0x6d2   : > { %v4274_v28 = vadd.f32 %v4242_v4, %v4161_v48  ;;  %3773 = vst.msk [vmem:[#allocation3 + $0x78] sm:$0xff] %vm1757_vm8, %v3693_v39  ;;  %v4013_v60 = vld [vmem:[#allocation3 + $0xf8] sm:$0xff]  ;;  %v4266_v48 = vld [vmem:[%s4556_s23 + $0xf8] sm:$0xff] }
 0x6d3   : > { %3965 = vst.msk [vmem:[#allocation3 + $0x78] sm:$0xff] %vm1950_vm10, %v3885_v21  ;;  %4460 = vmatmul.msk.f32.gmra.mxu3 %vm2024_vm11, %v4013_v60 }
 0x6d4   : > { %4306 = vst.msk [vmem:[%s6675_s17 + $0x38] sm:$0xff] %vm258_vm0, %v4274_v28  ;;  %v4211_v27 = vpop.f32.mrf.mxu3  ;;  %v4250_v28 = vld [vmem:[%s4556_s23 + $0x78] sm:$0xff] }
 0x6d5   : > { %v4212_v52 = vadd.f32 %v6663_v45, %v4211_v27 }
 0x6d7   : > { %v4291_v12 = vadd.f32 %v4259_v10, %v4212_v52 }
 0x6d9   : > { %4323 = vst.msk [vmem:[%s6675_s17 + $0xc0] sm:$0xff] %vm258_vm0, %v4291_v12 }
 0x6da   : > { %v3997_v23 = vld [vmem:[#allocation3 + $0x78] sm:$0xff] }
 0x6db   : > { %4444 = vmatmul.msk.f32.gmra.mxu1 %vm2024_vm11, %v3997_v23 }
 0x6e0   : > { %v4163_v7 = vpop.f32.mrf.mxu1 }
 0x6e1   : > { %v4164_v62 = vadd.f32 %v6663_v45, %v4163_v7 }
 0x6e3   : > { %v4275_v54 = vadd.f32 %v4243_v14, %v4164_v62 }
 0x6e5   : > { %4307 = vst.msk [vmem:[%s6675_s17 + $0x40] sm:$0xff] %vm258_vm0, %v4275_v54  ;;  %v4214_v55 = vpop.f32.mrf.mxu3 }
 0x6e6   : > { %v4215_v11 = vadd.f32 %v6663_v45, %v4214_v55 }
 0x6e8   : > { %v4292_v58 = vadd.f32 %v4260_v31, %v4215_v11 }
 0x6ea   : > { %4324 = vst.msk [vmem:[%s6675_s17 + $0xc8] sm:$0xff] %vm258_vm0, %v4292_v58 }
 0x6f1   : > { %v4166_v53 = vpop.f32.mrf.mxu1 }
 0x6f2   : > { %v4167_v33 = vadd.f32 %v6663_v45, %v4166_v53 }
 0x6f4   : > { %v4276_v19 = vadd.f32 %v4244_v3, %v4167_v33 }
 0x6f6   : > { %4308 = vst.msk [vmem:[%s6675_s17 + $0x48] sm:$0xff] %vm258_vm0, %v4276_v19  ;;  %v4217_v61 = vpop.f32.mrf.mxu3 }
 0x6f7   : > { %v4218_v36 = vadd.f32 %v6663_v45, %v4217_v61 }
 0x6f9   : > { %v4293_v35 = vadd.f32 %v4261_v46, %v4218_v36 }
 0x6fb   : > { %4325 = vst.msk [vmem:[%s6675_s17 + $0xd0] sm:$0xff] %vm258_vm0, %v4293_v35 }
 0x6ff   : > { %v4169_v26 = vpop.f32.mrf.mxu1 }
 0x700   : > { %v4170_v8 = vadd.f32 %v6663_v45, %v4169_v26 }
 0x702   : > { %v4277_v44 = vadd.f32 %v4245_v47, %v4170_v8 }
 0x704   : > { %4309 = vst.msk [vmem:[%s6675_s17 + $0x50] sm:$0xff] %vm258_vm0, %v4277_v44 }
 0x70d   : > { %v4220_v34 = vpop.f32.mrf.mxu3 }
 0x70e   : > { %v4221_v18 = vadd.f32 %v6663_v45, %v4220_v34 }
 0x710   : > { %v4294_v20 = vadd.f32 %v4262_v56, %v4221_v18 }
 0x711   : > { %v4172_v1 = vpop.f32.mrf.mxu1 }
 0x712   : > { %4326 = vst.msk [vmem:[%s6675_s17 + $0xd8] sm:$0xff] %vm258_vm0, %v4294_v20  ;;  %v4173_v37 = vadd.f32 %v6663_v45, %v4172_v1 }
 0x714   : > { %v4278_v42 = vadd.f32 %v4246_v57, %v4173_v37 }
 0x716   : > { %4310 = vst.msk [vmem:[%s6675_s17 + $0x58] sm:$0xff] %vm258_vm0, %v4278_v42 }
 0x71e   : > { %v4223_v15 = vpop.f32.mrf.mxu3 }
 0x71f   : > { %v4224_v32 = vadd.f32 %v6663_v45, %v4223_v15 }
 0x721   : > { %v4295_v63 = vadd.f32 %v4263_v49, %v4224_v32 }
 0x723   : > { %4327 = vst.msk [vmem:[%s6675_s17 + $0xe0] sm:$0xff] %vm258_vm0, %v4295_v63 }
 0x728   : > { %v4175_v51 = vpop.f32.mrf.mxu1 }
 0x729   : > { %v4176_v59 = vadd.f32 %v6663_v45, %v4175_v51 }
 0x72b   : > { %v4279_v6 = vadd.f32 %v4247_v5, %v4176_v59 }
 0x72d   : > { %4311 = vst.msk [vmem:[%s6675_s17 + $0x60] sm:$0xff] %vm258_vm0, %v4279_v6  ;;  %v4226_v22 = vpop.f32.mrf.mxu3 }
 0x72e   : > { %v4227_v38 = vadd.f32 %v6663_v45, %v4226_v22 }
 0x730   : > { %v4296_v17 = vadd.f32 %v4264_v0, %v4227_v38 }
 0x732   : > { %4328 = vst.msk [vmem:[%s6675_s17 + $0xe8] sm:$0xff] %vm258_vm0, %v4296_v17 }
 0x736   : > { %v4178_v9 = vpop.f32.mrf.mxu1 }
 0x737   : > { %v4179_v29 = vadd.f32 %v6663_v45, %v4178_v9 }
 0x739   : > { %v4280_v24 = vadd.f32 %v4248_v16, %v4179_v29 }
 0x73b   : > { %4312 = vst.msk [vmem:[%s6675_s17 + $0x68] sm:$0xff] %vm258_vm0, %v4280_v24 }
 0x746   : > { %v4229_v40 = vpop.f32.mrf.mxu3 }
 0x747   : > { %v4230_v50 = vadd.f32 %v6663_v45, %v4229_v40 }
 0x748   : > { %v4181_v25 = vpop.f32.mrf.mxu1 }
 0x749   : > { %v4297_v30 = vadd.f32 %v4265_v41, %v4230_v50  ;;  %v4182_v13 = vadd.f32 %v6663_v45, %v4181_v25 }
 0x74b   : > { %4329 = vst.msk [vmem:[%s6675_s17 + $0xf0] sm:$0xff] %vm258_vm0, %v4297_v30  ;;  %v4281_v2 = vadd.f32 %v4249_v43, %v4182_v13 }
 0x74d   : > { %4313 = vst.msk [vmem:[%s6675_s17 + $0x70] sm:$0xff] %vm258_vm0, %v4281_v2 }
 0x756   : > { %v4232_v4 = vpop.f32.mrf.mxu3 }
 0x757   : > { %v4233_v39 = vadd.f32 %v6663_v45, %v4232_v4 }
 0x758   : > { %v4184_v21 = vpop.f32.mrf.mxu1 }
 0x759   : > { %v4298_v60 = vadd.f32 %v4266_v48, %v4233_v39  ;;  %v4185_v27 = vadd.f32 %v6663_v45, %v4184_v21 }
 0x75b   : > { %4330 = vst.msk [vmem:[%s6675_s17 + $0xf8] sm:$0xff] %vm258_vm0, %v4298_v60  ;;  %v4282_v10 = vadd.f32 %v4250_v28, %v4185_v27 }
 0x75d   : > { %4314 = vst.msk [vmem:[%s6675_s17 + $0x78] sm:$0xff] %vm258_vm0, %v4282_v10 }
 0x75e PF: > { %s15_s18 = sadd.s32 1, %s4500_s18  }
 0x75f   : > { %p12_p4 = scmp.ge.s32.totalorder %s15_s18, 4  }
 0x761   :  { %14 = sbr.rel (!%p12_p4) target bundleno = 1 (0x1), region = 74 }

</bundles_post_ra>
